<compile_context>
chip_gen: v6e
topology: v6e:2x2x1
jax: 0.10.0
libtpu: 0.0.40
codegen_flags: <defaults>
</compile_context>

<pallas_src>
import functools
import math

import jax
import jax.numpy as jnp
from jax import lax
from jax.experimental import pallas as pl
from jax.experimental.pallas import tpu as pltpu

# ----------------------------- synthetic T5 config ---------------------------
VOCAB = 128
D_MODEL = 32
N_HEADS = 4
D_KV = 8                      # head dim
INNER = N_HEADS * D_KV        # 32
D_FF = 64
N_LAYERS = 2
NUM_BUCKETS = 32
MAX_DISTANCE = 128
LN_EPS = 1e-6
NEG_INF = -1e9


def _full_spec(shape):
    """Whole-array block (block == full array satisfies the (8,128) rule)."""
    nd = len(shape)
    return pl.BlockSpec(shape, lambda i, _nd=nd: (0,) * _nd)


# ------------------------------ fused decoder kernel -------------------------
def _fused_t5_kernel(h_ref, enc_ref, bias_ref,
                     ln_self_ref, w_qkv_ref, w_o_ref,
                     ln_cross_ref, w_cq_ref, w_ckv_ref, w_co_ref,
                     ln_ff_ref, w_wi_ref, w_wo_ref,
                     final_ln_ref, lm_head_ref,
                     out_ref, *, B, S, Senc):
    h = h_ref[...]            # (B*S, D)      f32 residual stream
    enc = enc_ref[...]        # (B*Senc, D)   f32
    self_bias = bias_ref[...]  # (H, S, S)    f32  (rel-pos bias + causal mask)

    def mm(x, w):
        # bf16 operands -> MXU, f32 accumulation; contract on in_features of both
        # (PyTorch nn.Linear convention: w is (out_features, in_features)).
        return lax.dot_general(
            x.astype(jnp.bfloat16), w.astype(jnp.bfloat16),
            dimension_numbers=(((1,), (1,)), ((), ())),
            preferred_element_type=jnp.float32)

    def rms(x, g):
        # T5LayerNorm: RMS norm, no mean subtraction, no bias (f32 math).
        var = jnp.mean(x * x, axis=-1, keepdims=True)
        return g * x * lax.rsqrt(var + LN_EPS)

    def attend(q, kk, vv, bias, s_q, s_k):
        # q: (B*s_q, INNER), kk/vv: (B*s_k, INNER); per-(batch, head) blocks stay
        # in VMEM/vregs; T5 convention: NO 1/sqrt(d) scaling, additive bias only.
        rows = []
        for b in range(B):
            qb = q[b * s_q:(b + 1) * s_q, :]
            kb = kk[b * s_k:(b + 1) * s_k, :]
            vb = vv[b * s_k:(b + 1) * s_k, :]
            heads = []
            for hh in range(N_HEADS):
                qh = qb[:, hh * D_KV:(hh + 1) * D_KV]
                kh = kb[:, hh * D_KV:(hh + 1) * D_KV]
                vh = vb[:, hh * D_KV:(hh + 1) * D_KV]
                s = lax.dot_general(
                    qh.astype(jnp.bfloat16), kh.astype(jnp.bfloat16),
                    dimension_numbers=(((1,), (1,)), ((), ())),
                    preferred_element_type=jnp.float32)          # (s_q, s_k)
                if bias is not None:
                    s = s + bias[hh]
                m = jnp.max(s, axis=-1, keepdims=True)
                p = jnp.exp(s - m)
                denom = jnp.sum(p, axis=-1, keepdims=True)
                p = p * pl.reciprocal(denom, approx=True)         # EUP slot
                heads.append(lax.dot_general(
                    p.astype(jnp.bfloat16), vh.astype(jnp.bfloat16),
                    dimension_numbers=(((1,), (0,)), ((), ())),
                    preferred_element_type=jnp.float32))          # (s_q, D_KV)
            rows.append(jnp.concatenate(heads, axis=-1))          # (s_q, INNER)
        return jnp.concatenate(rows, axis=0)                      # (B*s_q, INNER)

    for layer in range(N_LAYERS):
        # ---- self attention block (fused QKV projection) ----
        x = rms(h, ln_self_ref[layer])
        qkv = mm(x, w_qkv_ref[layer])                 # (B*S, 3*INNER)
        q = qkv[:, :INNER]
        k = qkv[:, INNER:2 * INNER]
        v = qkv[:, 2 * INNER:]
        a = attend(q, k, v, self_bias, S, S)
        h = h + mm(a, w_o_ref[layer])                 # fused residual add
        # ---- cross attention block (fused KV projection, zero bias skipped) ----
        x = rms(h, ln_cross_ref[layer])
        q = mm(x, w_cq_ref[layer])                    # (B*S, INNER)
        ckv = mm(enc, w_ckv_ref[layer])               # (B*Senc, 2*INNER)
        a = attend(q, ckv[:, :INNER], ckv[:, INNER:], None, S, Senc)
        h = h + mm(a, w_co_ref[layer])
        # ---- feed forward block (DenseReluDense, eval-mode dropout = identity) ----
        x = rms(h, ln_ff_ref[layer])
        h = h + mm(jnp.maximum(mm(x, w_wi_ref[layer]), 0.0), w_wo_ref[layer])

    h = rms(h, final_ln_ref[...])
    # ExportT5's model_dim**-0.5 scale is already folded into the lm_head weight.
    out_ref[...] = mm(h, lm_head_ref[...])            # (B*S, VOCAB=128) lane-dense


# ------------------------------- JAX glue -----------------------------------
def _relative_position_bucket(rel):
    # decoder (bidirectional=False), matching HuggingFace T5.
    rp = -jnp.minimum(rel, 0)
    max_exact = NUM_BUCKETS // 2
    is_small = rp < max_exact
    rp_f = jnp.maximum(rp, 1).astype(jnp.float32)
    large = max_exact + (jnp.log(rp_f / max_exact)
                         / math.log(MAX_DISTANCE / max_exact)
                         * (NUM_BUCKETS - max_exact)).astype(jnp.int32)
    large = jnp.minimum(large, NUM_BUCKETS - 1)
    return jnp.where(is_small, rp, large)


def compute_position_bias(rel_w, qlen, klen):
    ctx = jnp.arange(qlen)[:, None]
    mem = jnp.arange(klen)[None, :]
    buckets = _relative_position_bucket(mem - ctx)   # (q, k)
    values = rel_w[buckets]                          # (q, k, H) gather (JAX glue)
    return jnp.transpose(values, (2, 0, 1))          # (H, q, k)


def export_t5_forward(params, input_ids, encoder_hidden_states, past_key_values=None):
    # TODO(synk): past_key_values (incremental decode KV cache) not implemented; None path only.
    del past_key_values
    B, S = input_ids.shape
    Senc = encoder_hidden_states.shape[1]

    h0 = params['embed'][input_ids].reshape(B * S, D_MODEL)
    enc2d = encoder_hidden_states.astype(jnp.float32).reshape(B * Senc, D_MODEL)

    # causal mask + shared relative-position bias; passed once as (H, S, S),
    # broadcast over batch inside the kernel (no (B*H, S, S) HBM materialization).
    causal = jnp.where(jnp.arange(S)[None, :] <= jnp.arange(S)[:, None],
                       0.0, NEG_INF).astype(jnp.float32)
    self_bias = compute_position_bias(params['rel_bias'], S, S) + causal[None]

    inputs = (h0, enc2d, self_bias,
              params['ln_self'], params['w_qkv'], params['w_o'],
              params['ln_cross'], params['w_cq'], params['w_ckv'], params['w_co'],
              params['ln_ff'], params['wi'], params['wo'],
              params['final_ln'], params['lm_head'])

    kernel = functools.partial(_fused_t5_kernel, B=B, S=S, Senc=Senc)
    logits = pl.pallas_call(
        kernel,
        grid=(1,),
        in_specs=[_full_spec(a.shape) for a in inputs],
        out_specs=_full_spec((B * S, VOCAB)),
        out_shape=jax.ShapeDtypeStruct((B * S, VOCAB), jnp.float32),
        compiler_params=pltpu.CompilerParams(
            dimension_semantics=("arbitrary",)),
    )(*inputs)
    return {"last_hidden_state": logits.reshape(B, S, VOCAB)}


# ----------------------------- parameter init --------------------------------
def init_params(key):
    keys = iter(jax.random.split(key, 64))

    def dense(out_dim, in_dim):
        return jax.random.normal(next(keys), (out_dim, in_dim), jnp.float32) * 0.05

    def stack(make):
        return jnp.stack([make() for _ in range(N_LAYERS)], axis=0)

    params = {
        'embed': jax.random.normal(next(keys), (VOCAB, D_MODEL), jnp.float32) * 0.05,
        'rel_bias': jax.random.normal(next(keys), (NUM_BUCKETS, N_HEADS), jnp.float32) * 0.05,
        # layer-stacked weights; matmul weights stored bf16 (MXU-native, half DMA bytes)
        'ln_self': jnp.ones((N_LAYERS, 1, D_MODEL), jnp.float32),
        'w_qkv': stack(lambda: dense(3 * INNER, D_MODEL)).astype(jnp.bfloat16),   # fused q|k|v
        'w_o': stack(lambda: dense(D_MODEL, INNER)).astype(jnp.bfloat16),
        'ln_cross': jnp.ones((N_LAYERS, 1, D_MODEL), jnp.float32),
        'w_cq': stack(lambda: dense(INNER, D_MODEL)).astype(jnp.bfloat16),
        'w_ckv': stack(lambda: dense(2 * INNER, D_MODEL)).astype(jnp.bfloat16),   # fused ck|cv
        'w_co': stack(lambda: dense(D_MODEL, INNER)).astype(jnp.bfloat16),
        'ln_ff': jnp.ones((N_LAYERS, 1, D_MODEL), jnp.float32),
        'wi': stack(lambda: dense(D_FF, D_MODEL)).astype(jnp.bfloat16),
        'wo': stack(lambda: dense(D_MODEL, D_FF)).astype(jnp.bfloat16),
        'final_ln': jnp.ones((1, D_MODEL), jnp.float32),
        # ExportT5: hidden * model_dim**-0.5 then lm_head; scale commutes with the
        # matmul, so it is folded into the stored lm_head weight (free at runtime).
        'lm_head': (dense(VOCAB, D_MODEL) * D_MODEL ** (-0.5)).astype(jnp.bfloat16),
    }
    return params


# --------------------------------- main --------------------------------------
if __name__ == "__main__":
    key = jax.random.PRNGKey(0)
    k_params, k_ids, k_enc = jax.random.split(key, 3)

    params = init_params(k_params)
    input_ids = jax.random.randint(k_ids, (2, 8), 0, VOCAB, dtype=jnp.int32)
    encoder_hidden_states = jax.random.normal(k_enc, (2, 8, D_MODEL), jnp.float32)

    out = export_t5_forward(params, input_ids, encoder_hidden_states)
    logits = jax.block_until_ready(out["last_hidden_state"])
    assert logits.shape == (2, 8, VOCAB)
    assert bool(jnp.all(jnp.isfinite(logits)))
    print("KERNEL_OK")
</pallas_src>

<mosaic_0001>
module attributes {stable_mosaic.version = 11 : i64} {
  func.func @_fused_t5_kernel(%arg0: i32, %arg1: memref<16x32xf32, #tpu.memory_space<vmem>>, %arg2: memref<16x32xf32, #tpu.memory_space<vmem>>, %arg3: memref<4x8x8xf32, #tpu.memory_space<vmem>>, %arg4: memref<2x1x32xf32, #tpu.memory_space<vmem>>, %arg5: memref<2x96x32xbf16, #tpu.memory_space<vmem>>, %arg6: memref<2x32x32xbf16, #tpu.memory_space<vmem>>, %arg7: memref<2x1x32xf32, #tpu.memory_space<vmem>>, %arg8: memref<2x32x32xbf16, #tpu.memory_space<vmem>>, %arg9: memref<2x64x32xbf16, #tpu.memory_space<vmem>>, %arg10: memref<2x32x32xbf16, #tpu.memory_space<vmem>>, %arg11: memref<2x1x32xf32, #tpu.memory_space<vmem>>, %arg12: memref<2x64x32xbf16, #tpu.memory_space<vmem>>, %arg13: memref<2x32x64xbf16, #tpu.memory_space<vmem>>, %arg14: memref<1x32xf32, #tpu.memory_space<vmem>>, %arg15: memref<128x32xbf16, #tpu.memory_space<vmem>>, %arg16: memref<16x128xf32, #tpu.memory_space<vmem>>) attributes {dimension_semantics = [#tpu.dimension_semantics<arbitrary>], iteration_bounds = array<i64: 1>, scalar_prefetch = 0 : i64, scratch_operands = 0 : i64, tpu.core_type = #tpu.core_type<tc>, window_params = [{pipeline_mode = #tpu.pipeline_mode<synchronous>, transform_indices = @transform_0, window_bounds = array<i64: 16, 32>}, {pipeline_mode = #tpu.pipeline_mode<synchronous>, transform_indices = @transform_1, window_bounds = array<i64: 16, 32>}, {pipeline_mode = #tpu.pipeline_mode<synchronous>, transform_indices = @transform_2, window_bounds = array<i64: 4, 8, 8>}, {pipeline_mode = #tpu.pipeline_mode<synchronous>, transform_indices = @transform_3, window_bounds = array<i64: 2, 1, 32>}, {pipeline_mode = #tpu.pipeline_mode<synchronous>, transform_indices = @transform_4, window_bounds = array<i64: 2, 96, 32>}, {pipeline_mode = #tpu.pipeline_mode<synchronous>, transform_indices = @transform_5, window_bounds = array<i64: 2, 32, 32>}, {pipeline_mode = #tpu.pipeline_mode<synchronous>, transform_indices = @transform_6, window_bounds = array<i64: 2, 1, 32>}, {pipeline_mode = #tpu.pipeline_mode<synchronous>, transform_indices = @transform_7, window_bounds = array<i64: 2, 32, 32>}, {pipeline_mode = #tpu.pipeline_mode<synchronous>, transform_indices = @transform_8, window_bounds = array<i64: 2, 64, 32>}, {pipeline_mode = #tpu.pipeline_mode<synchronous>, transform_indices = @transform_9, window_bounds = array<i64: 2, 32, 32>}, {pipeline_mode = #tpu.pipeline_mode<synchronous>, transform_indices = @transform_10, window_bounds = array<i64: 2, 1, 32>}, {pipeline_mode = #tpu.pipeline_mode<synchronous>, transform_indices = @transform_11, window_bounds = array<i64: 2, 64, 32>}, {pipeline_mode = #tpu.pipeline_mode<synchronous>, transform_indices = @transform_12, window_bounds = array<i64: 2, 32, 64>}, {pipeline_mode = #tpu.pipeline_mode<synchronous>, transform_indices = @transform_13, window_bounds = array<i64: 1, 32>}, {pipeline_mode = #tpu.pipeline_mode<synchronous>, transform_indices = @transform_14, window_bounds = array<i64: 128, 32>}, {pipeline_mode = #tpu.pipeline_mode<synchronous>, transform_indices = @transform_15, window_bounds = array<i64: 16, 128>}]} {
    %c0 = arith.constant 0 : index
    %c0_0 = arith.constant 0 : index
    %0 = vector.load %arg1[%c0, %c0_0] : memref<16x32xf32, #tpu.memory_space<vmem>>, vector<16x32xf32>
    %c0_1 = arith.constant 0 : index
    %c0_2 = arith.constant 0 : index
    %1 = vector.load %arg2[%c0_1, %c0_2] : memref<16x32xf32, #tpu.memory_space<vmem>>, vector<16x32xf32>
    %c0_3 = arith.constant 0 : index
    %c0_4 = arith.constant 0 : index
    %c0_5 = arith.constant 0 : index
    %2 = vector.load %arg3[%c0_3, %c0_4, %c0_5] : memref<4x8x8xf32, #tpu.memory_space<vmem>>, vector<4x8x8xf32>
    %c0_6 = arith.constant 0 : index
    %c0_7 = arith.constant 0 : index
    %c0_8 = arith.constant 0 : index
    %3 = vector.load %arg4[%c0_6, %c0_7, %c0_8] : memref<2x1x32xf32, #tpu.memory_space<vmem>>, vector<1x1x32xf32>
    %4 = vector.shape_cast %3 : vector<1x1x32xf32> to vector<1x32xf32>
    %5 = arith.mulf %0, %0 : vector<16x32xf32>
    %cst = arith.constant dense<0.000000e+00> : vector<16xf32>
    %6 = vector.multi_reduction <add>, %5, %cst [1] : vector<16x32xf32> to vector<16xf32>
    %7 = vector.shape_cast %6 : vector<16xf32> to vector<16x1xf32>
    %cst_9 = arith.constant 3.200000e+01 : f32
    %8 = vector.broadcast %cst_9 : f32 to vector<16x1xf32>
    %9 = arith.divf %7, %8 : vector<16x1xf32>
    %10 = vector.broadcast %4 : vector<1x32xf32> to vector<16x32xf32>
    %11 = arith.mulf %10, %0 : vector<16x32xf32>
    %cst_10 = arith.constant 9.99999997E-7 : f32
    %12 = vector.broadcast %cst_10 : f32 to vector<16x1xf32>
    %13 = arith.addf %9, %12 : vector<16x1xf32>
    %14 = math.rsqrt %13 : vector<16x1xf32>
    %15 = vector.broadcast %14 : vector<16x1xf32> to vector<16x32xf32>
    %16 = arith.mulf %11, %15 : vector<16x32xf32>
    %c0_11 = arith.constant 0 : index
    %c0_12 = arith.constant 0 : index
    %c0_13 = arith.constant 0 : index
    %17 = vector.load %arg5[%c0_11, %c0_12, %c0_13] : memref<2x96x32xbf16, #tpu.memory_space<vmem>>, vector<1x96x32xbf16>
    %18 = vector.shape_cast %17 : vector<1x96x32xbf16> to vector<96x32xbf16>
    %19 = arith.truncf %16 : vector<16x32xf32> to vector<16x32xbf16>
    %cst_14 = arith.constant dense<0.000000e+00> : vector<16x96xf32>
    %20 = tpu.matmul %19, %18, %cst_14 {dimension_numbers = #tpu.dot_dimension_numbers<[1], [1], [0], [0], [0, 0, 1, 0], [], []>} : vector<16x32xbf16>, vector<96x32xbf16>, vector<16x96xf32> -> vector<16x96xf32>
    %21 = vector.extract_strided_slice %20 {offsets = [0, 0], sizes = [16, 32], strides = [1, 1]} : vector<16x96xf32> to vector<16x32xf32>
    %22 = vector.extract_strided_slice %20 {offsets = [0, 32], sizes = [16, 32], strides = [1, 1]} : vector<16x96xf32> to vector<16x32xf32>
    %23 = vector.extract_strided_slice %20 {offsets = [0, 64], sizes = [16, 32], strides = [1, 1]} : vector<16x96xf32> to vector<16x32xf32>
    %24 = vector.extract_strided_slice %21 {offsets = [0, 0], sizes = [8, 32], strides = [1, 1]} : vector<16x32xf32> to vector<8x32xf32>
    %25 = vector.extract_strided_slice %22 {offsets = [0, 0], sizes = [8, 32], strides = [1, 1]} : vector<16x32xf32> to vector<8x32xf32>
    %26 = vector.extract_strided_slice %23 {offsets = [0, 0], sizes = [8, 32], strides = [1, 1]} : vector<16x32xf32> to vector<8x32xf32>
    %27 = vector.extract_strided_slice %24 {offsets = [0, 0], sizes = [8, 8], strides = [1, 1]} : vector<8x32xf32> to vector<8x8xf32>
    %28 = vector.extract_strided_slice %25 {offsets = [0, 0], sizes = [8, 8], strides = [1, 1]} : vector<8x32xf32> to vector<8x8xf32>
    %29 = vector.extract_strided_slice %26 {offsets = [0, 0], sizes = [8, 8], strides = [1, 1]} : vector<8x32xf32> to vector<8x8xf32>
    %30 = arith.truncf %27 : vector<8x8xf32> to vector<8x8xbf16>
    %31 = arith.truncf %28 : vector<8x8xf32> to vector<8x8xbf16>
    %cst_15 = arith.constant dense<0.000000e+00> : vector<8x8xf32>
    %32 = tpu.matmul %30, %31, %cst_15 {dimension_numbers = #tpu.dot_dimension_numbers<[1], [1], [0], [0], [0, 0, 1, 0], [], []>} : vector<8x8xbf16>, vector<8x8xbf16>, vector<8x8xf32> -> vector<8x8xf32>
    %33 = vector.extract_strided_slice %2 {offsets = [0, 0, 0], sizes = [1, 8, 8], strides = [1, 1, 1]} : vector<4x8x8xf32> to vector<1x8x8xf32>
    %34 = vector.shape_cast %33 : vector<1x8x8xf32> to vector<8x8xf32>
    %35 = arith.addf %32, %34 : vector<8x8xf32>
    %cst_16 = arith.constant dense<0xFF800000> : vector<8xf32>
    %36 = vector.multi_reduction <maximumf>, %35, %cst_16 [1] : vector<8x8xf32> to vector<8xf32>
    %37 = vector.shape_cast %36 : vector<8xf32> to vector<8x1xf32>
    %38 = vector.broadcast %37 : vector<8x1xf32> to vector<8x8xf32>
    %39 = arith.subf %35, %38 : vector<8x8xf32>
    %40 = math.exp %39 : vector<8x8xf32>
    %cst_17 = arith.constant dense<0.000000e+00> : vector<8xf32>
    %41 = vector.multi_reduction <add>, %40, %cst_17 [1] : vector<8x8xf32> to vector<8xf32>
    %42 = vector.shape_cast %41 : vector<8xf32> to vector<8x1xf32>
    %43 = tpu.reciprocal %42 {approx = true} : vector<8x1xf32> -> vector<8x1xf32>
    %44 = vector.broadcast %43 : vector<8x1xf32> to vector<8x8xf32>
    %45 = arith.mulf %40, %44 : vector<8x8xf32>
    %46 = arith.truncf %45 : vector<8x8xf32> to vector<8x8xbf16>
    %47 = arith.truncf %29 : vector<8x8xf32> to vector<8x8xbf16>
    %cst_18 = arith.constant dense<0.000000e+00> : vector<8x8xf32>
    %48 = tpu.matmul %46, %47, %cst_18 {dimension_numbers = #tpu.dot_dimension_numbers<[1], [0], [0], [1], [0, 0, 1, 1], [], []>} : vector<8x8xbf16>, vector<8x8xbf16>, vector<8x8xf32> -> vector<8x8xf32>
    %49 = vector.extract_strided_slice %24 {offsets = [0, 8], sizes = [8, 8], strides = [1, 1]} : vector<8x32xf32> to vector<8x8xf32>
    %50 = vector.extract_strided_slice %25 {offsets = [0, 8], sizes = [8, 8], strides = [1, 1]} : vector<8x32xf32> to vector<8x8xf32>
    %51 = vector.extract_strided_slice %26 {offsets = [0, 8], sizes = [8, 8], strides = [1, 1]} : vector<8x32xf32> to vector<8x8xf32>
    %52 = arith.truncf %49 : vector<8x8xf32> to vector<8x8xbf16>
    %53 = arith.truncf %50 : vector<8x8xf32> to vector<8x8xbf16>
    %cst_19 = arith.constant dense<0.000000e+00> : vector<8x8xf32>
    %54 = tpu.matmul %52, %53, %cst_19 {dimension_numbers = #tpu.dot_dimension_numbers<[1], [1], [0], [0], [0, 0, 1, 0], [], []>} : vector<8x8xbf16>, vector<8x8xbf16>, vector<8x8xf32> -> vector<8x8xf32>
    %55 = vector.extract_strided_slice %2 {offsets = [1, 0, 0], sizes = [1, 8, 8], strides = [1, 1, 1]} : vector<4x8x8xf32> to vector<1x8x8xf32>
    %56 = vector.shape_cast %55 : vector<1x8x8xf32> to vector<8x8xf32>
    %57 = arith.addf %54, %56 : vector<8x8xf32>
    %cst_20 = arith.constant dense<0xFF800000> : vector<8xf32>
    %58 = vector.multi_reduction <maximumf>, %57, %cst_20 [1] : vector<8x8xf32> to vector<8xf32>
    %59 = vector.shape_cast %58 : vector<8xf32> to vector<8x1xf32>
    %60 = vector.broadcast %59 : vector<8x1xf32> to vector<8x8xf32>
    %61 = arith.subf %57, %60 : vector<8x8xf32>
    %62 = math.exp %61 : vector<8x8xf32>
    %cst_21 = arith.constant dense<0.000000e+00> : vector<8xf32>
    %63 = vector.multi_reduction <add>, %62, %cst_21 [1] : vector<8x8xf32> to vector<8xf32>
    %64 = vector.shape_cast %63 : vector<8xf32> to vector<8x1xf32>
    %65 = tpu.reciprocal %64 {approx = true} : vector<8x1xf32> -> vector<8x1xf32>
    %66 = vector.broadcast %65 : vector<8x1xf32> to vector<8x8xf32>
    %67 = arith.mulf %62, %66 : vector<8x8xf32>
    %68 = arith.truncf %67 : vector<8x8xf32> to vector<8x8xbf16>
    %69 = arith.truncf %51 : vector<8x8xf32> to vector<8x8xbf16>
    %cst_22 = arith.constant dense<0.000000e+00> : vector<8x8xf32>
    %70 = tpu.matmul %68, %69, %cst_22 {dimension_numbers = #tpu.dot_dimension_numbers<[1], [0], [0], [1], [0, 0, 1, 1], [], []>} : vector<8x8xbf16>, vector<8x8xbf16>, vector<8x8xf32> -> vector<8x8xf32>
    %71 = vector.extract_strided_slice %24 {offsets = [0, 16], sizes = [8, 8], strides = [1, 1]} : vector<8x32xf32> to vector<8x8xf32>
    %72 = vector.extract_strided_slice %25 {offsets = [0, 16], sizes = [8, 8], strides = [1, 1]} : vector<8x32xf32> to vector<8x8xf32>
    %73 = vector.extract_strided_slice %26 {offsets = [0, 16], sizes = [8, 8], strides = [1, 1]} : vector<8x32xf32> to vector<8x8xf32>
    %74 = arith.truncf %71 : vector<8x8xf32> to vector<8x8xbf16>
    %75 = arith.truncf %72 : vector<8x8xf32> to vector<8x8xbf16>
    %cst_23 = arith.constant dense<0.000000e+00> : vector<8x8xf32>
    %76 = tpu.matmul %74, %75, %cst_23 {dimension_numbers = #tpu.dot_dimension_numbers<[1], [1], [0], [0], [0, 0, 1, 0], [], []>} : vector<8x8xbf16>, vector<8x8xbf16>, vector<8x8xf32> -> vector<8x8xf32>
    %77 = vector.extract_strided_slice %2 {offsets = [2, 0, 0], sizes = [1, 8, 8], strides = [1, 1, 1]} : vector<4x8x8xf32> to vector<1x8x8xf32>
    %78 = vector.shape_cast %77 : vector<1x8x8xf32> to vector<8x8xf32>
    %79 = arith.addf %76, %78 : vector<8x8xf32>
    %cst_24 = arith.constant dense<0xFF800000> : vector<8xf32>
    %80 = vector.multi_reduction <maximumf>, %79, %cst_24 [1] : vector<8x8xf32> to vector<8xf32>
    %81 = vector.shape_cast %80 : vector<8xf32> to vector<8x1xf32>
    %82 = vector.broadcast %81 : vector<8x1xf32> to vector<8x8xf32>
    %83 = arith.subf %79, %82 : vector<8x8xf32>
    %84 = math.exp %83 : vector<8x8xf32>
    %cst_25 = arith.constant dense<0.000000e+00> : vector<8xf32>
    %85 = vector.multi_reduction <add>, %84, %cst_25 [1] : vector<8x8xf32> to vector<8xf32>
    %86 = vector.shape_cast %85 : vector<8xf32> to vector<8x1xf32>
    %87 = tpu.reciprocal %86 {approx = true} : vector<8x1xf32> -> vector<8x1xf32>
    %88 = vector.broadcast %87 : vector<8x1xf32> to vector<8x8xf32>
    %89 = arith.mulf %84, %88 : vector<8x8xf32>
    %90 = arith.truncf %89 : vector<8x8xf32> to vector<8x8xbf16>
    %91 = arith.truncf %73 : vector<8x8xf32> to vector<8x8xbf16>
    %cst_26 = arith.constant dense<0.000000e+00> : vector<8x8xf32>
    %92 = tpu.matmul %90, %91, %cst_26 {dimension_numbers = #tpu.dot_dimension_numbers<[1], [0], [0], [1], [0, 0, 1, 1], [], []>} : vector<8x8xbf16>, vector<8x8xbf16>, vector<8x8xf32> -> vector<8x8xf32>
    %93 = vector.extract_strided_slice %24 {offsets = [0, 24], sizes = [8, 8], strides = [1, 1]} : vector<8x32xf32> to vector<8x8xf32>
    %94 = vector.extract_strided_slice %25 {offsets = [0, 24], sizes = [8, 8], strides = [1, 1]} : vector<8x32xf32> to vector<8x8xf32>
    %95 = vector.extract_strided_slice %26 {offsets = [0, 24], sizes = [8, 8], strides = [1, 1]} : vector<8x32xf32> to vector<8x8xf32>
    %96 = arith.truncf %93 : vector<8x8xf32> to vector<8x8xbf16>
    %97 = arith.truncf %94 : vector<8x8xf32> to vector<8x8xbf16>
    %cst_27 = arith.constant dense<0.000000e+00> : vector<8x8xf32>
    %98 = tpu.matmul %96, %97, %cst_27 {dimension_numbers = #tpu.dot_dimension_numbers<[1], [1], [0], [0], [0, 0, 1, 0], [], []>} : vector<8x8xbf16>, vector<8x8xbf16>, vector<8x8xf32> -> vector<8x8xf32>
    %99 = vector.extract_strided_slice %2 {offsets = [3, 0, 0], sizes = [1, 8, 8], strides = [1, 1, 1]} : vector<4x8x8xf32> to vector<1x8x8xf32>
    %100 = vector.shape_cast %99 : vector<1x8x8xf32> to vector<8x8xf32>
    %101 = arith.addf %98, %100 : vector<8x8xf32>
    %cst_28 = arith.constant dense<0xFF800000> : vector<8xf32>
    %102 = vector.multi_reduction <maximumf>, %101, %cst_28 [1] : vector<8x8xf32> to vector<8xf32>
    %103 = vector.shape_cast %102 : vector<8xf32> to vector<8x1xf32>
    %104 = vector.broadcast %103 : vector<8x1xf32> to vector<8x8xf32>
    %105 = arith.subf %101, %104 : vector<8x8xf32>
    %106 = math.exp %105 : vector<8x8xf32>
    %cst_29 = arith.constant dense<0.000000e+00> : vector<8xf32>
    %107 = vector.multi_reduction <add>, %106, %cst_29 [1] : vector<8x8xf32> to vector<8xf32>
    %108 = vector.shape_cast %107 : vector<8xf32> to vector<8x1xf32>
    %109 = tpu.reciprocal %108 {approx = true} : vector<8x1xf32> -> vector<8x1xf32>
    %110 = vector.broadcast %109 : vector<8x1xf32> to vector<8x8xf32>
    %111 = arith.mulf %106, %110 : vector<8x8xf32>
    %112 = arith.truncf %111 : vector<8x8xf32> to vector<8x8xbf16>
    %113 = arith.truncf %95 : vector<8x8xf32> to vector<8x8xbf16>
    %cst_30 = arith.constant dense<0.000000e+00> : vector<8x8xf32>
    %114 = tpu.matmul %112, %113, %cst_30 {dimension_numbers = #tpu.dot_dimension_numbers<[1], [0], [0], [1], [0, 0, 1, 1], [], []>} : vector<8x8xbf16>, vector<8x8xbf16>, vector<8x8xf32> -> vector<8x8xf32>
    %115 = tpu.concatenate %48, %70, %92, %114 in 1 : vector<8x8xf32>, vector<8x8xf32>, vector<8x8xf32>, vector<8x8xf32> -> vector<8x32xf32>
    %116 = vector.extract_strided_slice %21 {offsets = [8, 0], sizes = [8, 32], strides = [1, 1]} : vector<16x32xf32> to vector<8x32xf32>
    %117 = vector.extract_strided_slice %22 {offsets = [8, 0], sizes = [8, 32], strides = [1, 1]} : vector<16x32xf32> to vector<8x32xf32>
    %118 = vector.extract_strided_slice %23 {offsets = [8, 0], sizes = [8, 32], strides = [1, 1]} : vector<16x32xf32> to vector<8x32xf32>
    %119 = vector.extract_strided_slice %116 {offsets = [0, 0], sizes = [8, 8], strides = [1, 1]} : vector<8x32xf32> to vector<8x8xf32>
    %120 = vector.extract_strided_slice %117 {offsets = [0, 0], sizes = [8, 8], strides = [1, 1]} : vector<8x32xf32> to vector<8x8xf32>
    %121 = vector.extract_strided_slice %118 {offsets = [0, 0], sizes = [8, 8], strides = [1, 1]} : vector<8x32xf32> to vector<8x8xf32>
    %122 = arith.truncf %119 : vector<8x8xf32> to vector<8x8xbf16>
    %123 = arith.truncf %120 : vector<8x8xf32> to vector<8x8xbf16>
    %cst_31 = arith.constant dense<0.000000e+00> : vector<8x8xf32>
    %124 = tpu.matmul %122, %123, %cst_31 {dimension_numbers = #tpu.dot_dimension_numbers<[1], [1], [0], [0], [0, 0, 1, 0], [], []>} : vector<8x8xbf16>, vector<8x8xbf16>, vector<8x8xf32> -> vector<8x8xf32>
    %125 = vector.extract_strided_slice %2 {offsets = [0, 0, 0], sizes = [1, 8, 8], strides = [1, 1, 1]} : vector<4x8x8xf32> to vector<1x8x8xf32>
    %126 = vector.shape_cast %125 : vector<1x8x8xf32> to vector<8x8xf32>
    %127 = arith.addf %124, %126 : vector<8x8xf32>
    %cst_32 = arith.constant dense<0xFF800000> : vector<8xf32>
    %128 = vector.multi_reduction <maximumf>, %127, %cst_32 [1] : vector<8x8xf32> to vector<8xf32>
    %129 = vector.shape_cast %128 : vector<8xf32> to vector<8x1xf32>
    %130 = vector.broadcast %129 : vector<8x1xf32> to vector<8x8xf32>
    %131 = arith.subf %127, %130 : vector<8x8xf32>
    %132 = math.exp %131 : vector<8x8xf32>
    %cst_33 = arith.constant dense<0.000000e+00> : vector<8xf32>
    %133 = vector.multi_reduction <add>, %132, %cst_33 [1] : vector<8x8xf32> to vector<8xf32>
    %134 = vector.shape_cast %133 : vector<8xf32> to vector<8x1xf32>
    %135 = tpu.reciprocal %134 {approx = true} : vector<8x1xf32> -> vector<8x1xf32>
    %136 = vector.broadcast %135 : vector<8x1xf32> to vector<8x8xf32>
    %137 = arith.mulf %132, %136 : vector<8x8xf32>
    %138 = arith.truncf %137 : vector<8x8xf32> to vector<8x8xbf16>
    %139 = arith.truncf %121 : vector<8x8xf32> to vector<8x8xbf16>
    %cst_34 = arith.constant dense<0.000000e+00> : vector<8x8xf32>
    %140 = tpu.matmul %138, %139, %cst_34 {dimension_numbers = #tpu.dot_dimension_numbers<[1], [0], [0], [1], [0, 0, 1, 1], [], []>} : vector<8x8xbf16>, vector<8x8xbf16>, vector<8x8xf32> -> vector<8x8xf32>
    %141 = vector.extract_strided_slice %116 {offsets = [0, 8], sizes = [8, 8], strides = [1, 1]} : vector<8x32xf32> to vector<8x8xf32>
    %142 = vector.extract_strided_slice %117 {offsets = [0, 8], sizes = [8, 8], strides = [1, 1]} : vector<8x32xf32> to vector<8x8xf32>
    %143 = vector.extract_strided_slice %118 {offsets = [0, 8], sizes = [8, 8], strides = [1, 1]} : vector<8x32xf32> to vector<8x8xf32>
    %144 = arith.truncf %141 : vector<8x8xf32> to vector<8x8xbf16>
    %145 = arith.truncf %142 : vector<8x8xf32> to vector<8x8xbf16>
    %cst_35 = arith.constant dense<0.000000e+00> : vector<8x8xf32>
    %146 = tpu.matmul %144, %145, %cst_35 {dimension_numbers = #tpu.dot_dimension_numbers<[1], [1], [0], [0], [0, 0, 1, 0], [], []>} : vector<8x8xbf16>, vector<8x8xbf16>, vector<8x8xf32> -> vector<8x8xf32>
    %147 = vector.extract_strided_slice %2 {offsets = [1, 0, 0], sizes = [1, 8, 8], strides = [1, 1, 1]} : vector<4x8x8xf32> to vector<1x8x8xf32>
    %148 = vector.shape_cast %147 : vector<1x8x8xf32> to vector<8x8xf32>
    %149 = arith.addf %146, %148 : vector<8x8xf32>
    %cst_36 = arith.constant dense<0xFF800000> : vector<8xf32>
    %150 = vector.multi_reduction <maximumf>, %149, %cst_36 [1] : vector<8x8xf32> to vector<8xf32>
    %151 = vector.shape_cast %150 : vector<8xf32> to vector<8x1xf32>
    %152 = vector.broadcast %151 : vector<8x1xf32> to vector<8x8xf32>
    %153 = arith.subf %149, %152 : vector<8x8xf32>
    %154 = math.exp %153 : vector<8x8xf32>
    %cst_37 = arith.constant dense<0.000000e+00> : vector<8xf32>
    %155 = vector.multi_reduction <add>, %154, %cst_37 [1] : vector<8x8xf32> to vector<8xf32>
    %156 = vector.shape_cast %155 : vector<8xf32> to vector<8x1xf32>
    %157 = tpu.reciprocal %156 {approx = true} : vector<8x1xf32> -> vector<8x1xf32>
    %158 = vector.broadcast %157 : vector<8x1xf32> to vector<8x8xf32>
    %159 = arith.mulf %154, %158 : vector<8x8xf32>
    %160 = arith.truncf %159 : vector<8x8xf32> to vector<8x8xbf16>
    %161 = arith.truncf %143 : vector<8x8xf32> to vector<8x8xbf16>
    %cst_38 = arith.constant dense<0.000000e+00> : vector<8x8xf32>
    %162 = tpu.matmul %160, %161, %cst_38 {dimension_numbers = #tpu.dot_dimension_numbers<[1], [0], [0], [1], [0, 0, 1, 1], [], []>} : vector<8x8xbf16>, vector<8x8xbf16>, vector<8x8xf32> -> vector<8x8xf32>
    %163 = vector.extract_strided_slice %116 {offsets = [0, 16], sizes = [8, 8], strides = [1, 1]} : vector<8x32xf32> to vector<8x8xf32>
    %164 = vector.extract_strided_slice %117 {offsets = [0, 16], sizes = [8, 8], strides = [1, 1]} : vector<8x32xf32> to vector<8x8xf32>
    %165 = vector.extract_strided_slice %118 {offsets = [0, 16], sizes = [8, 8], strides = [1, 1]} : vector<8x32xf32> to vector<8x8xf32>
    %166 = arith.truncf %163 : vector<8x8xf32> to vector<8x8xbf16>
    %167 = arith.truncf %164 : vector<8x8xf32> to vector<8x8xbf16>
    %cst_39 = arith.constant dense<0.000000e+00> : vector<8x8xf32>
    %168 = tpu.matmul %166, %167, %cst_39 {dimension_numbers = #tpu.dot_dimension_numbers<[1], [1], [0], [0], [0, 0, 1, 0], [], []>} : vector<8x8xbf16>, vector<8x8xbf16>, vector<8x8xf32> -> vector<8x8xf32>
    %169 = vector.extract_strided_slice %2 {offsets = [2, 0, 0], sizes = [1, 8, 8], strides = [1, 1, 1]} : vector<4x8x8xf32> to vector<1x8x8xf32>
    %170 = vector.shape_cast %169 : vector<1x8x8xf32> to vector<8x8xf32>
    %171 = arith.addf %168, %170 : vector<8x8xf32>
    %cst_40 = arith.constant dense<0xFF800000> : vector<8xf32>
    %172 = vector.multi_reduction <maximumf>, %171, %cst_40 [1] : vector<8x8xf32> to vector<8xf32>
    %173 = vector.shape_cast %172 : vector<8xf32> to vector<8x1xf32>
    %174 = vector.broadcast %173 : vector<8x1xf32> to vector<8x8xf32>
    %175 = arith.subf %171, %174 : vector<8x8xf32>
    %176 = math.exp %175 : vector<8x8xf32>
    %cst_41 = arith.constant dense<0.000000e+00> : vector<8xf32>
    %177 = vector.multi_reduction <add>, %176, %cst_41 [1] : vector<8x8xf32> to vector<8xf32>
    %178 = vector.shape_cast %177 : vector<8xf32> to vector<8x1xf32>
    %179 = tpu.reciprocal %178 {approx = true} : vector<8x1xf32> -> vector<8x1xf32>
    %180 = vector.broadcast %179 : vector<8x1xf32> to vector<8x8xf32>
    %181 = arith.mulf %176, %180 : vector<8x8xf32>
    %182 = arith.truncf %181 : vector<8x8xf32> to vector<8x8xbf16>
    %183 = arith.truncf %165 : vector<8x8xf32> to vector<8x8xbf16>
    %cst_42 = arith.constant dense<0.000000e+00> : vector<8x8xf32>
    %184 = tpu.matmul %182, %183, %cst_42 {dimension_numbers = #tpu.dot_dimension_numbers<[1], [0], [0], [1], [0, 0, 1, 1], [], []>} : vector<8x8xbf16>, vector<8x8xbf16>, vector<8x8xf32> -> vector<8x8xf32>
    %185 = vector.extract_strided_slice %116 {offsets = [0, 24], sizes = [8, 8], strides = [1, 1]} : vector<8x32xf32> to vector<8x8xf32>
    %186 = vector.extract_strided_slice %117 {offsets = [0, 24], sizes = [8, 8], strides = [1, 1]} : vector<8x32xf32> to vector<8x8xf32>
    %187 = vector.extract_strided_slice %118 {offsets = [0, 24], sizes = [8, 8], strides = [1, 1]} : vector<8x32xf32> to vector<8x8xf32>
    %188 = arith.truncf %185 : vector<8x8xf32> to vector<8x8xbf16>
    %189 = arith.truncf %186 : vector<8x8xf32> to vector<8x8xbf16>
    %cst_43 = arith.constant dense<0.000000e+00> : vector<8x8xf32>
    %190 = tpu.matmul %188, %189, %cst_43 {dimension_numbers = #tpu.dot_dimension_numbers<[1], [1], [0], [0], [0, 0, 1, 0], [], []>} : vector<8x8xbf16>, vector<8x8xbf16>, vector<8x8xf32> -> vector<8x8xf32>
    %191 = vector.extract_strided_slice %2 {offsets = [3, 0, 0], sizes = [1, 8, 8], strides = [1, 1, 1]} : vector<4x8x8xf32> to vector<1x8x8xf32>
    %192 = vector.shape_cast %191 : vector<1x8x8xf32> to vector<8x8xf32>
    %193 = arith.addf %190, %192 : vector<8x8xf32>
    %cst_44 = arith.constant dense<0xFF800000> : vector<8xf32>
    %194 = vector.multi_reduction <maximumf>, %193, %cst_44 [1] : vector<8x8xf32> to vector<8xf32>
    %195 = vector.shape_cast %194 : vector<8xf32> to vector<8x1xf32>
    %196 = vector.broadcast %195 : vector<8x1xf32> to vector<8x8xf32>
    %197 = arith.subf %193, %196 : vector<8x8xf32>
    %198 = math.exp %197 : vector<8x8xf32>
    %cst_45 = arith.constant dense<0.000000e+00> : vector<8xf32>
    %199 = vector.multi_reduction <add>, %198, %cst_45 [1] : vector<8x8xf32> to vector<8xf32>
    %200 = vector.shape_cast %199 : vector<8xf32> to vector<8x1xf32>
    %201 = tpu.reciprocal %200 {approx = true} : vector<8x1xf32> -> vector<8x1xf32>
    %202 = vector.broadcast %201 : vector<8x1xf32> to vector<8x8xf32>
    %203 = arith.mulf %198, %202 : vector<8x8xf32>
    %204 = arith.truncf %203 : vector<8x8xf32> to vector<8x8xbf16>
    %205 = arith.truncf %187 : vector<8x8xf32> to vector<8x8xbf16>
    %cst_46 = arith.constant dense<0.000000e+00> : vector<8x8xf32>
    %206 = tpu.matmul %204, %205, %cst_46 {dimension_numbers = #tpu.dot_dimension_numbers<[1], [0], [0], [1], [0, 0, 1, 1], [], []>} : vector<8x8xbf16>, vector<8x8xbf16>, vector<8x8xf32> -> vector<8x8xf32>
    %207 = tpu.concatenate %140, %162, %184, %206 in 1 : vector<8x8xf32>, vector<8x8xf32>, vector<8x8xf32>, vector<8x8xf32> -> vector<8x32xf32>
    %208 = tpu.concatenate %115, %207 in 0 : vector<8x32xf32>, vector<8x32xf32> -> vector<16x32xf32>
    %c0_47 = arith.constant 0 : index
    %c0_48 = arith.constant 0 : index
    %c0_49 = arith.constant 0 : index
    %209 = vector.load %arg6[%c0_47, %c0_48, %c0_49] : memref<2x32x32xbf16, #tpu.memory_space<vmem>>, vector<1x32x32xbf16>
    %210 = vector.shape_cast %209 : vector<1x32x32xbf16> to vector<32x32xbf16>
    %211 = arith.truncf %208 : vector<16x32xf32> to vector<16x32xbf16>
    %cst_50 = arith.constant dense<0.000000e+00> : vector<16x32xf32>
    %212 = tpu.matmul %211, %210, %cst_50 {dimension_numbers = #tpu.dot_dimension_numbers<[1], [1], [0], [0], [0, 0, 1, 0], [], []>} : vector<16x32xbf16>, vector<32x32xbf16>, vector<16x32xf32> -> vector<16x32xf32>
    %213 = arith.addf %0, %212 : vector<16x32xf32>
    %c0_51 = arith.constant 0 : index
    %c0_52 = arith.constant 0 : index
    %c0_53 = arith.constant 0 : index
    %214 = vector.load %arg7[%c0_51, %c0_52, %c0_53] : memref<2x1x32xf32, #tpu.memory_space<vmem>>, vector<1x1x32xf32>
    %215 = vector.shape_cast %214 : vector<1x1x32xf32> to vector<1x32xf32>
    %216 = arith.mulf %213, %213 : vector<16x32xf32>
    %cst_54 = arith.constant dense<0.000000e+00> : vector<16xf32>
    %217 = vector.multi_reduction <add>, %216, %cst_54 [1] : vector<16x32xf32> to vector<16xf32>
    %218 = vector.shape_cast %217 : vector<16xf32> to vector<16x1xf32>
    %cst_55 = arith.constant 3.200000e+01 : f32
    %219 = vector.broadcast %cst_55 : f32 to vector<16x1xf32>
    %220 = arith.divf %218, %219 : vector<16x1xf32>
    %221 = vector.broadcast %215 : vector<1x32xf32> to vector<16x32xf32>
    %222 = arith.mulf %221, %213 : vector<16x32xf32>
    %cst_56 = arith.constant 9.99999997E-7 : f32
    %223 = vector.broadcast %cst_56 : f32 to vector<16x1xf32>
    %224 = arith.addf %220, %223 : vector<16x1xf32>
    %225 = math.rsqrt %224 : vector<16x1xf32>
    %226 = vector.broadcast %225 : vector<16x1xf32> to vector<16x32xf32>
    %227 = arith.mulf %222, %226 : vector<16x32xf32>
    %c0_57 = arith.constant 0 : index
    %c0_58 = arith.constant 0 : index
    %c0_59 = arith.constant 0 : index
    %228 = vector.load %arg8[%c0_57, %c0_58, %c0_59] : memref<2x32x32xbf16, #tpu.memory_space<vmem>>, vector<1x32x32xbf16>
    %229 = vector.shape_cast %228 : vector<1x32x32xbf16> to vector<32x32xbf16>
    %230 = arith.truncf %227 : vector<16x32xf32> to vector<16x32xbf16>
    %cst_60 = arith.constant dense<0.000000e+00> : vector<16x32xf32>
    %231 = tpu.matmul %230, %229, %cst_60 {dimension_numbers = #tpu.dot_dimension_numbers<[1], [1], [0], [0], [0, 0, 1, 0], [], []>} : vector<16x32xbf16>, vector<32x32xbf16>, vector<16x32xf32> -> vector<16x32xf32>
    %c0_61 = arith.constant 0 : index
    %c0_62 = arith.constant 0 : index
    %c0_63 = arith.constant 0 : index
    %232 = vector.load %arg9[%c0_61, %c0_62, %c0_63] : memref<2x64x32xbf16, #tpu.memory_space<vmem>>, vector<1x64x32xbf16>
    %233 = vector.shape_cast %232 : vector<1x64x32xbf16> to vector<64x32xbf16>
    %234 = arith.truncf %1 : vector<16x32xf32> to vector<16x32xbf16>
    %cst_64 = arith.constant dense<0.000000e+00> : vector<16x64xf32>
    %235 = tpu.matmul %234, %233, %cst_64 {dimension_numbers = #tpu.dot_dimension_numbers<[1], [1], [0], [0], [0, 0, 1, 0], [], []>} : vector<16x32xbf16>, vector<64x32xbf16>, vector<16x64xf32> -> vector<16x64xf32>
    %236 = vector.extract_strided_slice %235 {offsets = [0, 0], sizes = [16, 32], strides = [1, 1]} : vector<16x64xf32> to vector<16x32xf32>
    %237 = vector.extract_strided_slice %235 {offsets = [0, 32], sizes = [16, 32], strides = [1, 1]} : vector<16x64xf32> to vector<16x32xf32>
    %238 = vector.extract_strided_slice %231 {offsets = [0, 0], sizes = [8, 32], strides = [1, 1]} : vector<16x32xf32> to vector<8x32xf32>
    %239 = vector.extract_strided_slice %236 {offsets = [0, 0], sizes = [8, 32], strides = [1, 1]} : vector<16x32xf32> to vector<8x32xf32>
    %240 = vector.extract_strided_slice %237 {offsets = [0, 0], sizes = [8, 32], strides = [1, 1]} : vector<16x32xf32> to vector<8x32xf32>
    %241 = vector.extract_strided_slice %238 {offsets = [0, 0], sizes = [8, 8], strides = [1, 1]} : vector<8x32xf32> to vector<8x8xf32>
    %242 = vector.extract_strided_slice %239 {offsets = [0, 0], sizes = [8, 8], strides = [1, 1]} : vector<8x32xf32> to vector<8x8xf32>
    %243 = vector.extract_strided_slice %240 {offsets = [0, 0], sizes = [8, 8], strides = [1, 1]} : vector<8x32xf32> to vector<8x8xf32>
    %244 = arith.truncf %241 : vector<8x8xf32> to vector<8x8xbf16>
    %245 = arith.truncf %242 : vector<8x8xf32> to vector<8x8xbf16>
    %cst_65 = arith.constant dense<0.000000e+00> : vector<8x8xf32>
    %246 = tpu.matmul %244, %245, %cst_65 {dimension_numbers = #tpu.dot_dimension_numbers<[1], [1], [0], [0], [0, 0, 1, 0], [], []>} : vector<8x8xbf16>, vector<8x8xbf16>, vector<8x8xf32> -> vector<8x8xf32>
    %cst_66 = arith.constant dense<0xFF800000> : vector<8xf32>
    %247 = vector.multi_reduction <maximumf>, %246, %cst_66 [1] : vector<8x8xf32> to vector<8xf32>
    %248 = vector.shape_cast %247 : vector<8xf32> to vector<8x1xf32>
    %249 = vector.broadcast %248 : vector<8x1xf32> to vector<8x8xf32>
    %250 = arith.subf %246, %249 : vector<8x8xf32>
    %251 = math.exp %250 : vector<8x8xf32>
    %cst_67 = arith.constant dense<0.000000e+00> : vector<8xf32>
    %252 = vector.multi_reduction <add>, %251, %cst_67 [1] : vector<8x8xf32> to vector<8xf32>
    %253 = vector.shape_cast %252 : vector<8xf32> to vector<8x1xf32>
    %254 = tpu.reciprocal %253 {approx = true} : vector<8x1xf32> -> vector<8x1xf32>
    %255 = vector.broadcast %254 : vector<8x1xf32> to vector<8x8xf32>
    %256 = arith.mulf %251, %255 : vector<8x8xf32>
    %257 = arith.truncf %256 : vector<8x8xf32> to vector<8x8xbf16>
    %258 = arith.truncf %243 : vector<8x8xf32> to vector<8x8xbf16>
    %cst_68 = arith.constant dense<0.000000e+00> : vector<8x8xf32>
    %259 = tpu.matmul %257, %258, %cst_68 {dimension_numbers = #tpu.dot_dimension_numbers<[1], [0], [0], [1], [0, 0, 1, 1], [], []>} : vector<8x8xbf16>, vector<8x8xbf16>, vector<8x8xf32> -> vector<8x8xf32>
    %260 = vector.extract_strided_slice %238 {offsets = [0, 8], sizes = [8, 8], strides = [1, 1]} : vector<8x32xf32> to vector<8x8xf32>
    %261 = vector.extract_strided_slice %239 {offsets = [0, 8], sizes = [8, 8], strides = [1, 1]} : vector<8x32xf32> to vector<8x8xf32>
    %262 = vector.extract_strided_slice %240 {offsets = [0, 8], sizes = [8, 8], strides = [1, 1]} : vector<8x32xf32> to vector<8x8xf32>
    %263 = arith.truncf %260 : vector<8x8xf32> to vector<8x8xbf16>
    %264 = arith.truncf %261 : vector<8x8xf32> to vector<8x8xbf16>
    %cst_69 = arith.constant dense<0.000000e+00> : vector<8x8xf32>
    %265 = tpu.matmul %263, %264, %cst_69 {dimension_numbers = #tpu.dot_dimension_numbers<[1], [1], [0], [0], [0, 0, 1, 0], [], []>} : vector<8x8xbf16>, vector<8x8xbf16>, vector<8x8xf32> -> vector<8x8xf32>
    %cst_70 = arith.constant dense<0xFF800000> : vector<8xf32>
    %266 = vector.multi_reduction <maximumf>, %265, %cst_70 [1] : vector<8x8xf32> to vector<8xf32>
    %267 = vector.shape_cast %266 : vector<8xf32> to vector<8x1xf32>
    %268 = vector.broadcast %267 : vector<8x1xf32> to vector<8x8xf32>
    %269 = arith.subf %265, %268 : vector<8x8xf32>
    %270 = math.exp %269 : vector<8x8xf32>
    %cst_71 = arith.constant dense<0.000000e+00> : vector<8xf32>
    %271 = vector.multi_reduction <add>, %270, %cst_71 [1] : vector<8x8xf32> to vector<8xf32>
    %272 = vector.shape_cast %271 : vector<8xf32> to vector<8x1xf32>
    %273 = tpu.reciprocal %272 {approx = true} : vector<8x1xf32> -> vector<8x1xf32>
    %274 = vector.broadcast %273 : vector<8x1xf32> to vector<8x8xf32>
    %275 = arith.mulf %270, %274 : vector<8x8xf32>
    %276 = arith.truncf %275 : vector<8x8xf32> to vector<8x8xbf16>
    %277 = arith.truncf %262 : vector<8x8xf32> to vector<8x8xbf16>
    %cst_72 = arith.constant dense<0.000000e+00> : vector<8x8xf32>
    %278 = tpu.matmul %276, %277, %cst_72 {dimension_numbers = #tpu.dot_dimension_numbers<[1], [0], [0], [1], [0, 0, 1, 1], [], []>} : vector<8x8xbf16>, vector<8x8xbf16>, vector<8x8xf32> -> vector<8x8xf32>
    %279 = vector.extract_strided_slice %238 {offsets = [0, 16], sizes = [8, 8], strides = [1, 1]} : vector<8x32xf32> to vector<8x8xf32>
    %280 = vector.extract_strided_slice %239 {offsets = [0, 16], sizes = [8, 8], strides = [1, 1]} : vector<8x32xf32> to vector<8x8xf32>
    %281 = vector.extract_strided_slice %240 {offsets = [0, 16], sizes = [8, 8], strides = [1, 1]} : vector<8x32xf32> to vector<8x8xf32>
    %282 = arith.truncf %279 : vector<8x8xf32> to vector<8x8xbf16>
    %283 = arith.truncf %280 : vector<8x8xf32> to vector<8x8xbf16>
    %cst_73 = arith.constant dense<0.000000e+00> : vector<8x8xf32>
    %284 = tpu.matmul %282, %283, %cst_73 {dimension_numbers = #tpu.dot_dimension_numbers<[1], [1], [0], [0], [0, 0, 1, 0], [], []>} : vector<8x8xbf16>, vector<8x8xbf16>, vector<8x8xf32> -> vector<8x8xf32>
    %cst_74 = arith.constant dense<0xFF800000> : vector<8xf32>
    %285 = vector.multi_reduction <maximumf>, %284, %cst_74 [1] : vector<8x8xf32> to vector<8xf32>
    %286 = vector.shape_cast %285 : vector<8xf32> to vector<8x1xf32>
    %287 = vector.broadcast %286 : vector<8x1xf32> to vector<8x8xf32>
    %288 = arith.subf %284, %287 : vector<8x8xf32>
    %289 = math.exp %288 : vector<8x8xf32>
    %cst_75 = arith.constant dense<0.000000e+00> : vector<8xf32>
    %290 = vector.multi_reduction <add>, %289, %cst_75 [1] : vector<8x8xf32> to vector<8xf32>
    %291 = vector.shape_cast %290 : vector<8xf32> to vector<8x1xf32>
    %292 = tpu.reciprocal %291 {approx = true} : vector<8x1xf32> -> vector<8x1xf32>
    %293 = vector.broadcast %292 : vector<8x1xf32> to vector<8x8xf32>
    %294 = arith.mulf %289, %293 : vector<8x8xf32>
    %295 = arith.truncf %294 : vector<8x8xf32> to vector<8x8xbf16>
    %296 = arith.truncf %281 : vector<8x8xf32> to vector<8x8xbf16>
    %cst_76 = arith.constant dense<0.000000e+00> : vector<8x8xf32>
    %297 = tpu.matmul %295, %296, %cst_76 {dimension_numbers = #tpu.dot_dimension_numbers<[1], [0], [0], [1], [0, 0, 1, 1], [], []>} : vector<8x8xbf16>, vector<8x8xbf16>, vector<8x8xf32> -> vector<8x8xf32>
    %298 = vector.extract_strided_slice %238 {offsets = [0, 24], sizes = [8, 8], strides = [1, 1]} : vector<8x32xf32> to vector<8x8xf32>
    %299 = vector.extract_strided_slice %239 {offsets = [0, 24], sizes = [8, 8], strides = [1, 1]} : vector<8x32xf32> to vector<8x8xf32>
    %300 = vector.extract_strided_slice %240 {offsets = [0, 24], sizes = [8, 8], strides = [1, 1]} : vector<8x32xf32> to vector<8x8xf32>
    %301 = arith.truncf %298 : vector<8x8xf32> to vector<8x8xbf16>
    %302 = arith.truncf %299 : vector<8x8xf32> to vector<8x8xbf16>
    %cst_77 = arith.constant dense<0.000000e+00> : vector<8x8xf32>
    %303 = tpu.matmul %301, %302, %cst_77 {dimension_numbers = #tpu.dot_dimension_numbers<[1], [1], [0], [0], [0, 0, 1, 0], [], []>} : vector<8x8xbf16>, vector<8x8xbf16>, vector<8x8xf32> -> vector<8x8xf32>
    %cst_78 = arith.constant dense<0xFF800000> : vector<8xf32>
    %304 = vector.multi_reduction <maximumf>, %303, %cst_78 [1] : vector<8x8xf32> to vector<8xf32>
    %305 = vector.shape_cast %304 : vector<8xf32> to vector<8x1xf32>
    %306 = vector.broadcast %305 : vector<8x1xf32> to vector<8x8xf32>
    %307 = arith.subf %303, %306 : vector<8x8xf32>
    %308 = math.exp %307 : vector<8x8xf32>
    %cst_79 = arith.constant dense<0.000000e+00> : vector<8xf32>
    %309 = vector.multi_reduction <add>, %308, %cst_79 [1] : vector<8x8xf32> to vector<8xf32>
    %310 = vector.shape_cast %309 : vector<8xf32> to vector<8x1xf32>
    %311 = tpu.reciprocal %310 {approx = true} : vector<8x1xf32> -> vector<8x1xf32>
    %312 = vector.broadcast %311 : vector<8x1xf32> to vector<8x8xf32>
    %313 = arith.mulf %308, %312 : vector<8x8xf32>
    %314 = arith.truncf %313 : vector<8x8xf32> to vector<8x8xbf16>
    %315 = arith.truncf %300 : vector<8x8xf32> to vector<8x8xbf16>
    %cst_80 = arith.constant dense<0.000000e+00> : vector<8x8xf32>
    %316 = tpu.matmul %314, %315, %cst_80 {dimension_numbers = #tpu.dot_dimension_numbers<[1], [0], [0], [1], [0, 0, 1, 1], [], []>} : vector<8x8xbf16>, vector<8x8xbf16>, vector<8x8xf32> -> vector<8x8xf32>
    %317 = tpu.concatenate %259, %278, %297, %316 in 1 : vector<8x8xf32>, vector<8x8xf32>, vector<8x8xf32>, vector<8x8xf32> -> vector<8x32xf32>
    %318 = vector.extract_strided_slice %231 {offsets = [8, 0], sizes = [8, 32], strides = [1, 1]} : vector<16x32xf32> to vector<8x32xf32>
    %319 = vector.extract_strided_slice %236 {offsets = [8, 0], sizes = [8, 32], strides = [1, 1]} : vector<16x32xf32> to vector<8x32xf32>
    %320 = vector.extract_strided_slice %237 {offsets = [8, 0], sizes = [8, 32], strides = [1, 1]} : vector<16x32xf32> to vector<8x32xf32>
    %321 = vector.extract_strided_slice %318 {offsets = [0, 0], sizes = [8, 8], strides = [1, 1]} : vector<8x32xf32> to vector<8x8xf32>
    %322 = vector.extract_strided_slice %319 {offsets = [0, 0], sizes = [8, 8], strides = [1, 1]} : vector<8x32xf32> to vector<8x8xf32>
    %323 = vector.extract_strided_slice %320 {offsets = [0, 0], sizes = [8, 8], strides = [1, 1]} : vector<8x32xf32> to vector<8x8xf32>
    %324 = arith.truncf %321 : vector<8x8xf32> to vector<8x8xbf16>
    %325 = arith.truncf %322 : vector<8x8xf32> to vector<8x8xbf16>
    %cst_81 = arith.constant dense<0.000000e+00> : vector<8x8xf32>
    %326 = tpu.matmul %324, %325, %cst_81 {dimension_numbers = #tpu.dot_dimension_numbers<[1], [1], [0], [0], [0, 0, 1, 0], [], []>} : vector<8x8xbf16>, vector<8x8xbf16>, vector<8x8xf32> -> vector<8x8xf32>
    %cst_82 = arith.constant dense<0xFF800000> : vector<8xf32>
    %327 = vector.multi_reduction <maximumf>, %326, %cst_82 [1] : vector<8x8xf32> to vector<8xf32>
    %328 = vector.shape_cast %327 : vector<8xf32> to vector<8x1xf32>
    %329 = vector.broadcast %328 : vector<8x1xf32> to vector<8x8xf32>
    %330 = arith.subf %326, %329 : vector<8x8xf32>
    %331 = math.exp %330 : vector<8x8xf32>
    %cst_83 = arith.constant dense<0.000000e+00> : vector<8xf32>
    %332 = vector.multi_reduction <add>, %331, %cst_83 [1] : vector<8x8xf32> to vector<8xf32>
    %333 = vector.shape_cast %332 : vector<8xf32> to vector<8x1xf32>
    %334 = tpu.reciprocal %333 {approx = true} : vector<8x1xf32> -> vector<8x1xf32>
    %335 = vector.broadcast %334 : vector<8x1xf32> to vector<8x8xf32>
    %336 = arith.mulf %331, %335 : vector<8x8xf32>
    %337 = arith.truncf %336 : vector<8x8xf32> to vector<8x8xbf16>
    %338 = arith.truncf %323 : vector<8x8xf32> to vector<8x8xbf16>
    %cst_84 = arith.constant dense<0.000000e+00> : vector<8x8xf32>
    %339 = tpu.matmul %337, %338, %cst_84 {dimension_numbers = #tpu.dot_dimension_numbers<[1], [0], [0], [1], [0, 0, 1, 1], [], []>} : vector<8x8xbf16>, vector<8x8xbf16>, vector<8x8xf32> -> vector<8x8xf32>
    %340 = vector.extract_strided_slice %318 {offsets = [0, 8], sizes = [8, 8], strides = [1, 1]} : vector<8x32xf32> to vector<8x8xf32>
    %341 = vector.extract_strided_slice %319 {offsets = [0, 8], sizes = [8, 8], strides = [1, 1]} : vector<8x32xf32> to vector<8x8xf32>
    %342 = vector.extract_strided_slice %320 {offsets = [0, 8], sizes = [8, 8], strides = [1, 1]} : vector<8x32xf32> to vector<8x8xf32>
    %343 = arith.truncf %340 : vector<8x8xf32> to vector<8x8xbf16>
    %344 = arith.truncf %341 : vector<8x8xf32> to vector<8x8xbf16>
    %cst_85 = arith.constant dense<0.000000e+00> : vector<8x8xf32>
    %345 = tpu.matmul %343, %344, %cst_85 {dimension_numbers = #tpu.dot_dimension_numbers<[1], [1], [0], [0], [0, 0, 1, 0], [], []>} : vector<8x8xbf16>, vector<8x8xbf16>, vector<8x8xf32> -> vector<8x8xf32>
    %cst_86 = arith.constant dense<0xFF800000> : vector<8xf32>
    %346 = vector.multi_reduction <maximumf>, %345, %cst_86 [1] : vector<8x8xf32> to vector<8xf32>
    %347 = vector.shape_cast %346 : vector<8xf32> to vector<8x1xf32>
    %348 = vector.broadcast %347 : vector<8x1xf32> to vector<8x8xf32>
    %349 = arith.subf %345, %348 : vector<8x8xf32>
    %350 = math.exp %349 : vector<8x8xf32>
    %cst_87 = arith.constant dense<0.000000e+00> : vector<8xf32>
    %351 = vector.multi_reduction <add>, %350, %cst_87 [1] : vector<8x8xf32> to vector<8xf32>
    %352 = vector.shape_cast %351 : vector<8xf32> to vector<8x1xf32>
    %353 = tpu.reciprocal %352 {approx = true} : vector<8x1xf32> -> vector<8x1xf32>
    %354 = vector.broadcast %353 : vector<8x1xf32> to vector<8x8xf32>
    %355 = arith.mulf %350, %354 : vector<8x8xf32>
    %356 = arith.truncf %355 : vector<8x8xf32> to vector<8x8xbf16>
    %357 = arith.truncf %342 : vector<8x8xf32> to vector<8x8xbf16>
    %cst_88 = arith.constant dense<0.000000e+00> : vector<8x8xf32>
    %358 = tpu.matmul %356, %357, %cst_88 {dimension_numbers = #tpu.dot_dimension_numbers<[1], [0], [0], [1], [0, 0, 1, 1], [], []>} : vector<8x8xbf16>, vector<8x8xbf16>, vector<8x8xf32> -> vector<8x8xf32>
    %359 = vector.extract_strided_slice %318 {offsets = [0, 16], sizes = [8, 8], strides = [1, 1]} : vector<8x32xf32> to vector<8x8xf32>
    %360 = vector.extract_strided_slice %319 {offsets = [0, 16], sizes = [8, 8], strides = [1, 1]} : vector<8x32xf32> to vector<8x8xf32>
    %361 = vector.extract_strided_slice %320 {offsets = [0, 16], sizes = [8, 8], strides = [1, 1]} : vector<8x32xf32> to vector<8x8xf32>
    %362 = arith.truncf %359 : vector<8x8xf32> to vector<8x8xbf16>
    %363 = arith.truncf %360 : vector<8x8xf32> to vector<8x8xbf16>
    %cst_89 = arith.constant dense<0.000000e+00> : vector<8x8xf32>
    %364 = tpu.matmul %362, %363, %cst_89 {dimension_numbers = #tpu.dot_dimension_numbers<[1], [1], [0], [0], [0, 0, 1, 0], [], []>} : vector<8x8xbf16>, vector<8x8xbf16>, vector<8x8xf32> -> vector<8x8xf32>
    %cst_90 = arith.constant dense<0xFF800000> : vector<8xf32>
    %365 = vector.multi_reduction <maximumf>, %364, %cst_90 [1] : vector<8x8xf32> to vector<8xf32>
    %366 = vector.shape_cast %365 : vector<8xf32> to vector<8x1xf32>
    %367 = vector.broadcast %366 : vector<8x1xf32> to vector<8x8xf32>
    %368 = arith.subf %364, %367 : vector<8x8xf32>
    %369 = math.exp %368 : vector<8x8xf32>
    %cst_91 = arith.constant dense<0.000000e+00> : vector<8xf32>
    %370 = vector.multi_reduction <add>, %369, %cst_91 [1] : vector<8x8xf32> to vector<8xf32>
    %371 = vector.shape_cast %370 : vector<8xf32> to vector<8x1xf32>
    %372 = tpu.reciprocal %371 {approx = true} : vector<8x1xf32> -> vector<8x1xf32>
    %373 = vector.broadcast %372 : vector<8x1xf32> to vector<8x8xf32>
    %374 = arith.mulf %369, %373 : vector<8x8xf32>
    %375 = arith.truncf %374 : vector<8x8xf32> to vector<8x8xbf16>
    %376 = arith.truncf %361 : vector<8x8xf32> to vector<8x8xbf16>
    %cst_92 = arith.constant dense<0.000000e+00> : vector<8x8xf32>
    %377 = tpu.matmul %375, %376, %cst_92 {dimension_numbers = #tpu.dot_dimension_numbers<[1], [0], [0], [1], [0, 0, 1, 1], [], []>} : vector<8x8xbf16>, vector<8x8xbf16>, vector<8x8xf32> -> vector<8x8xf32>
    %378 = vector.extract_strided_slice %318 {offsets = [0, 24], sizes = [8, 8], strides = [1, 1]} : vector<8x32xf32> to vector<8x8xf32>
    %379 = vector.extract_strided_slice %319 {offsets = [0, 24], sizes = [8, 8], strides = [1, 1]} : vector<8x32xf32> to vector<8x8xf32>
    %380 = vector.extract_strided_slice %320 {offsets = [0, 24], sizes = [8, 8], strides = [1, 1]} : vector<8x32xf32> to vector<8x8xf32>
    %381 = arith.truncf %378 : vector<8x8xf32> to vector<8x8xbf16>
    %382 = arith.truncf %379 : vector<8x8xf32> to vector<8x8xbf16>
    %cst_93 = arith.constant dense<0.000000e+00> : vector<8x8xf32>
    %383 = tpu.matmul %381, %382, %cst_93 {dimension_numbers = #tpu.dot_dimension_numbers<[1], [1], [0], [0], [0, 0, 1, 0], [], []>} : vector<8x8xbf16>, vector<8x8xbf16>, vector<8x8xf32> -> vector<8x8xf32>
    %cst_94 = arith.constant dense<0xFF800000> : vector<8xf32>
    %384 = vector.multi_reduction <maximumf>, %383, %cst_94 [1] : vector<8x8xf32> to vector<8xf32>
    %385 = vector.shape_cast %384 : vector<8xf32> to vector<8x1xf32>
    %386 = vector.broadcast %385 : vector<8x1xf32> to vector<8x8xf32>
    %387 = arith.subf %383, %386 : vector<8x8xf32>
    %388 = math.exp %387 : vector<8x8xf32>
    %cst_95 = arith.constant dense<0.000000e+00> : vector<8xf32>
    %389 = vector.multi_reduction <add>, %388, %cst_95 [1] : vector<8x8xf32> to vector<8xf32>
    %390 = vector.shape_cast %389 : vector<8xf32> to vector<8x1xf32>
    %391 = tpu.reciprocal %390 {approx = true} : vector<8x1xf32> -> vector<8x1xf32>
    %392 = vector.broadcast %391 : vector<8x1xf32> to vector<8x8xf32>
    %393 = arith.mulf %388, %392 : vector<8x8xf32>
    %394 = arith.truncf %393 : vector<8x8xf32> to vector<8x8xbf16>
    %395 = arith.truncf %380 : vector<8x8xf32> to vector<8x8xbf16>
    %cst_96 = arith.constant dense<0.000000e+00> : vector<8x8xf32>
    %396 = tpu.matmul %394, %395, %cst_96 {dimension_numbers = #tpu.dot_dimension_numbers<[1], [0], [0], [1], [0, 0, 1, 1], [], []>} : vector<8x8xbf16>, vector<8x8xbf16>, vector<8x8xf32> -> vector<8x8xf32>
    %397 = tpu.concatenate %339, %358, %377, %396 in 1 : vector<8x8xf32>, vector<8x8xf32>, vector<8x8xf32>, vector<8x8xf32> -> vector<8x32xf32>
    %398 = tpu.concatenate %317, %397 in 0 : vector<8x32xf32>, vector<8x32xf32> -> vector<16x32xf32>
    %c0_97 = arith.constant 0 : index
    %c0_98 = arith.constant 0 : index
    %c0_99 = arith.constant 0 : index
    %399 = vector.load %arg10[%c0_97, %c0_98, %c0_99] : memref<2x32x32xbf16, #tpu.memory_space<vmem>>, vector<1x32x32xbf16>
    %400 = vector.shape_cast %399 : vector<1x32x32xbf16> to vector<32x32xbf16>
    %401 = arith.truncf %398 : vector<16x32xf32> to vector<16x32xbf16>
    %cst_100 = arith.constant dense<0.000000e+00> : vector<16x32xf32>
    %402 = tpu.matmul %401, %400, %cst_100 {dimension_numbers = #tpu.dot_dimension_numbers<[1], [1], [0], [0], [0, 0, 1, 0], [], []>} : vector<16x32xbf16>, vector<32x32xbf16>, vector<16x32xf32> -> vector<16x32xf32>
    %403 = arith.addf %213, %402 : vector<16x32xf32>
    %c0_101 = arith.constant 0 : index
    %c0_102 = arith.constant 0 : index
    %c0_103 = arith.constant 0 : index
    %404 = vector.load %arg11[%c0_101, %c0_102, %c0_103] : memref<2x1x32xf32, #tpu.memory_space<vmem>>, vector<1x1x32xf32>
    %405 = vector.shape_cast %404 : vector<1x1x32xf32> to vector<1x32xf32>
    %406 = arith.mulf %403, %403 : vector<16x32xf32>
    %cst_104 = arith.constant dense<0.000000e+00> : vector<16xf32>
    %407 = vector.multi_reduction <add>, %406, %cst_104 [1] : vector<16x32xf32> to vector<16xf32>
    %408 = vector.shape_cast %407 : vector<16xf32> to vector<16x1xf32>
    %cst_105 = arith.constant 3.200000e+01 : f32
    %409 = vector.broadcast %cst_105 : f32 to vector<16x1xf32>
    %410 = arith.divf %408, %409 : vector<16x1xf32>
    %411 = vector.broadcast %405 : vector<1x32xf32> to vector<16x32xf32>
    %412 = arith.mulf %411, %403 : vector<16x32xf32>
    %cst_106 = arith.constant 9.99999997E-7 : f32
    %413 = vector.broadcast %cst_106 : f32 to vector<16x1xf32>
    %414 = arith.addf %410, %413 : vector<16x1xf32>
    %415 = math.rsqrt %414 : vector<16x1xf32>
    %416 = vector.broadcast %415 : vector<16x1xf32> to vector<16x32xf32>
    %417 = arith.mulf %412, %416 : vector<16x32xf32>
    %c0_107 = arith.constant 0 : index
    %c0_108 = arith.constant 0 : index
    %c0_109 = arith.constant 0 : index
    %418 = vector.load %arg12[%c0_107, %c0_108, %c0_109] : memref<2x64x32xbf16, #tpu.memory_space<vmem>>, vector<1x64x32xbf16>
    %419 = vector.shape_cast %418 : vector<1x64x32xbf16> to vector<64x32xbf16>
    %420 = arith.truncf %417 : vector<16x32xf32> to vector<16x32xbf16>
    %cst_110 = arith.constant dense<0.000000e+00> : vector<16x64xf32>
    %421 = tpu.matmul %420, %419, %cst_110 {dimension_numbers = #tpu.dot_dimension_numbers<[1], [1], [0], [0], [0, 0, 1, 0], [], []>} : vector<16x32xbf16>, vector<64x32xbf16>, vector<16x64xf32> -> vector<16x64xf32>
    %cst_111 = arith.constant 0.000000e+00 : f32
    %422 = vector.broadcast %cst_111 : f32 to vector<16x64xf32>
    %423 = arith.maximumf %421, %422 : vector<16x64xf32>
    %c0_112 = arith.constant 0 : index
    %c0_113 = arith.constant 0 : index
    %c0_114 = arith.constant 0 : index
    %424 = vector.load %arg13[%c0_112, %c0_113, %c0_114] : memref<2x32x64xbf16, #tpu.memory_space<vmem>>, vector<1x32x64xbf16>
    %425 = vector.shape_cast %424 : vector<1x32x64xbf16> to vector<32x64xbf16>
    %426 = arith.truncf %423 : vector<16x64xf32> to vector<16x64xbf16>
    %cst_115 = arith.constant dense<0.000000e+00> : vector<16x32xf32>
    %427 = tpu.matmul %426, %425, %cst_115 {dimension_numbers = #tpu.dot_dimension_numbers<[1], [1], [0], [0], [0, 0, 1, 0], [], []>} : vector<16x64xbf16>, vector<32x64xbf16>, vector<16x32xf32> -> vector<16x32xf32>
    %428 = arith.addf %403, %427 : vector<16x32xf32>
    %c1 = arith.constant 1 : index
    %c0_116 = arith.constant 0 : index
    %c0_117 = arith.constant 0 : index
    %429 = vector.load %arg4[%c1, %c0_116, %c0_117] : memref<2x1x32xf32, #tpu.memory_space<vmem>>, vector<1x1x32xf32>
    %430 = vector.shape_cast %429 : vector<1x1x32xf32> to vector<1x32xf32>
    %431 = arith.mulf %428, %428 : vector<16x32xf32>
    %cst_118 = arith.constant dense<0.000000e+00> : vector<16xf32>
    %432 = vector.multi_reduction <add>, %431, %cst_118 [1] : vector<16x32xf32> to vector<16xf32>
    %433 = vector.shape_cast %432 : vector<16xf32> to vector<16x1xf32>
    %cst_119 = arith.constant 3.200000e+01 : f32
    %434 = vector.broadcast %cst_119 : f32 to vector<16x1xf32>
    %435 = arith.divf %433, %434 : vector<16x1xf32>
    %436 = vector.broadcast %430 : vector<1x32xf32> to vector<16x32xf32>
    %437 = arith.mulf %436, %428 : vector<16x32xf32>
    %cst_120 = arith.constant 9.99999997E-7 : f32
    %438 = vector.broadcast %cst_120 : f32 to vector<16x1xf32>
    %439 = arith.addf %435, %438 : vector<16x1xf32>
    %440 = math.rsqrt %439 : vector<16x1xf32>
    %441 = vector.broadcast %440 : vector<16x1xf32> to vector<16x32xf32>
    %442 = arith.mulf %437, %441 : vector<16x32xf32>
    %c1_121 = arith.constant 1 : index
    %c0_122 = arith.constant 0 : index
    %c0_123 = arith.constant 0 : index
    %443 = vector.load %arg5[%c1_121, %c0_122, %c0_123] : memref<2x96x32xbf16, #tpu.memory_space<vmem>>, vector<1x96x32xbf16>
    %444 = vector.shape_cast %443 : vector<1x96x32xbf16> to vector<96x32xbf16>
    %445 = arith.truncf %442 : vector<16x32xf32> to vector<16x32xbf16>
    %cst_124 = arith.constant dense<0.000000e+00> : vector<16x96xf32>
    %446 = tpu.matmul %445, %444, %cst_124 {dimension_numbers = #tpu.dot_dimension_numbers<[1], [1], [0], [0], [0, 0, 1, 0], [], []>} : vector<16x32xbf16>, vector<96x32xbf16>, vector<16x96xf32> -> vector<16x96xf32>
    %447 = vector.extract_strided_slice %446 {offsets = [0, 0], sizes = [16, 32], strides = [1, 1]} : vector<16x96xf32> to vector<16x32xf32>
    %448 = vector.extract_strided_slice %446 {offsets = [0, 32], sizes = [16, 32], strides = [1, 1]} : vector<16x96xf32> to vector<16x32xf32>
    %449 = vector.extract_strided_slice %446 {offsets = [0, 64], sizes = [16, 32], strides = [1, 1]} : vector<16x96xf32> to vector<16x32xf32>
    %450 = vector.extract_strided_slice %447 {offsets = [0, 0], sizes = [8, 32], strides = [1, 1]} : vector<16x32xf32> to vector<8x32xf32>
    %451 = vector.extract_strided_slice %448 {offsets = [0, 0], sizes = [8, 32], strides = [1, 1]} : vector<16x32xf32> to vector<8x32xf32>
    %452 = vector.extract_strided_slice %449 {offsets = [0, 0], sizes = [8, 32], strides = [1, 1]} : vector<16x32xf32> to vector<8x32xf32>
    %453 = vector.extract_strided_slice %450 {offsets = [0, 0], sizes = [8, 8], strides = [1, 1]} : vector<8x32xf32> to vector<8x8xf32>
    %454 = vector.extract_strided_slice %451 {offsets = [0, 0], sizes = [8, 8], strides = [1, 1]} : vector<8x32xf32> to vector<8x8xf32>
    %455 = vector.extract_strided_slice %452 {offsets = [0, 0], sizes = [8, 8], strides = [1, 1]} : vector<8x32xf32> to vector<8x8xf32>
    %456 = arith.truncf %453 : vector<8x8xf32> to vector<8x8xbf16>
    %457 = arith.truncf %454 : vector<8x8xf32> to vector<8x8xbf16>
    %cst_125 = arith.constant dense<0.000000e+00> : vector<8x8xf32>
    %458 = tpu.matmul %456, %457, %cst_125 {dimension_numbers = #tpu.dot_dimension_numbers<[1], [1], [0], [0], [0, 0, 1, 0], [], []>} : vector<8x8xbf16>, vector<8x8xbf16>, vector<8x8xf32> -> vector<8x8xf32>
    %459 = vector.extract_strided_slice %2 {offsets = [0, 0, 0], sizes = [1, 8, 8], strides = [1, 1, 1]} : vector<4x8x8xf32> to vector<1x8x8xf32>
    %460 = vector.shape_cast %459 : vector<1x8x8xf32> to vector<8x8xf32>
    %461 = arith.addf %458, %460 : vector<8x8xf32>
    %cst_126 = arith.constant dense<0xFF800000> : vector<8xf32>
    %462 = vector.multi_reduction <maximumf>, %461, %cst_126 [1] : vector<8x8xf32> to vector<8xf32>
    %463 = vector.shape_cast %462 : vector<8xf32> to vector<8x1xf32>
    %464 = vector.broadcast %463 : vector<8x1xf32> to vector<8x8xf32>
    %465 = arith.subf %461, %464 : vector<8x8xf32>
    %466 = math.exp %465 : vector<8x8xf32>
    %cst_127 = arith.constant dense<0.000000e+00> : vector<8xf32>
    %467 = vector.multi_reduction <add>, %466, %cst_127 [1] : vector<8x8xf32> to vector<8xf32>
    %468 = vector.shape_cast %467 : vector<8xf32> to vector<8x1xf32>
    %469 = tpu.reciprocal %468 {approx = true} : vector<8x1xf32> -> vector<8x1xf32>
    %470 = vector.broadcast %469 : vector<8x1xf32> to vector<8x8xf32>
    %471 = arith.mulf %466, %470 : vector<8x8xf32>
    %472 = arith.truncf %471 : vector<8x8xf32> to vector<8x8xbf16>
    %473 = arith.truncf %455 : vector<8x8xf32> to vector<8x8xbf16>
    %cst_128 = arith.constant dense<0.000000e+00> : vector<8x8xf32>
    %474 = tpu.matmul %472, %473, %cst_128 {dimension_numbers = #tpu.dot_dimension_numbers<[1], [0], [0], [1], [0, 0, 1, 1], [], []>} : vector<8x8xbf16>, vector<8x8xbf16>, vector<8x8xf32> -> vector<8x8xf32>
    %475 = vector.extract_strided_slice %450 {offsets = [0, 8], sizes = [8, 8], strides = [1, 1]} : vector<8x32xf32> to vector<8x8xf32>
    %476 = vector.extract_strided_slice %451 {offsets = [0, 8], sizes = [8, 8], strides = [1, 1]} : vector<8x32xf32> to vector<8x8xf32>
    %477 = vector.extract_strided_slice %452 {offsets = [0, 8], sizes = [8, 8], strides = [1, 1]} : vector<8x32xf32> to vector<8x8xf32>
    %478 = arith.truncf %475 : vector<8x8xf32> to vector<8x8xbf16>
    %479 = arith.truncf %476 : vector<8x8xf32> to vector<8x8xbf16>
    %cst_129 = arith.constant dense<0.000000e+00> : vector<8x8xf32>
    %480 = tpu.matmul %478, %479, %cst_129 {dimension_numbers = #tpu.dot_dimension_numbers<[1], [1], [0], [0], [0, 0, 1, 0], [], []>} : vector<8x8xbf16>, vector<8x8xbf16>, vector<8x8xf32> -> vector<8x8xf32>
    %481 = vector.extract_strided_slice %2 {offsets = [1, 0, 0], sizes = [1, 8, 8], strides = [1, 1, 1]} : vector<4x8x8xf32> to vector<1x8x8xf32>
    %482 = vector.shape_cast %481 : vector<1x8x8xf32> to vector<8x8xf32>
    %483 = arith.addf %480, %482 : vector<8x8xf32>
    %cst_130 = arith.constant dense<0xFF800000> : vector<8xf32>
    %484 = vector.multi_reduction <maximumf>, %483, %cst_130 [1] : vector<8x8xf32> to vector<8xf32>
    %485 = vector.shape_cast %484 : vector<8xf32> to vector<8x1xf32>
    %486 = vector.broadcast %485 : vector<8x1xf32> to vector<8x8xf32>
    %487 = arith.subf %483, %486 : vector<8x8xf32>
    %488 = math.exp %487 : vector<8x8xf32>
    %cst_131 = arith.constant dense<0.000000e+00> : vector<8xf32>
    %489 = vector.multi_reduction <add>, %488, %cst_131 [1] : vector<8x8xf32> to vector<8xf32>
    %490 = vector.shape_cast %489 : vector<8xf32> to vector<8x1xf32>
    %491 = tpu.reciprocal %490 {approx = true} : vector<8x1xf32> -> vector<8x1xf32>
    %492 = vector.broadcast %491 : vector<8x1xf32> to vector<8x8xf32>
    %493 = arith.mulf %488, %492 : vector<8x8xf32>
    %494 = arith.truncf %493 : vector<8x8xf32> to vector<8x8xbf16>
    %495 = arith.truncf %477 : vector<8x8xf32> to vector<8x8xbf16>
    %cst_132 = arith.constant dense<0.000000e+00> : vector<8x8xf32>
    %496 = tpu.matmul %494, %495, %cst_132 {dimension_numbers = #tpu.dot_dimension_numbers<[1], [0], [0], [1], [0, 0, 1, 1], [], []>} : vector<8x8xbf16>, vector<8x8xbf16>, vector<8x8xf32> -> vector<8x8xf32>
    %497 = vector.extract_strided_slice %450 {offsets = [0, 16], sizes = [8, 8], strides = [1, 1]} : vector<8x32xf32> to vector<8x8xf32>
    %498 = vector.extract_strided_slice %451 {offsets = [0, 16], sizes = [8, 8], strides = [1, 1]} : vector<8x32xf32> to vector<8x8xf32>
    %499 = vector.extract_strided_slice %452 {offsets = [0, 16], sizes = [8, 8], strides = [1, 1]} : vector<8x32xf32> to vector<8x8xf32>
    %500 = arith.truncf %497 : vector<8x8xf32> to vector<8x8xbf16>
    %501 = arith.truncf %498 : vector<8x8xf32> to vector<8x8xbf16>
    %cst_133 = arith.constant dense<0.000000e+00> : vector<8x8xf32>
    %502 = tpu.matmul %500, %501, %cst_133 {dimension_numbers = #tpu.dot_dimension_numbers<[1], [1], [0], [0], [0, 0, 1, 0], [], []>} : vector<8x8xbf16>, vector<8x8xbf16>, vector<8x8xf32> -> vector<8x8xf32>
    %503 = vector.extract_strided_slice %2 {offsets = [2, 0, 0], sizes = [1, 8, 8], strides = [1, 1, 1]} : vector<4x8x8xf32> to vector<1x8x8xf32>
    %504 = vector.shape_cast %503 : vector<1x8x8xf32> to vector<8x8xf32>
    %505 = arith.addf %502, %504 : vector<8x8xf32>
    %cst_134 = arith.constant dense<0xFF800000> : vector<8xf32>
    %506 = vector.multi_reduction <maximumf>, %505, %cst_134 [1] : vector<8x8xf32> to vector<8xf32>
    %507 = vector.shape_cast %506 : vector<8xf32> to vector<8x1xf32>
    %508 = vector.broadcast %507 : vector<8x1xf32> to vector<8x8xf32>
    %509 = arith.subf %505, %508 : vector<8x8xf32>
    %510 = math.exp %509 : vector<8x8xf32>
    %cst_135 = arith.constant dense<0.000000e+00> : vector<8xf32>
    %511 = vector.multi_reduction <add>, %510, %cst_135 [1] : vector<8x8xf32> to vector<8xf32>
    %512 = vector.shape_cast %511 : vector<8xf32> to vector<8x1xf32>
    %513 = tpu.reciprocal %512 {approx = true} : vector<8x1xf32> -> vector<8x1xf32>
    %514 = vector.broadcast %513 : vector<8x1xf32> to vector<8x8xf32>
    %515 = arith.mulf %510, %514 : vector<8x8xf32>
    %516 = arith.truncf %515 : vector<8x8xf32> to vector<8x8xbf16>
    %517 = arith.truncf %499 : vector<8x8xf32> to vector<8x8xbf16>
    %cst_136 = arith.constant dense<0.000000e+00> : vector<8x8xf32>
    %518 = tpu.matmul %516, %517, %cst_136 {dimension_numbers = #tpu.dot_dimension_numbers<[1], [0], [0], [1], [0, 0, 1, 1], [], []>} : vector<8x8xbf16>, vector<8x8xbf16>, vector<8x8xf32> -> vector<8x8xf32>
    %519 = vector.extract_strided_slice %450 {offsets = [0, 24], sizes = [8, 8], strides = [1, 1]} : vector<8x32xf32> to vector<8x8xf32>
    %520 = vector.extract_strided_slice %451 {offsets = [0, 24], sizes = [8, 8], strides = [1, 1]} : vector<8x32xf32> to vector<8x8xf32>
    %521 = vector.extract_strided_slice %452 {offsets = [0, 24], sizes = [8, 8], strides = [1, 1]} : vector<8x32xf32> to vector<8x8xf32>
    %522 = arith.truncf %519 : vector<8x8xf32> to vector<8x8xbf16>
    %523 = arith.truncf %520 : vector<8x8xf32> to vector<8x8xbf16>
    %cst_137 = arith.constant dense<0.000000e+00> : vector<8x8xf32>
    %524 = tpu.matmul %522, %523, %cst_137 {dimension_numbers = #tpu.dot_dimension_numbers<[1], [1], [0], [0], [0, 0, 1, 0], [], []>} : vector<8x8xbf16>, vector<8x8xbf16>, vector<8x8xf32> -> vector<8x8xf32>
    %525 = vector.extract_strided_slice %2 {offsets = [3, 0, 0], sizes = [1, 8, 8], strides = [1, 1, 1]} : vector<4x8x8xf32> to vector<1x8x8xf32>
    %526 = vector.shape_cast %525 : vector<1x8x8xf32> to vector<8x8xf32>
    %527 = arith.addf %524, %526 : vector<8x8xf32>
    %cst_138 = arith.constant dense<0xFF800000> : vector<8xf32>
    %528 = vector.multi_reduction <maximumf>, %527, %cst_138 [1] : vector<8x8xf32> to vector<8xf32>
    %529 = vector.shape_cast %528 : vector<8xf32> to vector<8x1xf32>
    %530 = vector.broadcast %529 : vector<8x1xf32> to vector<8x8xf32>
    %531 = arith.subf %527, %530 : vector<8x8xf32>
    %532 = math.exp %531 : vector<8x8xf32>
    %cst_139 = arith.constant dense<0.000000e+00> : vector<8xf32>
    %533 = vector.multi_reduction <add>, %532, %cst_139 [1] : vector<8x8xf32> to vector<8xf32>
    %534 = vector.shape_cast %533 : vector<8xf32> to vector<8x1xf32>
    %535 = tpu.reciprocal %534 {approx = true} : vector<8x1xf32> -> vector<8x1xf32>
    %536 = vector.broadcast %535 : vector<8x1xf32> to vector<8x8xf32>
    %537 = arith.mulf %532, %536 : vector<8x8xf32>
    %538 = arith.truncf %537 : vector<8x8xf32> to vector<8x8xbf16>
    %539 = arith.truncf %521 : vector<8x8xf32> to vector<8x8xbf16>
    %cst_140 = arith.constant dense<0.000000e+00> : vector<8x8xf32>
    %540 = tpu.matmul %538, %539, %cst_140 {dimension_numbers = #tpu.dot_dimension_numbers<[1], [0], [0], [1], [0, 0, 1, 1], [], []>} : vector<8x8xbf16>, vector<8x8xbf16>, vector<8x8xf32> -> vector<8x8xf32>
    %541 = tpu.concatenate %474, %496, %518, %540 in 1 : vector<8x8xf32>, vector<8x8xf32>, vector<8x8xf32>, vector<8x8xf32> -> vector<8x32xf32>
    %542 = vector.extract_strided_slice %447 {offsets = [8, 0], sizes = [8, 32], strides = [1, 1]} : vector<16x32xf32> to vector<8x32xf32>
    %543 = vector.extract_strided_slice %448 {offsets = [8, 0], sizes = [8, 32], strides = [1, 1]} : vector<16x32xf32> to vector<8x32xf32>
    %544 = vector.extract_strided_slice %449 {offsets = [8, 0], sizes = [8, 32], strides = [1, 1]} : vector<16x32xf32> to vector<8x32xf32>
    %545 = vector.extract_strided_slice %542 {offsets = [0, 0], sizes = [8, 8], strides = [1, 1]} : vector<8x32xf32> to vector<8x8xf32>
    %546 = vector.extract_strided_slice %543 {offsets = [0, 0], sizes = [8, 8], strides = [1, 1]} : vector<8x32xf32> to vector<8x8xf32>
    %547 = vector.extract_strided_slice %544 {offsets = [0, 0], sizes = [8, 8], strides = [1, 1]} : vector<8x32xf32> to vector<8x8xf32>
    %548 = arith.truncf %545 : vector<8x8xf32> to vector<8x8xbf16>
    %549 = arith.truncf %546 : vector<8x8xf32> to vector<8x8xbf16>
    %cst_141 = arith.constant dense<0.000000e+00> : vector<8x8xf32>
    %550 = tpu.matmul %548, %549, %cst_141 {dimension_numbers = #tpu.dot_dimension_numbers<[1], [1], [0], [0], [0, 0, 1, 0], [], []>} : vector<8x8xbf16>, vector<8x8xbf16>, vector<8x8xf32> -> vector<8x8xf32>
    %551 = vector.extract_strided_slice %2 {offsets = [0, 0, 0], sizes = [1, 8, 8], strides = [1, 1, 1]} : vector<4x8x8xf32> to vector<1x8x8xf32>
    %552 = vector.shape_cast %551 : vector<1x8x8xf32> to vector<8x8xf32>
    %553 = arith.addf %550, %552 : vector<8x8xf32>
    %cst_142 = arith.constant dense<0xFF800000> : vector<8xf32>
    %554 = vector.multi_reduction <maximumf>, %553, %cst_142 [1] : vector<8x8xf32> to vector<8xf32>
    %555 = vector.shape_cast %554 : vector<8xf32> to vector<8x1xf32>
    %556 = vector.broadcast %555 : vector<8x1xf32> to vector<8x8xf32>
    %557 = arith.subf %553, %556 : vector<8x8xf32>
    %558 = math.exp %557 : vector<8x8xf32>
    %cst_143 = arith.constant dense<0.000000e+00> : vector<8xf32>
    %559 = vector.multi_reduction <add>, %558, %cst_143 [1] : vector<8x8xf32> to vector<8xf32>
    %560 = vector.shape_cast %559 : vector<8xf32> to vector<8x1xf32>
    %561 = tpu.reciprocal %560 {approx = true} : vector<8x1xf32> -> vector<8x1xf32>
    %562 = vector.broadcast %561 : vector<8x1xf32> to vector<8x8xf32>
    %563 = arith.mulf %558, %562 : vector<8x8xf32>
    %564 = arith.truncf %563 : vector<8x8xf32> to vector<8x8xbf16>
    %565 = arith.truncf %547 : vector<8x8xf32> to vector<8x8xbf16>
    %cst_144 = arith.constant dense<0.000000e+00> : vector<8x8xf32>
    %566 = tpu.matmul %564, %565, %cst_144 {dimension_numbers = #tpu.dot_dimension_numbers<[1], [0], [0], [1], [0, 0, 1, 1], [], []>} : vector<8x8xbf16>, vector<8x8xbf16>, vector<8x8xf32> -> vector<8x8xf32>
    %567 = vector.extract_strided_slice %542 {offsets = [0, 8], sizes = [8, 8], strides = [1, 1]} : vector<8x32xf32> to vector<8x8xf32>
    %568 = vector.extract_strided_slice %543 {offsets = [0, 8], sizes = [8, 8], strides = [1, 1]} : vector<8x32xf32> to vector<8x8xf32>
    %569 = vector.extract_strided_slice %544 {offsets = [0, 8], sizes = [8, 8], strides = [1, 1]} : vector<8x32xf32> to vector<8x8xf32>
    %570 = arith.truncf %567 : vector<8x8xf32> to vector<8x8xbf16>
    %571 = arith.truncf %568 : vector<8x8xf32> to vector<8x8xbf16>
    %cst_145 = arith.constant dense<0.000000e+00> : vector<8x8xf32>
    %572 = tpu.matmul %570, %571, %cst_145 {dimension_numbers = #tpu.dot_dimension_numbers<[1], [1], [0], [0], [0, 0, 1, 0], [], []>} : vector<8x8xbf16>, vector<8x8xbf16>, vector<8x8xf32> -> vector<8x8xf32>
    %573 = vector.extract_strided_slice %2 {offsets = [1, 0, 0], sizes = [1, 8, 8], strides = [1, 1, 1]} : vector<4x8x8xf32> to vector<1x8x8xf32>
    %574 = vector.shape_cast %573 : vector<1x8x8xf32> to vector<8x8xf32>
    %575 = arith.addf %572, %574 : vector<8x8xf32>
    %cst_146 = arith.constant dense<0xFF800000> : vector<8xf32>
    %576 = vector.multi_reduction <maximumf>, %575, %cst_146 [1] : vector<8x8xf32> to vector<8xf32>
    %577 = vector.shape_cast %576 : vector<8xf32> to vector<8x1xf32>
    %578 = vector.broadcast %577 : vector<8x1xf32> to vector<8x8xf32>
    %579 = arith.subf %575, %578 : vector<8x8xf32>
    %580 = math.exp %579 : vector<8x8xf32>
    %cst_147 = arith.constant dense<0.000000e+00> : vector<8xf32>
    %581 = vector.multi_reduction <add>, %580, %cst_147 [1] : vector<8x8xf32> to vector<8xf32>
    %582 = vector.shape_cast %581 : vector<8xf32> to vector<8x1xf32>
    %583 = tpu.reciprocal %582 {approx = true} : vector<8x1xf32> -> vector<8x1xf32>
    %584 = vector.broadcast %583 : vector<8x1xf32> to vector<8x8xf32>
    %585 = arith.mulf %580, %584 : vector<8x8xf32>
    %586 = arith.truncf %585 : vector<8x8xf32> to vector<8x8xbf16>
    %587 = arith.truncf %569 : vector<8x8xf32> to vector<8x8xbf16>
    %cst_148 = arith.constant dense<0.000000e+00> : vector<8x8xf32>
    %588 = tpu.matmul %586, %587, %cst_148 {dimension_numbers = #tpu.dot_dimension_numbers<[1], [0], [0], [1], [0, 0, 1, 1], [], []>} : vector<8x8xbf16>, vector<8x8xbf16>, vector<8x8xf32> -> vector<8x8xf32>
    %589 = vector.extract_strided_slice %542 {offsets = [0, 16], sizes = [8, 8], strides = [1, 1]} : vector<8x32xf32> to vector<8x8xf32>
    %590 = vector.extract_strided_slice %543 {offsets = [0, 16], sizes = [8, 8], strides = [1, 1]} : vector<8x32xf32> to vector<8x8xf32>
    %591 = vector.extract_strided_slice %544 {offsets = [0, 16], sizes = [8, 8], strides = [1, 1]} : vector<8x32xf32> to vector<8x8xf32>
    %592 = arith.truncf %589 : vector<8x8xf32> to vector<8x8xbf16>
    %593 = arith.truncf %590 : vector<8x8xf32> to vector<8x8xbf16>
    %cst_149 = arith.constant dense<0.000000e+00> : vector<8x8xf32>
    %594 = tpu.matmul %592, %593, %cst_149 {dimension_numbers = #tpu.dot_dimension_numbers<[1], [1], [0], [0], [0, 0, 1, 0], [], []>} : vector<8x8xbf16>, vector<8x8xbf16>, vector<8x8xf32> -> vector<8x8xf32>
    %595 = vector.extract_strided_slice %2 {offsets = [2, 0, 0], sizes = [1, 8, 8], strides = [1, 1, 1]} : vector<4x8x8xf32> to vector<1x8x8xf32>
    %596 = vector.shape_cast %595 : vector<1x8x8xf32> to vector<8x8xf32>
    %597 = arith.addf %594, %596 : vector<8x8xf32>
    %cst_150 = arith.constant dense<0xFF800000> : vector<8xf32>
    %598 = vector.multi_reduction <maximumf>, %597, %cst_150 [1] : vector<8x8xf32> to vector<8xf32>
    %599 = vector.shape_cast %598 : vector<8xf32> to vector<8x1xf32>
    %600 = vector.broadcast %599 : vector<8x1xf32> to vector<8x8xf32>
    %601 = arith.subf %597, %600 : vector<8x8xf32>
    %602 = math.exp %601 : vector<8x8xf32>
    %cst_151 = arith.constant dense<0.000000e+00> : vector<8xf32>
    %603 = vector.multi_reduction <add>, %602, %cst_151 [1] : vector<8x8xf32> to vector<8xf32>
    %604 = vector.shape_cast %603 : vector<8xf32> to vector<8x1xf32>
    %605 = tpu.reciprocal %604 {approx = true} : vector<8x1xf32> -> vector<8x1xf32>
    %606 = vector.broadcast %605 : vector<8x1xf32> to vector<8x8xf32>
    %607 = arith.mulf %602, %606 : vector<8x8xf32>
    %608 = arith.truncf %607 : vector<8x8xf32> to vector<8x8xbf16>
    %609 = arith.truncf %591 : vector<8x8xf32> to vector<8x8xbf16>
    %cst_152 = arith.constant dense<0.000000e+00> : vector<8x8xf32>
    %610 = tpu.matmul %608, %609, %cst_152 {dimension_numbers = #tpu.dot_dimension_numbers<[1], [0], [0], [1], [0, 0, 1, 1], [], []>} : vector<8x8xbf16>, vector<8x8xbf16>, vector<8x8xf32> -> vector<8x8xf32>
    %611 = vector.extract_strided_slice %542 {offsets = [0, 24], sizes = [8, 8], strides = [1, 1]} : vector<8x32xf32> to vector<8x8xf32>
    %612 = vector.extract_strided_slice %543 {offsets = [0, 24], sizes = [8, 8], strides = [1, 1]} : vector<8x32xf32> to vector<8x8xf32>
    %613 = vector.extract_strided_slice %544 {offsets = [0, 24], sizes = [8, 8], strides = [1, 1]} : vector<8x32xf32> to vector<8x8xf32>
    %614 = arith.truncf %611 : vector<8x8xf32> to vector<8x8xbf16>
    %615 = arith.truncf %612 : vector<8x8xf32> to vector<8x8xbf16>
    %cst_153 = arith.constant dense<0.000000e+00> : vector<8x8xf32>
    %616 = tpu.matmul %614, %615, %cst_153 {dimension_numbers = #tpu.dot_dimension_numbers<[1], [1], [0], [0], [0, 0, 1, 0], [], []>} : vector<8x8xbf16>, vector<8x8xbf16>, vector<8x8xf32> -> vector<8x8xf32>
    %617 = vector.extract_strided_slice %2 {offsets = [3, 0, 0], sizes = [1, 8, 8], strides = [1, 1, 1]} : vector<4x8x8xf32> to vector<1x8x8xf32>
    %618 = vector.shape_cast %617 : vector<1x8x8xf32> to vector<8x8xf32>
    %619 = arith.addf %616, %618 : vector<8x8xf32>
    %cst_154 = arith.constant dense<0xFF800000> : vector<8xf32>
    %620 = vector.multi_reduction <maximumf>, %619, %cst_154 [1] : vector<8x8xf32> to vector<8xf32>
    %621 = vector.shape_cast %620 : vector<8xf32> to vector<8x1xf32>
    %622 = vector.broadcast %621 : vector<8x1xf32> to vector<8x8xf32>
    %623 = arith.subf %619, %622 : vector<8x8xf32>
    %624 = math.exp %623 : vector<8x8xf32>
    %cst_155 = arith.constant dense<0.000000e+00> : vector<8xf32>
    %625 = vector.multi_reduction <add>, %624, %cst_155 [1] : vector<8x8xf32> to vector<8xf32>
    %626 = vector.shape_cast %625 : vector<8xf32> to vector<8x1xf32>
    %627 = tpu.reciprocal %626 {approx = true} : vector<8x1xf32> -> vector<8x1xf32>
    %628 = vector.broadcast %627 : vector<8x1xf32> to vector<8x8xf32>
    %629 = arith.mulf %624, %628 : vector<8x8xf32>
    %630 = arith.truncf %629 : vector<8x8xf32> to vector<8x8xbf16>
    %631 = arith.truncf %613 : vector<8x8xf32> to vector<8x8xbf16>
    %cst_156 = arith.constant dense<0.000000e+00> : vector<8x8xf32>
    %632 = tpu.matmul %630, %631, %cst_156 {dimension_numbers = #tpu.dot_dimension_numbers<[1], [0], [0], [1], [0, 0, 1, 1], [], []>} : vector<8x8xbf16>, vector<8x8xbf16>, vector<8x8xf32> -> vector<8x8xf32>
    %633 = tpu.concatenate %566, %588, %610, %632 in 1 : vector<8x8xf32>, vector<8x8xf32>, vector<8x8xf32>, vector<8x8xf32> -> vector<8x32xf32>
    %634 = tpu.concatenate %541, %633 in 0 : vector<8x32xf32>, vector<8x32xf32> -> vector<16x32xf32>
    %c1_157 = arith.constant 1 : index
    %c0_158 = arith.constant 0 : index
    %c0_159 = arith.constant 0 : index
    %635 = vector.load %arg6[%c1_157, %c0_158, %c0_159] : memref<2x32x32xbf16, #tpu.memory_space<vmem>>, vector<1x32x32xbf16>
    %636 = vector.shape_cast %635 : vector<1x32x32xbf16> to vector<32x32xbf16>
    %637 = arith.truncf %634 : vector<16x32xf32> to vector<16x32xbf16>
    %cst_160 = arith.constant dense<0.000000e+00> : vector<16x32xf32>
    %638 = tpu.matmul %637, %636, %cst_160 {dimension_numbers = #tpu.dot_dimension_numbers<[1], [1], [0], [0], [0, 0, 1, 0], [], []>} : vector<16x32xbf16>, vector<32x32xbf16>, vector<16x32xf32> -> vector<16x32xf32>
    %639 = arith.addf %428, %638 : vector<16x32xf32>
    %c1_161 = arith.constant 1 : index
    %c0_162 = arith.constant 0 : index
    %c0_163 = arith.constant 0 : index
    %640 = vector.load %arg7[%c1_161, %c0_162, %c0_163] : memref<2x1x32xf32, #tpu.memory_space<vmem>>, vector<1x1x32xf32>
    %641 = vector.shape_cast %640 : vector<1x1x32xf32> to vector<1x32xf32>
    %642 = arith.mulf %639, %639 : vector<16x32xf32>
    %cst_164 = arith.constant dense<0.000000e+00> : vector<16xf32>
    %643 = vector.multi_reduction <add>, %642, %cst_164 [1] : vector<16x32xf32> to vector<16xf32>
    %644 = vector.shape_cast %643 : vector<16xf32> to vector<16x1xf32>
    %cst_165 = arith.constant 3.200000e+01 : f32
    %645 = vector.broadcast %cst_165 : f32 to vector<16x1xf32>
    %646 = arith.divf %644, %645 : vector<16x1xf32>
    %647 = vector.broadcast %641 : vector<1x32xf32> to vector<16x32xf32>
    %648 = arith.mulf %647, %639 : vector<16x32xf32>
    %cst_166 = arith.constant 9.99999997E-7 : f32
    %649 = vector.broadcast %cst_166 : f32 to vector<16x1xf32>
    %650 = arith.addf %646, %649 : vector<16x1xf32>
    %651 = math.rsqrt %650 : vector<16x1xf32>
    %652 = vector.broadcast %651 : vector<16x1xf32> to vector<16x32xf32>
    %653 = arith.mulf %648, %652 : vector<16x32xf32>
    %c1_167 = arith.constant 1 : index
    %c0_168 = arith.constant 0 : index
    %c0_169 = arith.constant 0 : index
    %654 = vector.load %arg8[%c1_167, %c0_168, %c0_169] : memref<2x32x32xbf16, #tpu.memory_space<vmem>>, vector<1x32x32xbf16>
    %655 = vector.shape_cast %654 : vector<1x32x32xbf16> to vector<32x32xbf16>
    %656 = arith.truncf %653 : vector<16x32xf32> to vector<16x32xbf16>
    %cst_170 = arith.constant dense<0.000000e+00> : vector<16x32xf32>
    %657 = tpu.matmul %656, %655, %cst_170 {dimension_numbers = #tpu.dot_dimension_numbers<[1], [1], [0], [0], [0, 0, 1, 0], [], []>} : vector<16x32xbf16>, vector<32x32xbf16>, vector<16x32xf32> -> vector<16x32xf32>
    %c1_171 = arith.constant 1 : index
    %c0_172 = arith.constant 0 : index
    %c0_173 = arith.constant 0 : index
    %658 = vector.load %arg9[%c1_171, %c0_172, %c0_173] : memref<2x64x32xbf16, #tpu.memory_space<vmem>>, vector<1x64x32xbf16>
    %659 = vector.shape_cast %658 : vector<1x64x32xbf16> to vector<64x32xbf16>
    %660 = arith.truncf %1 : vector<16x32xf32> to vector<16x32xbf16>
    %cst_174 = arith.constant dense<0.000000e+00> : vector<16x64xf32>
    %661 = tpu.matmul %660, %659, %cst_174 {dimension_numbers = #tpu.dot_dimension_numbers<[1], [1], [0], [0], [0, 0, 1, 0], [], []>} : vector<16x32xbf16>, vector<64x32xbf16>, vector<16x64xf32> -> vector<16x64xf32>
    %662 = vector.extract_strided_slice %661 {offsets = [0, 0], sizes = [16, 32], strides = [1, 1]} : vector<16x64xf32> to vector<16x32xf32>
    %663 = vector.extract_strided_slice %661 {offsets = [0, 32], sizes = [16, 32], strides = [1, 1]} : vector<16x64xf32> to vector<16x32xf32>
    %664 = vector.extract_strided_slice %657 {offsets = [0, 0], sizes = [8, 32], strides = [1, 1]} : vector<16x32xf32> to vector<8x32xf32>
    %665 = vector.extract_strided_slice %662 {offsets = [0, 0], sizes = [8, 32], strides = [1, 1]} : vector<16x32xf32> to vector<8x32xf32>
    %666 = vector.extract_strided_slice %663 {offsets = [0, 0], sizes = [8, 32], strides = [1, 1]} : vector<16x32xf32> to vector<8x32xf32>
    %667 = vector.extract_strided_slice %664 {offsets = [0, 0], sizes = [8, 8], strides = [1, 1]} : vector<8x32xf32> to vector<8x8xf32>
    %668 = vector.extract_strided_slice %665 {offsets = [0, 0], sizes = [8, 8], strides = [1, 1]} : vector<8x32xf32> to vector<8x8xf32>
    %669 = vector.extract_strided_slice %666 {offsets = [0, 0], sizes = [8, 8], strides = [1, 1]} : vector<8x32xf32> to vector<8x8xf32>
    %670 = arith.truncf %667 : vector<8x8xf32> to vector<8x8xbf16>
    %671 = arith.truncf %668 : vector<8x8xf32> to vector<8x8xbf16>
    %cst_175 = arith.constant dense<0.000000e+00> : vector<8x8xf32>
    %672 = tpu.matmul %670, %671, %cst_175 {dimension_numbers = #tpu.dot_dimension_numbers<[1], [1], [0], [0], [0, 0, 1, 0], [], []>} : vector<8x8xbf16>, vector<8x8xbf16>, vector<8x8xf32> -> vector<8x8xf32>
    %cst_176 = arith.constant dense<0xFF800000> : vector<8xf32>
    %673 = vector.multi_reduction <maximumf>, %672, %cst_176 [1] : vector<8x8xf32> to vector<8xf32>
    %674 = vector.shape_cast %673 : vector<8xf32> to vector<8x1xf32>
    %675 = vector.broadcast %674 : vector<8x1xf32> to vector<8x8xf32>
    %676 = arith.subf %672, %675 : vector<8x8xf32>
    %677 = math.exp %676 : vector<8x8xf32>
    %cst_177 = arith.constant dense<0.000000e+00> : vector<8xf32>
    %678 = vector.multi_reduction <add>, %677, %cst_177 [1] : vector<8x8xf32> to vector<8xf32>
    %679 = vector.shape_cast %678 : vector<8xf32> to vector<8x1xf32>
    %680 = tpu.reciprocal %679 {approx = true} : vector<8x1xf32> -> vector<8x1xf32>
    %681 = vector.broadcast %680 : vector<8x1xf32> to vector<8x8xf32>
    %682 = arith.mulf %677, %681 : vector<8x8xf32>
    %683 = arith.truncf %682 : vector<8x8xf32> to vector<8x8xbf16>
    %684 = arith.truncf %669 : vector<8x8xf32> to vector<8x8xbf16>
    %cst_178 = arith.constant dense<0.000000e+00> : vector<8x8xf32>
    %685 = tpu.matmul %683, %684, %cst_178 {dimension_numbers = #tpu.dot_dimension_numbers<[1], [0], [0], [1], [0, 0, 1, 1], [], []>} : vector<8x8xbf16>, vector<8x8xbf16>, vector<8x8xf32> -> vector<8x8xf32>
    %686 = vector.extract_strided_slice %664 {offsets = [0, 8], sizes = [8, 8], strides = [1, 1]} : vector<8x32xf32> to vector<8x8xf32>
    %687 = vector.extract_strided_slice %665 {offsets = [0, 8], sizes = [8, 8], strides = [1, 1]} : vector<8x32xf32> to vector<8x8xf32>
    %688 = vector.extract_strided_slice %666 {offsets = [0, 8], sizes = [8, 8], strides = [1, 1]} : vector<8x32xf32> to vector<8x8xf32>
    %689 = arith.truncf %686 : vector<8x8xf32> to vector<8x8xbf16>
    %690 = arith.truncf %687 : vector<8x8xf32> to vector<8x8xbf16>
    %cst_179 = arith.constant dense<0.000000e+00> : vector<8x8xf32>
    %691 = tpu.matmul %689, %690, %cst_179 {dimension_numbers = #tpu.dot_dimension_numbers<[1], [1], [0], [0], [0, 0, 1, 0], [], []>} : vector<8x8xbf16>, vector<8x8xbf16>, vector<8x8xf32> -> vector<8x8xf32>
    %cst_180 = arith.constant dense<0xFF800000> : vector<8xf32>
    %692 = vector.multi_reduction <maximumf>, %691, %cst_180 [1] : vector<8x8xf32> to vector<8xf32>
    %693 = vector.shape_cast %692 : vector<8xf32> to vector<8x1xf32>
    %694 = vector.broadcast %693 : vector<8x1xf32> to vector<8x8xf32>
    %695 = arith.subf %691, %694 : vector<8x8xf32>
    %696 = math.exp %695 : vector<8x8xf32>
    %cst_181 = arith.constant dense<0.000000e+00> : vector<8xf32>
    %697 = vector.multi_reduction <add>, %696, %cst_181 [1] : vector<8x8xf32> to vector<8xf32>
    %698 = vector.shape_cast %697 : vector<8xf32> to vector<8x1xf32>
    %699 = tpu.reciprocal %698 {approx = true} : vector<8x1xf32> -> vector<8x1xf32>
    %700 = vector.broadcast %699 : vector<8x1xf32> to vector<8x8xf32>
    %701 = arith.mulf %696, %700 : vector<8x8xf32>
    %702 = arith.truncf %701 : vector<8x8xf32> to vector<8x8xbf16>
    %703 = arith.truncf %688 : vector<8x8xf32> to vector<8x8xbf16>
    %cst_182 = arith.constant dense<0.000000e+00> : vector<8x8xf32>
    %704 = tpu.matmul %702, %703, %cst_182 {dimension_numbers = #tpu.dot_dimension_numbers<[1], [0], [0], [1], [0, 0, 1, 1], [], []>} : vector<8x8xbf16>, vector<8x8xbf16>, vector<8x8xf32> -> vector<8x8xf32>
    %705 = vector.extract_strided_slice %664 {offsets = [0, 16], sizes = [8, 8], strides = [1, 1]} : vector<8x32xf32> to vector<8x8xf32>
    %706 = vector.extract_strided_slice %665 {offsets = [0, 16], sizes = [8, 8], strides = [1, 1]} : vector<8x32xf32> to vector<8x8xf32>
    %707 = vector.extract_strided_slice %666 {offsets = [0, 16], sizes = [8, 8], strides = [1, 1]} : vector<8x32xf32> to vector<8x8xf32>
    %708 = arith.truncf %705 : vector<8x8xf32> to vector<8x8xbf16>
    %709 = arith.truncf %706 : vector<8x8xf32> to vector<8x8xbf16>
    %cst_183 = arith.constant dense<0.000000e+00> : vector<8x8xf32>
    %710 = tpu.matmul %708, %709, %cst_183 {dimension_numbers = #tpu.dot_dimension_numbers<[1], [1], [0], [0], [0, 0, 1, 0], [], []>} : vector<8x8xbf16>, vector<8x8xbf16>, vector<8x8xf32> -> vector<8x8xf32>
    %cst_184 = arith.constant dense<0xFF800000> : vector<8xf32>
    %711 = vector.multi_reduction <maximumf>, %710, %cst_184 [1] : vector<8x8xf32> to vector<8xf32>
    %712 = vector.shape_cast %711 : vector<8xf32> to vector<8x1xf32>
    %713 = vector.broadcast %712 : vector<8x1xf32> to vector<8x8xf32>
    %714 = arith.subf %710, %713 : vector<8x8xf32>
    %715 = math.exp %714 : vector<8x8xf32>
    %cst_185 = arith.constant dense<0.000000e+00> : vector<8xf32>
    %716 = vector.multi_reduction <add>, %715, %cst_185 [1] : vector<8x8xf32> to vector<8xf32>
    %717 = vector.shape_cast %716 : vector<8xf32> to vector<8x1xf32>
    %718 = tpu.reciprocal %717 {approx = true} : vector<8x1xf32> -> vector<8x1xf32>
    %719 = vector.broadcast %718 : vector<8x1xf32> to vector<8x8xf32>
    %720 = arith.mulf %715, %719 : vector<8x8xf32>
    %721 = arith.truncf %720 : vector<8x8xf32> to vector<8x8xbf16>
    %722 = arith.truncf %707 : vector<8x8xf32> to vector<8x8xbf16>
    %cst_186 = arith.constant dense<0.000000e+00> : vector<8x8xf32>
    %723 = tpu.matmul %721, %722, %cst_186 {dimension_numbers = #tpu.dot_dimension_numbers<[1], [0], [0], [1], [0, 0, 1, 1], [], []>} : vector<8x8xbf16>, vector<8x8xbf16>, vector<8x8xf32> -> vector<8x8xf32>
    %724 = vector.extract_strided_slice %664 {offsets = [0, 24], sizes = [8, 8], strides = [1, 1]} : vector<8x32xf32> to vector<8x8xf32>
    %725 = vector.extract_strided_slice %665 {offsets = [0, 24], sizes = [8, 8], strides = [1, 1]} : vector<8x32xf32> to vector<8x8xf32>
    %726 = vector.extract_strided_slice %666 {offsets = [0, 24], sizes = [8, 8], strides = [1, 1]} : vector<8x32xf32> to vector<8x8xf32>
    %727 = arith.truncf %724 : vector<8x8xf32> to vector<8x8xbf16>
    %728 = arith.truncf %725 : vector<8x8xf32> to vector<8x8xbf16>
    %cst_187 = arith.constant dense<0.000000e+00> : vector<8x8xf32>
    %729 = tpu.matmul %727, %728, %cst_187 {dimension_numbers = #tpu.dot_dimension_numbers<[1], [1], [0], [0], [0, 0, 1, 0], [], []>} : vector<8x8xbf16>, vector<8x8xbf16>, vector<8x8xf32> -> vector<8x8xf32>
    %cst_188 = arith.constant dense<0xFF800000> : vector<8xf32>
    %730 = vector.multi_reduction <maximumf>, %729, %cst_188 [1] : vector<8x8xf32> to vector<8xf32>
    %731 = vector.shape_cast %730 : vector<8xf32> to vector<8x1xf32>
    %732 = vector.broadcast %731 : vector<8x1xf32> to vector<8x8xf32>
    %733 = arith.subf %729, %732 : vector<8x8xf32>
    %734 = math.exp %733 : vector<8x8xf32>
    %cst_189 = arith.constant dense<0.000000e+00> : vector<8xf32>
    %735 = vector.multi_reduction <add>, %734, %cst_189 [1] : vector<8x8xf32> to vector<8xf32>
    %736 = vector.shape_cast %735 : vector<8xf32> to vector<8x1xf32>
    %737 = tpu.reciprocal %736 {approx = true} : vector<8x1xf32> -> vector<8x1xf32>
    %738 = vector.broadcast %737 : vector<8x1xf32> to vector<8x8xf32>
    %739 = arith.mulf %734, %738 : vector<8x8xf32>
    %740 = arith.truncf %739 : vector<8x8xf32> to vector<8x8xbf16>
    %741 = arith.truncf %726 : vector<8x8xf32> to vector<8x8xbf16>
    %cst_190 = arith.constant dense<0.000000e+00> : vector<8x8xf32>
    %742 = tpu.matmul %740, %741, %cst_190 {dimension_numbers = #tpu.dot_dimension_numbers<[1], [0], [0], [1], [0, 0, 1, 1], [], []>} : vector<8x8xbf16>, vector<8x8xbf16>, vector<8x8xf32> -> vector<8x8xf32>
    %743 = tpu.concatenate %685, %704, %723, %742 in 1 : vector<8x8xf32>, vector<8x8xf32>, vector<8x8xf32>, vector<8x8xf32> -> vector<8x32xf32>
    %744 = vector.extract_strided_slice %657 {offsets = [8, 0], sizes = [8, 32], strides = [1, 1]} : vector<16x32xf32> to vector<8x32xf32>
    %745 = vector.extract_strided_slice %662 {offsets = [8, 0], sizes = [8, 32], strides = [1, 1]} : vector<16x32xf32> to vector<8x32xf32>
    %746 = vector.extract_strided_slice %663 {offsets = [8, 0], sizes = [8, 32], strides = [1, 1]} : vector<16x32xf32> to vector<8x32xf32>
    %747 = vector.extract_strided_slice %744 {offsets = [0, 0], sizes = [8, 8], strides = [1, 1]} : vector<8x32xf32> to vector<8x8xf32>
    %748 = vector.extract_strided_slice %745 {offsets = [0, 0], sizes = [8, 8], strides = [1, 1]} : vector<8x32xf32> to vector<8x8xf32>
    %749 = vector.extract_strided_slice %746 {offsets = [0, 0], sizes = [8, 8], strides = [1, 1]} : vector<8x32xf32> to vector<8x8xf32>
    %750 = arith.truncf %747 : vector<8x8xf32> to vector<8x8xbf16>
    %751 = arith.truncf %748 : vector<8x8xf32> to vector<8x8xbf16>
    %cst_191 = arith.constant dense<0.000000e+00> : vector<8x8xf32>
    %752 = tpu.matmul %750, %751, %cst_191 {dimension_numbers = #tpu.dot_dimension_numbers<[1], [1], [0], [0], [0, 0, 1, 0], [], []>} : vector<8x8xbf16>, vector<8x8xbf16>, vector<8x8xf32> -> vector<8x8xf32>
    %cst_192 = arith.constant dense<0xFF800000> : vector<8xf32>
    %753 = vector.multi_reduction <maximumf>, %752, %cst_192 [1] : vector<8x8xf32> to vector<8xf32>
    %754 = vector.shape_cast %753 : vector<8xf32> to vector<8x1xf32>
    %755 = vector.broadcast %754 : vector<8x1xf32> to vector<8x8xf32>
    %756 = arith.subf %752, %755 : vector<8x8xf32>
    %757 = math.exp %756 : vector<8x8xf32>
    %cst_193 = arith.constant dense<0.000000e+00> : vector<8xf32>
    %758 = vector.multi_reduction <add>, %757, %cst_193 [1] : vector<8x8xf32> to vector<8xf32>
    %759 = vector.shape_cast %758 : vector<8xf32> to vector<8x1xf32>
    %760 = tpu.reciprocal %759 {approx = true} : vector<8x1xf32> -> vector<8x1xf32>
    %761 = vector.broadcast %760 : vector<8x1xf32> to vector<8x8xf32>
    %762 = arith.mulf %757, %761 : vector<8x8xf32>
    %763 = arith.truncf %762 : vector<8x8xf32> to vector<8x8xbf16>
    %764 = arith.truncf %749 : vector<8x8xf32> to vector<8x8xbf16>
    %cst_194 = arith.constant dense<0.000000e+00> : vector<8x8xf32>
    %765 = tpu.matmul %763, %764, %cst_194 {dimension_numbers = #tpu.dot_dimension_numbers<[1], [0], [0], [1], [0, 0, 1, 1], [], []>} : vector<8x8xbf16>, vector<8x8xbf16>, vector<8x8xf32> -> vector<8x8xf32>
    %766 = vector.extract_strided_slice %744 {offsets = [0, 8], sizes = [8, 8], strides = [1, 1]} : vector<8x32xf32> to vector<8x8xf32>
    %767 = vector.extract_strided_slice %745 {offsets = [0, 8], sizes = [8, 8], strides = [1, 1]} : vector<8x32xf32> to vector<8x8xf32>
    %768 = vector.extract_strided_slice %746 {offsets = [0, 8], sizes = [8, 8], strides = [1, 1]} : vector<8x32xf32> to vector<8x8xf32>
    %769 = arith.truncf %766 : vector<8x8xf32> to vector<8x8xbf16>
    %770 = arith.truncf %767 : vector<8x8xf32> to vector<8x8xbf16>
    %cst_195 = arith.constant dense<0.000000e+00> : vector<8x8xf32>
    %771 = tpu.matmul %769, %770, %cst_195 {dimension_numbers = #tpu.dot_dimension_numbers<[1], [1], [0], [0], [0, 0, 1, 0], [], []>} : vector<8x8xbf16>, vector<8x8xbf16>, vector<8x8xf32> -> vector<8x8xf32>
    %cst_196 = arith.constant dense<0xFF800000> : vector<8xf32>
    %772 = vector.multi_reduction <maximumf>, %771, %cst_196 [1] : vector<8x8xf32> to vector<8xf32>
    %773 = vector.shape_cast %772 : vector<8xf32> to vector<8x1xf32>
    %774 = vector.broadcast %773 : vector<8x1xf32> to vector<8x8xf32>
    %775 = arith.subf %771, %774 : vector<8x8xf32>
    %776 = math.exp %775 : vector<8x8xf32>
    %cst_197 = arith.constant dense<0.000000e+00> : vector<8xf32>
    %777 = vector.multi_reduction <add>, %776, %cst_197 [1] : vector<8x8xf32> to vector<8xf32>
    %778 = vector.shape_cast %777 : vector<8xf32> to vector<8x1xf32>
    %779 = tpu.reciprocal %778 {approx = true} : vector<8x1xf32> -> vector<8x1xf32>
    %780 = vector.broadcast %779 : vector<8x1xf32> to vector<8x8xf32>
    %781 = arith.mulf %776, %780 : vector<8x8xf32>
    %782 = arith.truncf %781 : vector<8x8xf32> to vector<8x8xbf16>
    %783 = arith.truncf %768 : vector<8x8xf32> to vector<8x8xbf16>
    %cst_198 = arith.constant dense<0.000000e+00> : vector<8x8xf32>
    %784 = tpu.matmul %782, %783, %cst_198 {dimension_numbers = #tpu.dot_dimension_numbers<[1], [0], [0], [1], [0, 0, 1, 1], [], []>} : vector<8x8xbf16>, vector<8x8xbf16>, vector<8x8xf32> -> vector<8x8xf32>
    %785 = vector.extract_strided_slice %744 {offsets = [0, 16], sizes = [8, 8], strides = [1, 1]} : vector<8x32xf32> to vector<8x8xf32>
    %786 = vector.extract_strided_slice %745 {offsets = [0, 16], sizes = [8, 8], strides = [1, 1]} : vector<8x32xf32> to vector<8x8xf32>
    %787 = vector.extract_strided_slice %746 {offsets = [0, 16], sizes = [8, 8], strides = [1, 1]} : vector<8x32xf32> to vector<8x8xf32>
    %788 = arith.truncf %785 : vector<8x8xf32> to vector<8x8xbf16>
    %789 = arith.truncf %786 : vector<8x8xf32> to vector<8x8xbf16>
    %cst_199 = arith.constant dense<0.000000e+00> : vector<8x8xf32>
    %790 = tpu.matmul %788, %789, %cst_199 {dimension_numbers = #tpu.dot_dimension_numbers<[1], [1], [0], [0], [0, 0, 1, 0], [], []>} : vector<8x8xbf16>, vector<8x8xbf16>, vector<8x8xf32> -> vector<8x8xf32>
    %cst_200 = arith.constant dense<0xFF800000> : vector<8xf32>
    %791 = vector.multi_reduction <maximumf>, %790, %cst_200 [1] : vector<8x8xf32> to vector<8xf32>
    %792 = vector.shape_cast %791 : vector<8xf32> to vector<8x1xf32>
    %793 = vector.broadcast %792 : vector<8x1xf32> to vector<8x8xf32>
    %794 = arith.subf %790, %793 : vector<8x8xf32>
    %795 = math.exp %794 : vector<8x8xf32>
    %cst_201 = arith.constant dense<0.000000e+00> : vector<8xf32>
    %796 = vector.multi_reduction <add>, %795, %cst_201 [1] : vector<8x8xf32> to vector<8xf32>
    %797 = vector.shape_cast %796 : vector<8xf32> to vector<8x1xf32>
    %798 = tpu.reciprocal %797 {approx = true} : vector<8x1xf32> -> vector<8x1xf32>
    %799 = vector.broadcast %798 : vector<8x1xf32> to vector<8x8xf32>
    %800 = arith.mulf %795, %799 : vector<8x8xf32>
    %801 = arith.truncf %800 : vector<8x8xf32> to vector<8x8xbf16>
    %802 = arith.truncf %787 : vector<8x8xf32> to vector<8x8xbf16>
    %cst_202 = arith.constant dense<0.000000e+00> : vector<8x8xf32>
    %803 = tpu.matmul %801, %802, %cst_202 {dimension_numbers = #tpu.dot_dimension_numbers<[1], [0], [0], [1], [0, 0, 1, 1], [], []>} : vector<8x8xbf16>, vector<8x8xbf16>, vector<8x8xf32> -> vector<8x8xf32>
    %804 = vector.extract_strided_slice %744 {offsets = [0, 24], sizes = [8, 8], strides = [1, 1]} : vector<8x32xf32> to vector<8x8xf32>
    %805 = vector.extract_strided_slice %745 {offsets = [0, 24], sizes = [8, 8], strides = [1, 1]} : vector<8x32xf32> to vector<8x8xf32>
    %806 = vector.extract_strided_slice %746 {offsets = [0, 24], sizes = [8, 8], strides = [1, 1]} : vector<8x32xf32> to vector<8x8xf32>
    %807 = arith.truncf %804 : vector<8x8xf32> to vector<8x8xbf16>
    %808 = arith.truncf %805 : vector<8x8xf32> to vector<8x8xbf16>
    %cst_203 = arith.constant dense<0.000000e+00> : vector<8x8xf32>
    %809 = tpu.matmul %807, %808, %cst_203 {dimension_numbers = #tpu.dot_dimension_numbers<[1], [1], [0], [0], [0, 0, 1, 0], [], []>} : vector<8x8xbf16>, vector<8x8xbf16>, vector<8x8xf32> -> vector<8x8xf32>
    %cst_204 = arith.constant dense<0xFF800000> : vector<8xf32>
    %810 = vector.multi_reduction <maximumf>, %809, %cst_204 [1] : vector<8x8xf32> to vector<8xf32>
    %811 = vector.shape_cast %810 : vector<8xf32> to vector<8x1xf32>
    %812 = vector.broadcast %811 : vector<8x1xf32> to vector<8x8xf32>
    %813 = arith.subf %809, %812 : vector<8x8xf32>
    %814 = math.exp %813 : vector<8x8xf32>
    %cst_205 = arith.constant dense<0.000000e+00> : vector<8xf32>
    %815 = vector.multi_reduction <add>, %814, %cst_205 [1] : vector<8x8xf32> to vector<8xf32>
    %816 = vector.shape_cast %815 : vector<8xf32> to vector<8x1xf32>
    %817 = tpu.reciprocal %816 {approx = true} : vector<8x1xf32> -> vector<8x1xf32>
    %818 = vector.broadcast %817 : vector<8x1xf32> to vector<8x8xf32>
    %819 = arith.mulf %814, %818 : vector<8x8xf32>
    %820 = arith.truncf %819 : vector<8x8xf32> to vector<8x8xbf16>
    %821 = arith.truncf %806 : vector<8x8xf32> to vector<8x8xbf16>
    %cst_206 = arith.constant dense<0.000000e+00> : vector<8x8xf32>
    %822 = tpu.matmul %820, %821, %cst_206 {dimension_numbers = #tpu.dot_dimension_numbers<[1], [0], [0], [1], [0, 0, 1, 1], [], []>} : vector<8x8xbf16>, vector<8x8xbf16>, vector<8x8xf32> -> vector<8x8xf32>
    %823 = tpu.concatenate %765, %784, %803, %822 in 1 : vector<8x8xf32>, vector<8x8xf32>, vector<8x8xf32>, vector<8x8xf32> -> vector<8x32xf32>
    %824 = tpu.concatenate %743, %823 in 0 : vector<8x32xf32>, vector<8x32xf32> -> vector<16x32xf32>
    %c1_207 = arith.constant 1 : index
    %c0_208 = arith.constant 0 : index
    %c0_209 = arith.constant 0 : index
    %825 = vector.load %arg10[%c1_207, %c0_208, %c0_209] : memref<2x32x32xbf16, #tpu.memory_space<vmem>>, vector<1x32x32xbf16>
    %826 = vector.shape_cast %825 : vector<1x32x32xbf16> to vector<32x32xbf16>
    %827 = arith.truncf %824 : vector<16x32xf32> to vector<16x32xbf16>
    %cst_210 = arith.constant dense<0.000000e+00> : vector<16x32xf32>
    %828 = tpu.matmul %827, %826, %cst_210 {dimension_numbers = #tpu.dot_dimension_numbers<[1], [1], [0], [0], [0, 0, 1, 0], [], []>} : vector<16x32xbf16>, vector<32x32xbf16>, vector<16x32xf32> -> vector<16x32xf32>
    %829 = arith.addf %639, %828 : vector<16x32xf32>
    %c1_211 = arith.constant 1 : index
    %c0_212 = arith.constant 0 : index
    %c0_213 = arith.constant 0 : index
    %830 = vector.load %arg11[%c1_211, %c0_212, %c0_213] : memref<2x1x32xf32, #tpu.memory_space<vmem>>, vector<1x1x32xf32>
    %831 = vector.shape_cast %830 : vector<1x1x32xf32> to vector<1x32xf32>
    %832 = arith.mulf %829, %829 : vector<16x32xf32>
    %cst_214 = arith.constant dense<0.000000e+00> : vector<16xf32>
    %833 = vector.multi_reduction <add>, %832, %cst_214 [1] : vector<16x32xf32> to vector<16xf32>
    %834 = vector.shape_cast %833 : vector<16xf32> to vector<16x1xf32>
    %cst_215 = arith.constant 3.200000e+01 : f32
    %835 = vector.broadcast %cst_215 : f32 to vector<16x1xf32>
    %836 = arith.divf %834, %835 : vector<16x1xf32>
    %837 = vector.broadcast %831 : vector<1x32xf32> to vector<16x32xf32>
    %838 = arith.mulf %837, %829 : vector<16x32xf32>
    %cst_216 = arith.constant 9.99999997E-7 : f32
    %839 = vector.broadcast %cst_216 : f32 to vector<16x1xf32>
    %840 = arith.addf %836, %839 : vector<16x1xf32>
    %841 = math.rsqrt %840 : vector<16x1xf32>
    %842 = vector.broadcast %841 : vector<16x1xf32> to vector<16x32xf32>
    %843 = arith.mulf %838, %842 : vector<16x32xf32>
    %c1_217 = arith.constant 1 : index
    %c0_218 = arith.constant 0 : index
    %c0_219 = arith.constant 0 : index
    %844 = vector.load %arg12[%c1_217, %c0_218, %c0_219] : memref<2x64x32xbf16, #tpu.memory_space<vmem>>, vector<1x64x32xbf16>
    %845 = vector.shape_cast %844 : vector<1x64x32xbf16> to vector<64x32xbf16>
    %846 = arith.truncf %843 : vector<16x32xf32> to vector<16x32xbf16>
    %cst_220 = arith.constant dense<0.000000e+00> : vector<16x64xf32>
    %847 = tpu.matmul %846, %845, %cst_220 {dimension_numbers = #tpu.dot_dimension_numbers<[1], [1], [0], [0], [0, 0, 1, 0], [], []>} : vector<16x32xbf16>, vector<64x32xbf16>, vector<16x64xf32> -> vector<16x64xf32>
    %cst_221 = arith.constant 0.000000e+00 : f32
    %848 = vector.broadcast %cst_221 : f32 to vector<16x64xf32>
    %849 = arith.maximumf %847, %848 : vector<16x64xf32>
    %c1_222 = arith.constant 1 : index
    %c0_223 = arith.constant 0 : index
    %c0_224 = arith.constant 0 : index
    %850 = vector.load %arg13[%c1_222, %c0_223, %c0_224] : memref<2x32x64xbf16, #tpu.memory_space<vmem>>, vector<1x32x64xbf16>
    %851 = vector.shape_cast %850 : vector<1x32x64xbf16> to vector<32x64xbf16>
    %852 = arith.truncf %849 : vector<16x64xf32> to vector<16x64xbf16>
    %cst_225 = arith.constant dense<0.000000e+00> : vector<16x32xf32>
    %853 = tpu.matmul %852, %851, %cst_225 {dimension_numbers = #tpu.dot_dimension_numbers<[1], [1], [0], [0], [0, 0, 1, 0], [], []>} : vector<16x64xbf16>, vector<32x64xbf16>, vector<16x32xf32> -> vector<16x32xf32>
    %854 = arith.addf %829, %853 : vector<16x32xf32>
    %c0_226 = arith.constant 0 : index
    %c0_227 = arith.constant 0 : index
    %855 = vector.load %arg14[%c0_226, %c0_227] : memref<1x32xf32, #tpu.memory_space<vmem>>, vector<1x32xf32>
    %856 = arith.mulf %854, %854 : vector<16x32xf32>
    %cst_228 = arith.constant dense<0.000000e+00> : vector<16xf32>
    %857 = vector.multi_reduction <add>, %856, %cst_228 [1] : vector<16x32xf32> to vector<16xf32>
    %858 = vector.shape_cast %857 : vector<16xf32> to vector<16x1xf32>
    %cst_229 = arith.constant 3.200000e+01 : f32
    %859 = vector.broadcast %cst_229 : f32 to vector<16x1xf32>
    %860 = arith.divf %858, %859 : vector<16x1xf32>
    %861 = vector.broadcast %855 : vector<1x32xf32> to vector<16x32xf32>
    %862 = arith.mulf %861, %854 : vector<16x32xf32>
    %cst_230 = arith.constant 9.99999997E-7 : f32
    %863 = vector.broadcast %cst_230 : f32 to vector<16x1xf32>
    %864 = arith.addf %860, %863 : vector<16x1xf32>
    %865 = math.rsqrt %864 : vector<16x1xf32>
    %866 = vector.broadcast %865 : vector<16x1xf32> to vector<16x32xf32>
    %867 = arith.mulf %862, %866 : vector<16x32xf32>
    %c0_231 = arith.constant 0 : index
    %c0_232 = arith.constant 0 : index
    %868 = vector.load %arg15[%c0_231, %c0_232] : memref<128x32xbf16, #tpu.memory_space<vmem>>, vector<128x32xbf16>
    %869 = arith.truncf %867 : vector<16x32xf32> to vector<16x32xbf16>
    %cst_233 = arith.constant dense<0.000000e+00> : vector<16x128xf32>
    %870 = tpu.matmul %869, %868, %cst_233 {dimension_numbers = #tpu.dot_dimension_numbers<[1], [1], [0], [0], [0, 0, 1, 0], [], []>} : vector<16x32xbf16>, vector<128x32xbf16>, vector<16x128xf32> -> vector<16x128xf32>
    %c0_234 = arith.constant 0 : index
    %c0_235 = arith.constant 0 : index
    %871 = vector.load %arg16[%c0_234, %c0_235] : memref<16x128xf32, #tpu.memory_space<vmem>>, vector<16x128xf32>
    tpu.vector_store %arg16[%c0_234, %c0_235], %870 {strides = array<i32>} : memref<16x128xf32, #tpu.memory_space<vmem>>, vector<16x128xf32>,
    return
  }
  func.func @transform_0(%arg0: i32) -> (i32, i32) {
    %c0_i32 = arith.constant 0 : i32
    %c0_i32_0 = arith.constant 0 : i32
    %c0_i32_1 = arith.constant 0 : i32
    return %c0_i32, %c0_i32_0 : i32, i32
  }
  func.func @transform_1(%arg0: i32) -> (i32, i32) {
    %c0_i32 = arith.constant 0 : i32
    %c0_i32_0 = arith.constant 0 : i32
    %c0_i32_1 = arith.constant 0 : i32
    return %c0_i32, %c0_i32_0 : i32, i32
  }
  func.func @transform_2(%arg0: i32) -> (i32, i32, i32) {
    %c0_i32 = arith.constant 0 : i32
    %c0_i32_0 = arith.constant 0 : i32
    %c0_i32_1 = arith.constant 0 : i32
    %c0_i32_2 = arith.constant 0 : i32
    return %c0_i32, %c0_i32_0, %c0_i32_1 : i32, i32, i32
  }
  func.func @transform_3(%arg0: i32) -> (i32, i32, i32) {
    %c0_i32 = arith.constant 0 : i32
    %c0_i32_0 = arith.constant 0 : i32
    %c0_i32_1 = arith.constant 0 : i32
    %c0_i32_2 = arith.constant 0 : i32
    return %c0_i32, %c0_i32_0, %c0_i32_1 : i32, i32, i32
  }
  func.func @transform_4(%arg0: i32) -> (i32, i32, i32) {
    %c0_i32 = arith.constant 0 : i32
    %c0_i32_0 = arith.constant 0 : i32
    %c0_i32_1 = arith.constant 0 : i32
    %c0_i32_2 = arith.constant 0 : i32
    return %c0_i32, %c0_i32_0, %c0_i32_1 : i32, i32, i32
  }
  func.func @transform_5(%arg0: i32) -> (i32, i32, i32) {
    %c0_i32 = arith.constant 0 : i32
    %c0_i32_0 = arith.constant 0 : i32
    %c0_i32_1 = arith.constant 0 : i32
    %c0_i32_2 = arith.constant 0 : i32
    return %c0_i32, %c0_i32_0, %c0_i32_1 : i32, i32, i32
  }
  func.func @transform_6(%arg0: i32) -> (i32, i32, i32) {
    %c0_i32 = arith.constant 0 : i32
    %c0_i32_0 = arith.constant 0 : i32
    %c0_i32_1 = arith.constant 0 : i32
    %c0_i32_2 = arith.constant 0 : i32
    return %c0_i32, %c0_i32_0, %c0_i32_1 : i32, i32, i32
  }
  func.func @transform_7(%arg0: i32) -> (i32, i32, i32) {
    %c0_i32 = arith.constant 0 : i32
    %c0_i32_0 = arith.constant 0 : i32
    %c0_i32_1 = arith.constant 0 : i32
    %c0_i32_2 = arith.constant 0 : i32
    return %c0_i32, %c0_i32_0, %c0_i32_1 : i32, i32, i32
  }
  func.func @transform_8(%arg0: i32) -> (i32, i32, i32) {
    %c0_i32 = arith.constant 0 : i32
    %c0_i32_0 = arith.constant 0 : i32
    %c0_i32_1 = arith.constant 0 : i32
    %c0_i32_2 = arith.constant 0 : i32
    return %c0_i32, %c0_i32_0, %c0_i32_1 : i32, i32, i32
  }
  func.func @transform_9(%arg0: i32) -> (i32, i32, i32) {
    %c0_i32 = arith.constant 0 : i32
    %c0_i32_0 = arith.constant 0 : i32
    %c0_i32_1 = arith.constant 0 : i32
    %c0_i32_2 = arith.constant 0 : i32
    return %c0_i32, %c0_i32_0, %c0_i32_1 : i32, i32, i32
  }
  func.func @transform_10(%arg0: i32) -> (i32, i32, i32) {
    %c0_i32 = arith.constant 0 : i32
    %c0_i32_0 = arith.constant 0 : i32
    %c0_i32_1 = arith.constant 0 : i32
    %c0_i32_2 = arith.constant 0 : i32
    return %c0_i32, %c0_i32_0, %c0_i32_1 : i32, i32, i32
  }
  func.func @transform_11(%arg0: i32) -> (i32, i32, i32) {
    %c0_i32 = arith.constant 0 : i32
    %c0_i32_0 = arith.constant 0 : i32
    %c0_i32_1 = arith.constant 0 : i32
    %c0_i32_2 = arith.constant 0 : i32
    return %c0_i32, %c0_i32_0, %c0_i32_1 : i32, i32, i32
  }
  func.func @transform_12(%arg0: i32) -> (i32, i32, i32) {
    %c0_i32 = arith.constant 0 : i32
    %c0_i32_0 = arith.constant 0 : i32
    %c0_i32_1 = arith.constant 0 : i32
    %c0_i32_2 = arith.constant 0 : i32
    return %c0_i32, %c0_i32_0, %c0_i32_1 : i32, i32, i32
  }
  func.func @transform_13(%arg0: i32) -> (i32, i32) {
    %c0_i32 = arith.constant 0 : i32
    %c0_i32_0 = arith.constant 0 : i32
    %c0_i32_1 = arith.constant 0 : i32
    return %c0_i32, %c0_i32_0 : i32, i32
  }
  func.func @transform_14(%arg0: i32) -> (i32, i32) {
    %c0_i32 = arith.constant 0 : i32
    %c0_i32_0 = arith.constant 0 : i32
    %c0_i32_1 = arith.constant 0 : i32
    return %c0_i32, %c0_i32_0 : i32, i32
  }
  func.func @transform_15(%arg0: i32) -> (i32, i32) {
    %c0_i32 = arith.constant 0 : i32
    %c0_i32_0 = arith.constant 0 : i32
    %c0_i32_1 = arith.constant 0 : i32
    return %c0_i32, %c0_i32_0 : i32, i32
  }
}

</mosaic_0001>

<bundles_post_ra>
// kernel: tpu_custom_call.1
= control target key start
LH: loop header
LB: loop body
LE: loop exit
PB: predicated region body
PF: predicated region fallthrough
CT: control target
= control target key end

     0   :  { %vm63_vm0 = vcmask 261120   ;;  %v6359_v4 = vmov 0.0   ;;  %vm6360_vm1 = vmmov 0   ;;  %s7621_s0 = inlined_call_operand.vmem [shape: f32[16,32], index: 0, kind: input, shape index: {}]   ;;  %s7622_s1 = inlined_call_operand.vmem [shape: f32[16,32], index: 1, kind: input, shape index: {}]   ;;  %s7623_s2 = inlined_call_operand.vmem [shape: f32[4,8,8], index: 2, kind: input, shape index: {}]   ;;  %s7624_s3 = inlined_call_operand.vmem [shape: f32[2,1,32], index: 3, kind: input, shape index: {}]   ;;  %s7625_s4 = inlined_call_operand.vmem [shape: bf16[2,96,32], index: 4, kind: input, shape index: {}]   ;;  %s7626_s5 = inlined_call_operand.vmem [shape: bf16[2,32,32], index: 5, kind: input, shape index: {}]   ;;  %s7627_s6 = inlined_call_operand.vmem [shape: f32[2,1,32], index: 6, kind: input, shape index: {}]   ;;  %s7628_s7 = inlined_call_operand.vmem [shape: bf16[2,32,32], index: 7, kind: input, shape index: {}]   ;;  %s7629_s8 = inlined_call_operand.vmem [shape: bf16[2,64,32], index: 8, kind: input, shape index: {}]   ;;  %s7630_s9 = inlined_call_operand.vmem [shape: bf16[2,32,32], index: 9, kind: input, shape index: {}]   ;;  %s7631_s10 = inlined_call_operand.vmem [shape: f32[2,1,32], index: 10, kind: input, shape index: {}]   ;;  %s7632_s11 = inlined_call_operand.vmem [shape: bf16[2,64,32], index: 11, kind: input, shape index: {}]   ;;  %s7633_s12 = inlined_call_operand.vmem [shape: bf16[2,32,64], index: 12, kind: input, shape index: {}]   ;;  %s7634_s13 = inlined_call_operand.vmem [shape: f32[1,32], index: 13, kind: input, shape index: {}]   ;;  %s7635_s14 = inlined_call_operand.vmem [shape: bf16[128,32], index: 14, kind: input, shape index: {}]   ;;  %s7636_s15 = inlined_call_operand.hbm [shape: f32[16,128], index: 15, kind: output, shape index: {}]  }
   0x1   :  { %v52_v0 = vld [vmem:[%s7621_s0] sm:$0xff]  ;;  %v53_v1 = vld [vmem:[%s7621_s0 + $0x8] sm:$0xff]  ;;  %5497 = vmatprep.subr.bf16.mxu0 %v6359_v4  ;;  %5513 = vmatprep.subr.bf16.mxu1 %v6359_v4  ;;  %v6125_v11 = vld [vmem:[%s7625_s4 + $0x18] sm:$0xff]  }
   0x2   :  { %v61_v2 = vmul.f32 %v52_v0, %v52_v0  ;;  %v62_v3 = vmul.f32 %v53_v1, %v53_v1  ;;  %v6123_v5 = vld [vmem:[%s7625_s4 + $0x28] sm:$0xff]   ;;  %v6124_v6 = vld [vmem:[%s7625_s4 + $0x20] sm:$0xff]   ;;  %v143_v12 = vsel %vm63_vm0, %v6125_v11, 0  ;;  %v6126_v13 = vld [vmem:[%s7625_s4 + $0x10] sm:$0xff]   ;;  %5509 = vmatprep.mubr.msk.bf16.mxu0 %vm6360_vm1, %v6359_v4  ;;  %5515 = vmatprep.mubr.msk.bf16.mxu1 %vm6360_vm1, %v6359_v4 }
   0x3   :  { %v149_v8 = vsel %vm63_vm0, %v6123_v5, 0  ;;  %v146_v10 = vsel %vm63_vm0, %v6124_v6, 0  ;;  %v6127_v14 = vld [vmem:[%s7625_s4 + $0x8] sm:$0xff]   ;;  %v140_v15 = vsel %vm63_vm0, %v6126_v13, 0  ;;  %v6128_v17 = vld [vmem:[%s7625_s4] sm:$0xff]  }
   0x4   :  { %v64_v7 = vsel %vm63_vm0, %v61_v2, 0.0  ;;  %5498 = vmatpush3.bf16.xpose.msra.mxu0 %v149_v8  ;;  %v67_v9 = vsel %vm63_vm0, %v62_v3, 0.0  ;;  %v137_v16 = vsel %vm63_vm0, %v6127_v14, 0 }
   0x5   :  { %65 = vadd.xlane.f32.xlu0 %v64_v7  ;;  %5499 = vmatprep.subr.bf16.mxu0 %v6359_v4 }
   0x9   :  { %68 = vadd.xlane.f32.xlu0 %v67_v9 }
   0xc   :  { %5500 = vmatpush3.bf16.xpose.msra.mxu0 %v146_v10 }
   0xd   :  { %5501 = vmatprep.subr.bf16.mxu0 %v6359_v4 }
  0x14   :  { %5502 = vmatpush3.bf16.xpose.msra.mxu0 %v143_v12 }
  0x15   :  { %5503 = vmatprep.subr.bf16.mxu0 %v6359_v4 }
  0x1c   :  { %5504 = vmatpush3.bf16.xpose.msra.mxu0 %v140_v15 }
  0x1d   :  { %5505 = vmatprep.subr.bf16.mxu0 %v6359_v4 }
  0x24   :  { %5506 = vmatpush3.bf16.xpose.msra.mxu0 %v137_v16 }
  0x25   :  { %5507 = vmatprep.subr.bf16.mxu0 %v6359_v4 }
  0x26   :  { %20 = vsyncpa [#allocation3], 0  ;;  %v134_v18 = vsel %vm63_vm0, %v6128_v17, 0  ;;  %v5117_v25 = vld [vmem:[%s7624_s3] ss:$0 sm:$0xff]  ;;  %s7643_s21 = smov 64  }
  0x27   :  { %v79_v26 = vmul.f32 %v5117_v25, %v52_v0  ;;  %v80_v27 = vmul.f32 %v5117_v25, %v53_v1  ;;  %s6362_s22 = smov 96   ;;  %vm196_vm2 = vcmask 64512   ;;  %vm260_vm3 = vcmask 1043456   ;;  %v6526_v42 = vld [vmem:[%s7623_s2] sm:$0xff]  ;;  %s6363_s25 = smov 88   ;;  %v6548_v1 = vld [vmem:[%s7623_s2 + $0x8] sm:$0xff] }
  0x28   :  { %s6364_s26 = smov 120   ;;  %s7641_s29 = smov 56   ;;  %vm647_vm4 = vcmask 130048   ;;  %vm649_vm5 = vcmask 195584   ;;  %vm2452_vm6 = vcmask 523264  }
  0x29   :  { %s6366_s30 = smov 80   ;;  %s6367_s16 = smov 112  }
  0x2a   :  { %s6368_s17 = smov 72   ;;  %s6369_s18 = smov 104  }
  0x2b   :  { %s7639_s27 = smov 48   ;;  %s7637_s28 = smov 40  }
  0x2c   :  { %5508 = vmatpush3.bf16.xpose.msra.mxu0 %v134_v18  ;;  %s6372_s23 = smov 8   ;;  %s7647_s19 = smov 16  }
  0x2d   :  { %5549 = vmatprep.subr.bf16.mxu0 %v6359_v4  ;;  %s7645_s20 = smov 24   ;;  %s7650_s24 = smov 24  }
  0x8e   :  { %v66_v19 = vpop.xlane.xlu0 %65 }
  0x8f   :  { %v71_v20 = vmul.f32 0.03125, %v66_v19 }
  0x91   :  { %v81_v21 = vadd.f32 1e-06, %v71_v20 }
  0x92   :  { %v69_v22 = vpop.xlane.xlu0 %68 }
  0x93   :  { %v72_v23 = vmul.f32 0.03125, %v69_v22  ;;  %6175 = vrsqrt.f32 %v81_v21 }
  0x95   :  { %v82_v24 = vadd.f32 1e-06, %v72_v23 }
  0x97   :  { %6177 = vrsqrt.f32 %v82_v24 }
  0xa0   :  { %v6176_v28 = vpop.eup %6175 }
  0xa1   :  { %v85_v30 = vmul.f32 %v6176_v28, %v79_v26 }
  0xa4   :  { %v6178_v29 = vpop.eup %6177 }
  0xa5   :  { %v86_v31 = vmul.f32 %v6178_v29, %v80_v27 }
  0xa7   :  { %v99_v32 = vpack.c.bf16 %v86_v31, %v85_v30 }
  0xa9   :  { %5510 = vmatmul.mubr.msk.bf16.vlgmr.msra.gmra.mxu0 %vm63_vm0, %v99_v32 }
  0xaa   :  { %5551 = vmatprep.mubr.msk.bf16.mxu0 %vm6360_vm1, %v6359_v4 }
 0x169   :  { %v185_v33 = vpop.f32.mrf.mxu0 }
 0x16a   :  { %v6507_v34 = vpack.c.bf16 %v185_v33, %v185_v33 }
 0x16b   :  { %v5511_v35 = vpop.f32.mrf.mxu0 }
 0x16c   :  { %255 = vrot.lane.b32.xlu0 %v6507_v34, %s7643_s21  ;;  %194 = vrot.lane.b32.xlu1 %v6507_v34, %s6362_s22 }
 0x16d   :  { %v6513_v36 = vpop.f32.mrf.mxu0 }
 0x16e   :  { %v6562_v9 = vpack.c.bf16 %v6513_v36, %v6513_v36 }
 0x16f   :  { %v5512_v37 = vpop.f32.mrf.mxu0 }
 0x1de   :  { %v195_v38 = vpop.permute.xlu1 %194  ;;  %v256_v40 = vpop.permute.xlu0 %255 }
 0x1df   :  { %v201_v39 = vsel %vm196_vm2, %v195_v38, 0  ;;  %v262_v41 = vsel %vm260_vm3, %v256_v40, 0 }
 0x1e0   :  { %5514 = vmatpush3.bf16.xpose.msra.mxu1 %v201_v39  ;;  %v59_v39 = vld [vmem:[%s7623_s2 + $0x18] sm:$0xff] }
 0x1e1   :  { %5519 = vmatprep.subr.bf16.mxu1 %v6359_v4 }
 0x1e7   :  { %5516 = vmatmul.mubr.msk.bf16.vlgmr.msra.gmra.mxu1 %vm196_vm2, %v6507_v34 }
 0x1e8   :  { %5520 = vmatpush3.bf16.msra.mxu1 %v262_v41  ;;  %5521 = vmatprep.mubr.msk.bf16.mxu1 %vm6360_vm1, %v6359_v4 }
 0x1e9   :  { %5525 = vmatprep.subr.bf16.mxu1 %v6359_v4 }
 0x2a7   :  { %v237_v43 = vpop.f32.mrf.mxu1 }
 0x2a8   :  { %v238_v44 = vadd.f32 %v237_v43, %v6526_v42 }
 0x2a9   :  { %v5517_v45 = vpop.f32.mrf.mxu1 }
 0x2aa   :  { %v243_v46 = vsel %vm196_vm2, %v238_v44, -inf }
 0x2ab   :  { %244 = vmax.xlane.f32.xlu1 %v243_v46  ;;  %v240_v47 = vpop.f32.mrf.mxu1 }
 0x2ad   :  { %v5518_v48 = vpop.f32.mrf.mxu1 }
 0x334   :  { %v245_v49 = vpop.xlane.xlu1 %244 }
 0x335   :  { %v246_v50 = vsub.f32 %v238_v44, %v245_v49 }
 0x337   :  { %v247_v51 = vmul.f32 1.442695, %v246_v50 }
 0x339   :  { %6179 = vpow2.f32 %v247_v51 }
 0x346   :  { %v6180_v52 = vpop.eup %6179 }
 0x347   :  { %v249_v53 = vsel %vm196_vm2, %v6180_v52, 0.0 }
 0x348   :  { %250 = vadd.xlane.f32.xlu0 %v249_v53 }
 0x35e   :  { %306 = vrot.lane.b32.xlu0 %v6507_v34, %s6363_s25 }
 0x362   :  { %304 = vrot.lane.b32.xlu0 %v6507_v34, %s6364_s26 }
 0x3d1   :  { %v251_v54 = vpop.xlane.xlu0 %250 }
 0x3d2   :  { %6181 = vrcp.f32 %v251_v54 }
 0x3d5   :  { %v307_v57 = vpop.permute.xlu0 %306 }
 0x3d6   :  { %v312_v59 = vsel %vm196_vm2, %v307_v57, 0 }
 0x3d9   :  { %v305_v60 = vpop.permute.xlu0 %304 }
 0x3df   :  { %v6182_v55 = vpop.eup %6181 }
 0x3e0   :  { %v253_v56 = vmul.f32 %v6182_v55, %v6180_v52 }
 0x3e2   :  { %v254_v58 = vpack.c.bf16 %v253_v56, %v253_v56 }
 0x3e4   :  { %5522 = vmatmul.mubr.msk.bf16.vlgmr.msra.gmra.mxu1 %vm196_vm2, %v254_v58 }
 0x3e5   :  { %5526 = vmatpush3.bf16.xpose.msra.mxu1 %v312_v59  ;;  %5527 = vmatprep.mubr.msk.bf16.mxu1 %vm6360_vm1, %v6359_v4 }
 0x3e6   :  { %5531 = vmatprep.subr.bf16.mxu1 %v6359_v4 }
 0x3ec   :  { %5528 = vmatmul.mubr.msk.bf16.vlgmr.msra.gmra.mxu1 %vm196_vm2, %v305_v60  ;;  %v58_v60 = vld [vmem:[%s7623_s2 + $0x10] sm:$0xff] }
 0x3ed   :  { %5533 = vmatprep.mubr.msk.bf16.mxu1 %vm6360_vm1, %v6359_v4 }
 0x4a4   :  { %v6543_v61 = vpop.f32.mrf.mxu1 }
 0x4a6   :  { %v5523_v62 = vpop.f32.mrf.mxu1 }
 0x4a8   :  { %v301_v63 = vpop.f32.mrf.mxu1 }
 0x4aa   :  { %v5524_v0 = vpop.f32.mrf.mxu1 }
 0x4ac   :  { %v348_v2 = vpop.f32.mrf.mxu1 }
 0x4ad   :  { %v349_v3 = vadd.f32 %v348_v2, %v6548_v1 }
 0x4ae   :  { %v5529_v5 = vpop.f32.mrf.mxu1 }
 0x4af   :  { %v354_v6 = vsel %vm196_vm2, %v349_v3, -inf }
 0x4b0   :  { %355 = vmax.xlane.f32.xlu1 %v354_v6  ;;  %v351_v7 = vpop.f32.mrf.mxu1 }
 0x4b2   :  { %v5530_v8 = vpop.f32.mrf.mxu1 }
 0x4c1   :  { %366 = vrot.lane.b32.xlu1 %v6507_v34, %s7641_s29 }
 0x4c5   :  { %416 = vrot.lane.b32.xlu1 %v6507_v34, %s6366_s30 }
 0x4c9   :  { %414 = vrot.lane.b32.xlu1 %v6507_v34, %s6367_s16 }
 0x4cd   :  { %526 = vrot.lane.b32.xlu1 %v6507_v34, %s6368_s17 }
 0x4d1   :  { %653 = vrot.lane.b32.xlu1 %v6562_v9, %s6362_s22 }
 0x4d5   :  { %763 = vrot.lane.b32.xlu1 %v6562_v9, %s6363_s25 }
 0x4d9   :  { %761 = vrot.lane.b32.xlu1 %v6562_v9, %s6364_s26 }
 0x4dd   :  { %873 = vrot.lane.b32.xlu1 %v6562_v9, %s6366_s30 }
 0x4e1   :  { %871 = vrot.lane.b32.xlu1 %v6562_v9, %s6367_s16 }
 0x4e5   :  { %983 = vrot.lane.b32.xlu1 %v6562_v9, %s6368_s17 }
 0x539   :  { %v356_v10 = vpop.xlane.xlu1 %355 }
 0x53a   :  { %v357_v11 = vsub.f32 %v349_v3, %v356_v10 }
 0x53c   :  { %v358_v12 = vmul.f32 1.442695, %v357_v11 }
 0x53d   :  { %v367_v13 = vpop.permute.xlu1 %366 }
 0x53e   :  { %6183 = vpow2.f32 %v358_v12  ;;  %v372_v14 = vsel %vm260_vm3, %v367_v13, 0 }
 0x53f   :  { %5532 = vmatpush3.bf16.msra.mxu1 %v372_v14 }
 0x540   :  { %5537 = vmatprep.subr.bf16.mxu1 %v6359_v4 }
 0x541   :  { %v417_v15 = vpop.permute.xlu1 %416 }
 0x542   :  { %v422_v32 = vsel %vm196_vm2, %v417_v15, 0 }
 0x545   :  { %v415_v16 = vpop.permute.xlu1 %414 }
 0x549   :  { %v527_v17 = vpop.permute.xlu1 %526 }
 0x54a   :  { %v532_v18 = vsel %vm196_vm2, %v527_v17, 0 }
 0x54b   :  { %v6184_v19 = vpop.eup %6183  ;;  %5550 = vmatpush3.bf16.xpose.msra.mxu0 %v532_v18 }
 0x54c   :  { %v360_v20 = vsel %vm196_vm2, %v6184_v19, 0.0  ;;  %5561 = vmatprep.subr.bf16.mxu0 %v6359_v4 }
 0x54d   :  { %361 = vadd.xlane.f32.xlu0 %v360_v20  ;;  %v654_v21 = vpop.permute.xlu1 %653 }
 0x54e   :  { %v659_v25 = vsel %vm196_vm2, %v654_v21, 0 }
 0x551   :  { %v764_v23 = vpop.permute.xlu1 %763 }
 0x552   :  { %v769_v27 = vsel %vm196_vm2, %v764_v23, 0 }
 0x555   :  { %v762_v26 = vpop.permute.xlu1 %761 }
 0x559   :  { %v874_v29 = vpop.permute.xlu1 %873 }
 0x55a   :  { %v879_v35 = vsel %vm196_vm2, %v874_v29, 0 }
 0x55d   :  { %v872_v33 = vpop.permute.xlu1 %871 }
 0x561   :  { %v984_v36 = vpop.permute.xlu1 %983 }
 0x562   :  { %v989_v37 = vsel %vm196_vm2, %v984_v36, 0 }
 0x563   :  { %524 = vrot.lane.b32.xlu0 %v6507_v34, %s6369_s18 }
 0x567   :  { %981 = vrot.lane.b32.xlu0 %v6562_v9, %s6369_s18 }
 0x5d6   :  { %v362_v22 = vpop.xlane.xlu0 %361 }
 0x5d7   :  { %6185 = vrcp.f32 %v362_v22 }
 0x5da   :  { %v525_v24 = vpop.permute.xlu0 %524 }
 0x5db   :  { %5552 = vmatmul.mubr.msk.bf16.vlgmr.msra.gmra.mxu0 %vm196_vm2, %v525_v24 }
 0x5dc   :  { %5562 = vmatpush3.bf16.xpose.msra.mxu0 %v659_v25  ;;  %5563 = vmatprep.mubr.msk.bf16.mxu0 %vm6360_vm1, %v6359_v4 }
 0x5dd   :  { %5573 = vmatprep.subr.bf16.mxu0 %v6359_v4 }
 0x5de   :  { %v982_v38 = vpop.permute.xlu0 %981 }
 0x5e3   :  { %5564 = vmatmul.mubr.msk.bf16.vlgmr.msra.gmra.mxu0 %vm196_vm2, %v6562_v9 }
 0x5e4   :  { %v6186_v28 = vpop.eup %6185  ;;  %5574 = vmatpush3.bf16.xpose.msra.mxu0 %v769_v27  ;;  %5575 = vmatprep.mubr.msk.bf16.mxu0 %vm6360_vm1, %v6359_v4 }
 0x5e5   :  { %v364_v30 = vmul.f32 %v6186_v28, %v6184_v19  ;;  %5585 = vmatprep.subr.bf16.mxu0 %v6359_v4 }
 0x5e7   :  { %v365_v31 = vpack.c.bf16 %v364_v30, %v364_v30 }
 0x5e9   :  { %5534 = vmatmul.mubr.msk.bf16.vlgmr.msra.gmra.mxu1 %vm196_vm2, %v365_v31 }
 0x5ea   :  { %5538 = vmatpush3.bf16.xpose.msra.mxu1 %v422_v32  ;;  %5539 = vmatprep.mubr.msk.bf16.mxu1 %vm6360_vm1, %v6359_v4 }
 0x5eb   :  { %5576 = vmatmul.mubr.msk.bf16.vlgmr.msra.gmra.mxu0 %vm196_vm2, %v762_v26  ;;  %5543 = vmatprep.subr.bf16.mxu1 %v6359_v4 }
 0x5ec   :  { %5586 = vmatpush3.bf16.xpose.msra.mxu0 %v879_v35  ;;  %5587 = vmatprep.mubr.msk.bf16.mxu0 %vm6360_vm1, %v6359_v4 }
 0x5ed   :  { %5597 = vmatprep.subr.bf16.mxu0 %v6359_v4 }
 0x5f1   :  { %5540 = vmatmul.mubr.msk.bf16.vlgmr.msra.gmra.mxu1 %vm196_vm2, %v415_v16 }
 0x5f2   :  { %5545 = vmatprep.mubr.msk.bf16.mxu1 %vm6360_vm1, %v6359_v4 }
 0x5f3   :  { %5588 = vmatmul.mubr.msk.bf16.vlgmr.msra.gmra.mxu0 %vm196_vm2, %v872_v33 }
 0x5f4   :  { %5598 = vmatpush3.bf16.xpose.msra.mxu0 %v989_v37  ;;  %5599 = vmatprep.mubr.msk.bf16.mxu0 %vm6360_vm1, %v6359_v4 }
 0x5f5   :  { %5609 = vmatprep.subr.bf16.mxu0 %v6359_v4 }
 0x5fb   :  { %5600 = vmatmul.mubr.msk.bf16.vlgmr.msra.gmra.mxu0 %vm196_vm2, %v982_v38 }
 0x5fc   :  { %5613 = vmatprep.mubr.msk.bf16.mxu0 %vm6360_vm1, %v6359_v4 }
 0x69b   :  { %v568_v40 = vpop.f32.mrf.mxu0 }
 0x69c   :  { %v569_v41 = vadd.f32 %v568_v40, %v59_v39 }
 0x69d   :  { %v5553_v43 = vpop.f32.mrf.mxu0 }
 0x69e   :  { %v574_v44 = vsel %vm196_vm2, %v569_v41, -inf }
 0x69f   :  { %575 = vmax.xlane.f32.xlu0 %v574_v44  ;;  %v571_v45 = vpop.f32.mrf.mxu0 }
 0x6a1   :  { %v5554_v46 = vpop.f32.mrf.mxu0 }
 0x6a3   :  { %v695_v47 = vpop.f32.mrf.mxu0 }
 0x6a4   :  { %v696_v48 = vadd.f32 %v695_v47, %v6526_v42 }
 0x6a5   :  { %v5565_v49 = vpop.f32.mrf.mxu0 }
 0x6a6   :  { %v701_v50 = vsel %vm196_vm2, %v696_v48, -inf }
 0x6a7   :  { %702 = vmax.xlane.f32.xlu0 %v701_v50  ;;  %v698_v51 = vpop.f32.mrf.mxu0 }
 0x6a9   :  { %v6623_v52 = vpop.f32.mrf.mxu1  ;;  %v5566_v53 = vpop.f32.mrf.mxu0 }
 0x6ab   :  { %v5535_v54 = vpop.f32.mrf.mxu1  ;;  %v805_v55 = vpop.f32.mrf.mxu0 }
 0x6ac   :  { %v806_v3 = vadd.f32 %v805_v55, %v6548_v1 }
 0x6ad   :  { %v411_v56 = vpop.f32.mrf.mxu1  ;;  %v5577_v57 = vpop.f32.mrf.mxu0 }
 0x6ae   :  { %v811_v13 = vsel %vm196_vm2, %v806_v3, -inf }
 0x6af   :  { %v5536_v58 = vpop.f32.mrf.mxu1  ;;  %v808_v59 = vpop.f32.mrf.mxu0 }
 0x6b1   :  { %v458_v62 = vpop.f32.mrf.mxu1  ;;  %v5578_v42 = vpop.f32.mrf.mxu0 }
 0x6b2   :  { %v459_v63 = vadd.f32 %v458_v62, %v58_v60 }
 0x6b3   :  { %v5541_v0 = vpop.f32.mrf.mxu1  ;;  %v915_v2 = vpop.f32.mrf.mxu0 }
 0x6b4   :  { %v916_v5 = vadd.f32 %v915_v2, %v58_v60  ;;  %v464_v6 = vsel %vm196_vm2, %v459_v63, -inf }
 0x6b5   :  { %v461_v7 = vpop.f32.mrf.mxu1  ;;  %465 = vmax.xlane.f32.xlu1 %v464_v6  ;;  %v5589_v8 = vpop.f32.mrf.mxu0 }
 0x6b6   :  { %v921_v10 = vsel %vm196_vm2, %v916_v5, -inf }
 0x6b7   :  { %v5542_v11 = vpop.f32.mrf.mxu1  ;;  %922 = vmax.xlane.f32.xlu0 %v921_v10  ;;  %v918_v12 = vpop.f32.mrf.mxu0 }
 0x6b9   :  { %812 = vmax.xlane.f32.xlu1 %v811_v13  ;;  %v5590_v14 = vpop.f32.mrf.mxu0 }
 0x6bb   :  { %v1025_v15 = vpop.f32.mrf.mxu0 }
 0x6bc   :  { %v1026_v16 = vadd.f32 %v1025_v15, %v59_v39 }
 0x6bd   :  { %v5601_v17 = vpop.f32.mrf.mxu0 }
 0x6be   :  { %v1031_v1 = vsel %vm196_vm2, %v1026_v16, -inf }
 0x6bf   :  { %1032 = vmax.xlane.f32.xlu1 %v1031_v1  ;;  %v1028_v18 = vpop.f32.mrf.mxu0 }
 0x6c1   :  { %v5602_v19 = vpop.f32.mrf.mxu0 }
 0x728   :  { %v576_v20 = vpop.xlane.xlu0 %575 }
 0x729   :  { %v577_v21 = vsub.f32 %v569_v41, %v576_v20 }
 0x72b   :  { %v578_v22 = vmul.f32 1.442695, %v577_v21 }
 0x72d   :  { %6187 = vpow2.f32 %v578_v22 }
 0x730   :  { %v703_v23 = vpop.xlane.xlu0 %702 }
 0x731   :  { %v704_v24 = vsub.f32 %v696_v48, %v703_v23 }
 0x733   :  { %v705_v25 = vmul.f32 1.442695, %v704_v24 }
 0x735   :  { %6189 = vpow2.f32 %v705_v25 }
 0x73a   :  { %v6633_v26 = vpop.eup %6187 }
 0x73b   :  { %v580_v27 = vsel %vm196_vm2, %v6633_v26, 0.0 }
 0x73c   :  { %581 = vadd.xlane.f32.xlu1 %v580_v27 }
 0x73e   :  { %v466_v28 = vpop.xlane.xlu1 %465 }
 0x73f   :  { %v467_v29 = vsub.f32 %v459_v63, %v466_v28 }
 0x740   :  { %v923_v30 = vpop.xlane.xlu0 %922 }
 0x741   :  { %v468_v31 = vmul.f32 1.442695, %v467_v29  ;;  %v924_v32 = vsub.f32 %v916_v5, %v923_v30 }
 0x742   :  { %v6637_v33 = vpop.eup %6189  ;;  %v813_v35 = vpop.xlane.xlu1 %812 }
 0x743   :  { %6191 = vpow2.f32 %v468_v31  ;;  %v814_v36 = vsub.f32 %v806_v3, %v813_v35  ;;  %v707_v37 = vsel %vm196_vm2, %v6637_v33, 0.0  ;;  %v925_v38 = vmul.f32 1.442695, %v924_v32 }
 0x744   :  { %708 = vadd.xlane.f32.xlu0 %v707_v37 }
 0x745   :  { %v815_v39 = vmul.f32 1.442695, %v814_v36 }
 0x747   :  { %6193 = vpow2.f32 %v815_v39  ;;  %v6129_v39 = vld [vmem:[%s7626_s5 + $0x8] sm:$0xff]  }
 0x748   :  { %6195 = vpow2.f32 %v925_v38  ;;  %v1033_v47 = vpop.xlane.xlu1 %1032 }
 0x749   :  { %v1034_v48 = vsub.f32 %v1026_v16, %v1033_v47 }
 0x74b   :  { %v1035_v49 = vmul.f32 1.442695, %v1034_v48 }
 0x74d   :  { %6197 = vpow2.f32 %v1035_v49 }
 0x750   :  { %v6192_v40 = vpop.eup %6191 }
 0x751   :  { %v470_v41 = vsel %vm196_vm2, %v6192_v40, 0.0 }
 0x752   :  { %471 = vadd.xlane.f32.xlu0 %v470_v41 }
 0x754   :  { %v6642_v43 = vpop.eup %6193 }
 0x755   :  { %v817_v44 = vsel %vm196_vm2, %v6642_v43, 0.0  ;;  %v6646_v45 = vpop.eup %6195 }
 0x756   :  { %818 = vadd.xlane.f32.xlu1 %v817_v44  ;;  %v927_v46 = vsel %vm196_vm2, %v6646_v45, 0.0 }
 0x75a   :  { %928 = vadd.xlane.f32.xlu1 %v927_v46  ;;  %v6662_v50 = vpop.eup %6197 }
 0x768   :  { %476 = vrot.lane.b32.xlu0 %v6507_v34, %s7639_s27 }
 0x76b   :  { %586 = vrot.lane.b32.xlu1 %v6507_v34, %s7637_s28  ;;  %v1037_v34 = vsel %vm196_vm2, %v6662_v50, 0.0 }
 0x76f   :  { %713 = vrot.lane.b32.xlu1 %v6562_v9, %s7643_s21 }
 0x773   :  { %823 = vrot.lane.b32.xlu1 %v6562_v9, %s7641_s29 }
 0x777   :  { %933 = vrot.lane.b32.xlu1 %v6562_v9, %s7639_s27 }
 0x77b   :  { %1043 = vrot.lane.b32.xlu1 %v6562_v9, %s7637_s28  ;;  %s7649_s28 = smov 16  }
 0x787   :  { %1038 = vadd.xlane.f32.xlu0 %v1037_v34 }
 0x7c5   :  { %v582_v53 = vpop.xlane.xlu1 %581 }
 0x7cd   :  { %v709_v51 = vpop.xlane.xlu0 %708 }
 0x7db   :  { %v472_v54 = vpop.xlane.xlu0 %471 }
 0x7dc   :  { %6199 = vrcp.f32 %v472_v54 }
 0x7dd   :  { %6201 = vrcp.f32 %v582_v53 }
 0x7de   :  { %6203 = vrcp.f32 %v709_v51 }
 0x7df   :  { %v477_v55 = vpop.permute.xlu0 %476  ;;  %v819_v56 = vpop.xlane.xlu1 %818 }
 0x7e0   :  { %v482_v57 = vsel %vm260_vm3, %v477_v55, 0  ;;  %6205 = vrcp.f32 %v819_v56 }
 0x7e1   :  { %5544 = vmatpush3.bf16.msra.mxu1 %v482_v57 }
 0x7e2   :  { %5555 = vmatprep.subr.bf16.mxu1 %v6359_v4 }
 0x7e3   :  { %v929_v58 = vpop.xlane.xlu1 %928 }
 0x7e4   :  { %6207 = vrcp.f32 %v929_v58 }
 0x7e7   :  { %v587_v60 = vpop.permute.xlu1 %586 }
 0x7e8   :  { %v592_v63 = vsel %vm260_vm3, %v587_v60, 0 }
 0x7e9   :  { %v6200_v9 = vpop.eup %6199 }
 0x7ea   :  { %v474_v59 = vmul.f32 %v6200_v9, %v6192_v40  ;;  %v6202_v42 = vpop.eup %6201 }
 0x7eb   :  { %v584_v0 = vmul.f32 %v6202_v42, %v6633_v26  ;;  %v714_v2 = vpop.permute.xlu1 %713  ;;  %v6204_v5 = vpop.eup %6203 }
 0x7ec   :  { %v475_v62 = vpack.c.bf16 %v474_v59, %v474_v59  ;;  %v719_v6 = vsel %vm260_vm3, %v714_v2, 0  ;;  %v711_v7 = vmul.f32 %v6204_v5, %v6637_v33 }
 0x7ed   :  { %v585_v3 = vpack.c.bf16 %v584_v0, %v584_v0  ;;  %v6206_v11 = vpop.eup %6205 }
 0x7ee   :  { %5546 = vmatmul.mubr.msk.bf16.vlgmr.msra.gmra.mxu1 %vm196_vm2, %v475_v62  ;;  %v712_v10 = vpack.c.bf16 %v711_v7, %v711_v7  ;;  %v821_v13 = vmul.f32 %v6206_v11, %v6642_v43  ;;  %v1128_v43 = vsel %vm63_vm0, %v6129_v39, 0 }
 0x7ef   :  { %5556 = vmatpush3.bf16.msra.mxu1 %v592_v63  ;;  %5557 = vmatprep.mubr.msk.bf16.mxu1 %vm6360_vm1, %v6359_v4  ;;  %v824_v8 = vpop.permute.xlu1 %823 }
 0x7f0   :  { %5567 = vmatprep.subr.bf16.mxu1 %v6359_v4  ;;  %v829_v12 = vsel %vm260_vm3, %v824_v8, 0  ;;  %v822_v15 = vpack.c.bf16 %v821_v13, %v821_v13  ;;  %5610 = vmatpush3.bf16.xpose.msra.mxu0 %v1128_v43  ;;  %v6134_v43 = vld [vmem:[%s7629_s8 + $0x10] sm:$0xff]  }
 0x7f1   :  { %v6208_v16 = vpop.eup %6207  ;;  %5611 = vmatprep.subr.bf16.mxu0 %v6359_v4 }
 0x7f2   :  { %v931_v1 = vmul.f32 %v6208_v16, %v6646_v45  ;;  %v6130_v45 = vld [vmem:[%s7626_s5] sm:$0xff]   ;;  %v6332_v16 = vld [vmem:[%s7621_s0 + $0x8] sm:$0xff] }
 0x7f3   :  { %v934_v14 = vpop.permute.xlu1 %933  ;;  %v1125_v48 = vsel %vm63_vm0, %v6130_v45, 0  ;;  %v6135_v45 = vld [vmem:[%s7629_s8 + $0x8] sm:$0xff]  }
 0x7f4   :  { %v939_v17 = vsel %vm260_vm3, %v934_v14, 0  ;;  %v932_v19 = vpack.c.bf16 %v931_v1, %v931_v1 }
 0x7f6   :  { %5558 = vmatmul.mubr.msk.bf16.vlgmr.msra.gmra.mxu1 %vm196_vm2, %v585_v3 }
 0x7f7   :  { %5568 = vmatpush3.bf16.msra.mxu1 %v719_v6  ;;  %5569 = vmatprep.mubr.msk.bf16.mxu1 %vm6360_vm1, %v6359_v4  ;;  %v1044_v18 = vpop.permute.xlu1 %1043 }
 0x7f8   :  { %5579 = vmatprep.subr.bf16.mxu1 %v6359_v4  ;;  %v1049_v20 = vsel %vm260_vm3, %v1044_v18, 0  ;;  %5612 = vmatpush3.bf16.xpose.msra.mxu0 %v1125_v48 }
 0x7f9   :  { %5661 = vmatprep.subr.bf16.mxu0 %v6359_v4 }
 0x7fe   :  { %5570 = vmatmul.mubr.msk.bf16.vlgmr.msra.gmra.mxu1 %vm196_vm2, %v712_v10 }
 0x7ff   :  { %5580 = vmatpush3.bf16.msra.mxu1 %v829_v12  ;;  %5581 = vmatprep.mubr.msk.bf16.mxu1 %vm6360_vm1, %v6359_v4 }
 0x800   :  { %5591 = vmatprep.subr.bf16.mxu1 %v6359_v4 }
 0x806   :  { %5582 = vmatmul.mubr.msk.bf16.vlgmr.msra.gmra.mxu1 %vm196_vm2, %v822_v15 }
 0x807   :  { %5592 = vmatpush3.bf16.msra.mxu1 %v939_v17  ;;  %5593 = vmatprep.mubr.msk.bf16.mxu1 %vm6360_vm1, %v6359_v4 }
 0x808   :  { %5603 = vmatprep.subr.bf16.mxu1 %v6359_v4 }
 0x80e   :  { %5594 = vmatmul.mubr.msk.bf16.vlgmr.msra.gmra.mxu1 %vm196_vm2, %v932_v19 }
 0x80f   :  { %5604 = vmatpush3.bf16.msra.mxu1 %v1049_v20  ;;  %5605 = vmatprep.mubr.msk.bf16.mxu1 %vm6360_vm1, %v6359_v4 }
 0x810   :  { %v1039_v21 = vpop.xlane.xlu0 %1038  ;;  %5617 = vmatprep.subr.bf16.mxu1 %v6359_v4 }
 0x811   :  { %6209 = vrcp.f32 %v1039_v21  ;;  %v6131_v21 = vld [vmem:[%s7628_s7 + $0x8] sm:$0xff]  }
 0x81e   :  { %v6210_v22 = vpop.eup %6209 }
 0x81f   :  { %v1041_v23 = vmul.f32 %v6210_v22, %v6662_v50  ;;  %v1220_v22 = vsel %vm63_vm0, %v6131_v21, 0 }
 0x821   :  { %v1042_v24 = vpack.c.bf16 %v1041_v23, %v1041_v23  ;;  %v6132_v23 = vld [vmem:[%s7628_s7] sm:$0xff]  }
 0x823   :  { %5606 = vmatmul.mubr.msk.bf16.vlgmr.msra.gmra.mxu1 %vm196_vm2, %v1042_v24  ;;  %v1217_v24 = vsel %vm63_vm0, %v6132_v23, 0 }
 0x824   :  { %5621 = vmatprep.mubr.msk.bf16.mxu1 %vm6360_vm1, %v6359_v4  ;;  %5618 = vmatpush3.bf16.xpose.msra.mxu1 %v1220_v22 }
 0x825   :  { %5619 = vmatprep.subr.bf16.mxu1 %v6359_v4 }
 0x82c   :  { %5620 = vmatpush3.bf16.xpose.msra.mxu1 %v1217_v24 }
 0x82d   :  { %5625 = vmatprep.subr.bf16.mxu1 %v6359_v4 }
 0x8ae   :  { %v518_v25 = vpop.f32.mrf.mxu1 }
 0x8b0   :  { %v5547_v26 = vpop.f32.mrf.mxu1 }
 0x8b2   :  { %v521_v27 = vpop.f32.mrf.mxu1 }
 0x8b4   :  { %v5548_v28 = vpop.f32.mrf.mxu1 }
 0x8b6   :  { %v628_v29 = vpop.f32.mrf.mxu1 }
 0x8b8   :  { %v5559_v30 = vpop.f32.mrf.mxu1 }
 0x8ba   :  { %v631_v31 = vpop.f32.mrf.mxu1 }
 0x8bb   :  { %v5144_v31 = vld [vmem:[%s7627_s6] ss:$0 sm:$0xff] }
 0x8bc   :  { %v5560_v32 = vpop.f32.mrf.mxu1 }
 0x8be   :  { %v755_v33 = vpop.f32.mrf.mxu1 }
 0x8c0   :  { %v5571_v35 = vpop.f32.mrf.mxu1 }
 0x8c2   :  { %v758_v36 = vpop.f32.mrf.mxu1 }
 0x8c3   :  { %v6133_v36 = vld [vmem:[%s7629_s8 + $0x18] sm:$0xff]  }
 0x8c4   :  { %v5572_v37 = vpop.f32.mrf.mxu1 }
 0x8c6   :  { %v865_v38 = vpop.f32.mrf.mxu1 }
 0x8c7   :  { %v6063_v40 = vpack.i.bf16 %v865_v38, %v6623_v52 }
 0x8c8   :  { %v5583_v41 = vpop.f32.mrf.mxu1 }
 0x8c9   :  { %6064 = vrot.lane.b32.xlu1 %v6063_v40, %s6372_s23  ;;  %v1305_v41 = vsel %vm63_vm0, %v6133_v36, 0 }
 0x8ca   :  { %v868_v44 = vpop.f32.mrf.mxu1 }
 0x8cb   :  { %v1302_v44 = vsel %vm63_vm0, %v6134_v43, 0 }
 0x8cc   :  { %v5584_v46 = vpop.f32.mrf.mxu1 }
 0x8cd   :  { %v1299_v46 = vsel %vm63_vm0, %v6135_v45, 0 }
 0x8ce   :  { %v975_v47 = vpop.f32.mrf.mxu1 }
 0x8cf   :  { %v6068_v49 = vpack.i.bf16 %v975_v47, %v518_v25  ;;  %v6136_v47 = vld [vmem:[%s7629_s8] sm:$0xff]  }
 0x8d0   :  { %v5595_v52 = vpop.f32.mrf.mxu1  ;;  %v1296_v48 = vsel %vm63_vm0, %v6136_v47, 0 }
 0x8d1   :  { %6069 = vrot.lane.b32.xlu1 %v6068_v49, %s7647_s19  ;;  %v54_v49 = vld [vmem:[%s7622_s1] sm:$0xff]  ;;  %v55_v52 = vld [vmem:[%s7622_s1 + $0x8] sm:$0xff]  ;;  %s7652_s1 = smov 56  }
 0x8d2   :  { %v978_v50 = vpop.f32.mrf.mxu1 }
 0x8d3   :  { %v6785_v50 = vpack.c.bf16 %v55_v52, %v54_v49 }
 0x8d4   :  { %v5596_v34 = vpop.f32.mrf.mxu1 }
 0x8e3   :  { %v1085_v51 = vpop.f32.mrf.mxu1 }
 0x8e4   :  { %v6073_v53 = vpack.i.bf16 %v1085_v51, %v628_v29 }
 0x8e5   :  { %v5607_v54 = vpop.f32.mrf.mxu1 }
 0x8e6   :  { %6074 = vrot.lane.b32.xlu1 %v6073_v53, %s7645_s20 }
 0x8e7   :  { %v1088_v55 = vpop.f32.mrf.mxu1 }
 0x8e9   :  { %v5608_v56 = vpop.f32.mrf.mxu1 }
 0x93b   :  { %v6065_v57 = vpop.permute.xlu1 %6064 }
 0x93c   :  { %v6067_v9 = vunpack.i.h.bf16 %v6065_v57  ;;  %v6066_v59 = vunpack.i.l.bf16 %v6065_v57 }
 0x93e   :  { %v1103_v63 = vsel %vm196_vm2, %v755_v33, %v6067_v9  ;;  %v646_v0 = vsel %vm196_vm2, %v6543_v61, %v6066_v59  ;;  %v6331_v61 = vld [vmem:[%s7621_s0] sm:$0xff]  ;;  %s7651_s0 = smov 64  }
 0x943   :  { %v6070_v58 = vpop.permute.xlu1 %6069 }
 0x944   :  { %v6072_v60 = vunpack.i.h.bf16 %v6070_v58  ;;  %v6071_v62 = vunpack.i.l.bf16 %v6070_v58 }
 0x946   :  { %v648_v5 = vsel %vm647_vm4, %v646_v0, %v6071_v62  ;;  %v1104_v6 = vsel %vm647_vm4, %v1103_v63, %v6072_v60 }
 0x958   :  { %v6075_v42 = vpop.permute.xlu1 %6074 }
 0x959   :  { %v6077_v2 = vunpack.i.h.bf16 %v6075_v42  ;;  %v6076_v3 = vunpack.i.l.bf16 %v6075_v42 }
 0x95b   :  { %v650_v7 = vsel %vm649_vm5, %v648_v5, %v6076_v3  ;;  %v1105_v8 = vsel %vm649_vm5, %v1104_v6, %v6077_v2 }
 0x95c   :  { %v1110_v10 = vpack.c.bf16 %v1105_v8, %v650_v7 }
 0x95e   :  { %5614 = vmatmul.mubr.msk.bf16.vlgmr.msra.gmra.mxu0 %vm63_vm0, %v1110_v10 }
 0x95f   :  { %5663 = vmatprep.mubr.msk.bf16.mxu0 %vm6360_vm1, %v6359_v4 }
 0xa1e   :  { %v1164_v11 = vpop.f32.mrf.mxu0 }
 0xa1f   :  { %v6728_v12 = vadd.f32 %v6331_v61, %v1164_v11 }
 0xa20   :  { %v5615_v13 = vpop.f32.mrf.mxu0 }
 0xa21   :  { %v1174_v14 = vmul.f32 %v6728_v12, %v6728_v12  ;;  %v1190_v33 = vmul.f32 %v5144_v31, %v6728_v12 }
 0xa22   :  { %v1167_v15 = vpop.f32.mrf.mxu0 }
 0xa23   :  { %v6735_v17 = vadd.f32 %v6332_v16, %v1167_v15  ;;  %v1176_v1 = vsel %vm63_vm0, %v1174_v14, 0.0 }
 0xa24   :  { %1177 = vadd.xlane.f32.xlu1 %v1176_v1  ;;  %v5616_v18 = vpop.f32.mrf.mxu0 }
 0xa25   :  { %v1175_v19 = vmul.f32 %v6735_v17, %v6735_v17  ;;  %v1191_v35 = vmul.f32 %v5144_v31, %v6735_v17 }
 0xa27   :  { %v1179_v20 = vsel %vm63_vm0, %v1175_v19, 0.0 }
 0xa28   :  { %1180 = vadd.xlane.f32.xlu0 %v1179_v20 }
 0xaad   :  { %v1178_v25 = vpop.xlane.xlu1 %1177 }
 0xaae   :  { %v1182_v26 = vmul.f32 0.03125, %v1178_v25 }
 0xab0   :  { %v1192_v27 = vadd.f32 1e-06, %v1182_v26 }
 0xab1   :  { %v1181_v28 = vpop.xlane.xlu0 %1180 }
 0xab2   :  { %v1183_v29 = vmul.f32 0.03125, %v1181_v28  ;;  %6211 = vrsqrt.f32 %v1192_v27 }
 0xab4   :  { %v1193_v30 = vadd.f32 1e-06, %v1183_v29 }
 0xab6   :  { %6213 = vrsqrt.f32 %v1193_v30 }
 0xabf   :  { %v6212_v32 = vpop.eup %6211 }
 0xac0   :  { %v1196_v38 = vmul.f32 %v6212_v32, %v1190_v33 }
 0xac3   :  { %v6214_v37 = vpop.eup %6213 }
 0xac4   :  { %v1197_v39 = vmul.f32 %v6214_v37, %v1191_v35 }
 0xac6   :  { %v1202_v40 = vpack.c.bf16 %v1197_v39, %v1196_v38 }
 0xac8   :  { %5622 = vmatmul.mubr.msk.bf16.vlgmr.msra.gmra.mxu1 %vm63_vm0, %v1202_v40 }
 0xac9   :  { %5626 = vmatpush3.bf16.xpose.msra.mxu1 %v1305_v41  ;;  %5633 = vmatprep.mubr.msk.bf16.mxu1 %vm6360_vm1, %v6359_v4 }
 0xaca   :  { %5627 = vmatprep.subr.bf16.mxu1 %v6359_v4 }
 0xad1   :  { %5628 = vmatpush3.bf16.xpose.msra.mxu1 %v1302_v44 }
 0xad2   :  { %5629 = vmatprep.subr.bf16.mxu1 %v6359_v4 }
 0xad9   :  { %5630 = vmatpush3.bf16.xpose.msra.mxu1 %v1299_v46 }
 0xada   :  { %5631 = vmatprep.subr.bf16.mxu1 %v6359_v4 }
 0xae1   :  { %5632 = vmatpush3.bf16.xpose.msra.mxu1 %v1296_v48 }
 0xae2   :  { %5637 = vmatprep.subr.bf16.mxu1 %v6359_v4 }
 0xae8   :  { %5634 = vmatmul.mubr.msk.bf16.vlgmr.msra.gmra.mxu1 %vm63_vm0, %v6785_v50 }
 0xae9   :  { %5639 = vmatprep.mubr.msk.bf16.mxu1 %vm6360_vm1, %v6359_v4 }
 0xb88   :  { %v1256_v34 = vpop.f32.mrf.mxu1 }
 0xb89   :  { %v1348_v51 = vpack.c.bf16 %v1256_v34, %v1256_v34 }
 0xb8a   :  { %v5623_v53 = vpop.f32.mrf.mxu1 }
 0xb8b   :  { %1458 = vrot.lane.b32.xlu1 %v1348_v51, %s6364_s26 }
 0xb8c   :  { %v1259_v54 = vpop.f32.mrf.mxu1 }
 0xb8d   :  { %v1803_v13 = vpack.c.bf16 %v1259_v54, %v1259_v54 }
 0xb8e   :  { %v5624_v55 = vpop.f32.mrf.mxu1 }
 0xba8   :  { %v1341_v56 = vpop.f32.mrf.mxu1 }
 0xba9   :  { %v6792_v57 = vpack.c.bf16 %v1341_v56, %v1341_v56 }
 0xbaa   :  { %v5635_v58 = vpop.f32.mrf.mxu1 }
 0xbab   :  { %v1354_v9 = vsel %vm196_vm2, %v6792_v57, 0 }
 0xbac   :  { %v1344_v59 = vpop.f32.mrf.mxu1  ;;  %5638 = vmatpush3.bf16.xpose.msra.mxu1 %v1354_v9 }
 0xbad   :  { %v6796_v60 = vpack.c.bf16 %v1344_v59, %v1344_v59  ;;  %5643 = vmatprep.subr.bf16.mxu1 %v6359_v4 }
 0xbae   :  { %v5636_v62 = vpop.f32.mrf.mxu1 }
 0xbaf   :  { %1915 = vrot.lane.b32.xlu1 %v6796_v60, %s6364_s26  ;;  %v1809_v26 = vsel %vm196_vm2, %v6796_v60, 0 }
 0xbb3   :  { %5640 = vmatmul.mubr.msk.bf16.vlgmr.msra.gmra.mxu1 %vm196_vm2, %v1348_v51  ;;  %2025 = vrot.lane.b32.xlu1 %v6796_v60, %s6367_s16 }
 0xbb4   :  { %5645 = vmatprep.mubr.msk.bf16.mxu1 %vm6360_vm1, %v6359_v4 }
 0xbb7   :  { %2135 = vrot.lane.b32.xlu1 %v6796_v60, %s6369_s18 }
 0xbfd   :  { %v1459_v27 = vpop.permute.xlu1 %1458 }
 0xc21   :  { %v1916_v28 = vpop.permute.xlu1 %1915 }
 0xc22   :  { %v1921_v29 = vsel %vm196_vm2, %v1916_v28, 0 }
 0xc25   :  { %v2026_v30 = vpop.permute.xlu1 %2025 }
 0xc26   :  { %v2031_v32 = vsel %vm196_vm2, %v2026_v30, 0 }
 0xc29   :  { %v2136_v33 = vpop.permute.xlu1 %2135 }
 0xc2a   :  { %v2141_v36 = vsel %vm196_vm2, %v2136_v33, 0 }
 0xc73   :  { %v1390_v42 = vpop.f32.mrf.mxu1 }
 0xc74   :  { %v1396_v63 = vsel %vm196_vm2, %v1390_v42, -inf }
 0xc75   :  { %1397 = vmax.xlane.f32.xlu0 %v1396_v63  ;;  %v5641_v0 = vpop.f32.mrf.mxu1 }
 0xc77   :  { %v1393_v2 = vpop.f32.mrf.mxu1 }
 0xc79   :  { %v5642_v3 = vpop.f32.mrf.mxu1 }
 0xc8b   :  { %1409 = vrot.lane.b32.xlu0 %v6792_v57, %s6362_s22 }
 0xcfe   :  { %v1398_v5 = vpop.xlane.xlu0 %1397 }
 0xcff   :  { %v1399_v6 = vsub.f32 %v1390_v42, %v1398_v5 }
 0xd01   :  { %v1400_v7 = vmul.f32 1.442695, %v1399_v6 }
 0xd02   :  { %v1410_v8 = vpop.permute.xlu0 %1409 }
 0xd03   :  { %6215 = vpow2.f32 %v1400_v7  ;;  %v1415_v10 = vsel %vm260_vm3, %v1410_v8, 0 }
 0xd04   :  { %5644 = vmatpush3.bf16.msra.mxu1 %v1415_v10 }
 0xd05   :  { %5649 = vmatprep.subr.bf16.mxu1 %v6359_v4 }
 0xd10   :  { %v6216_v11 = vpop.eup %6215 }
 0xd11   :  { %v1402_v61 = vsel %vm196_vm2, %v6216_v11, 0.0 }
 0xd12   :  { %1403 = vadd.xlane.f32.xlu0 %v1402_v61 }
 0xd28   :  { %1460 = vrot.lane.b32.xlu0 %v6792_v57, %s6364_s26 }
 0xd2c   :  { %1570 = vrot.lane.b32.xlu0 %v6792_v57, %s6367_s16 }
 0xd30   :  { %1568 = vrot.lane.b32.xlu0 %v1348_v51, %s6367_s16 }
 0xd34   :  { %1680 = vrot.lane.b32.xlu0 %v6792_v57, %s6369_s18 }
 0xd38   :  { %1678 = vrot.lane.b32.xlu0 %v1348_v51, %s6369_s18 }
 0xd3c   :  { %1913 = vrot.lane.b32.xlu0 %v1803_v13, %s6364_s26 }
 0xd40   :  { %2023 = vrot.lane.b32.xlu0 %v1803_v13, %s6367_s16 }
 0xd44   :  { %2133 = vrot.lane.b32.xlu0 %v1803_v13, %s6369_s18 }
 0xd9b   :  { %v1404_v14 = vpop.xlane.xlu0 %1403 }
 0xd9c   :  { %6217 = vrcp.f32 %v1404_v14 }
 0xd9f   :  { %v1461_v15 = vpop.permute.xlu0 %1460 }
 0xda0   :  { %v1466_v24 = vsel %vm196_vm2, %v1461_v15, 0 }
 0xda3   :  { %v1571_v16 = vpop.permute.xlu0 %1570 }
 0xda4   :  { %v1576_v1 = vsel %vm196_vm2, %v1571_v16, 0 }
 0xda5   :  { %5662 = vmatpush3.bf16.xpose.msra.mxu0 %v1576_v1 }
 0xda6   :  { %5673 = vmatprep.subr.bf16.mxu0 %v6359_v4 }
 0xda7   :  { %v1569_v18 = vpop.permute.xlu0 %1568 }
 0xda9   :  { %v6218_v19 = vpop.eup %6217 }
 0xdaa   :  { %v1406_v20 = vmul.f32 %v6218_v19, %v6216_v11 }
 0xdab   :  { %v1681_v21 = vpop.permute.xlu0 %1680 }
 0xdac   :  { %v1686_v22 = vsel %vm196_vm2, %v1681_v21, 0  ;;  %5664 = vmatmul.mubr.msk.bf16.vlgmr.msra.gmra.mxu0 %vm196_vm2, %v1569_v18  ;;  %v1407_v23 = vpack.c.bf16 %v1406_v20, %v1406_v20 }
 0xdad   :  { %5674 = vmatpush3.bf16.xpose.msra.mxu0 %v1686_v22  ;;  %5675 = vmatprep.mubr.msk.bf16.mxu0 %vm6360_vm1, %v6359_v4 }
 0xdae   :  { %5646 = vmatmul.mubr.msk.bf16.vlgmr.msra.gmra.mxu1 %vm196_vm2, %v1407_v23  ;;  %5685 = vmatprep.subr.bf16.mxu0 %v6359_v4 }
 0xdaf   :  { %5650 = vmatpush3.bf16.xpose.msra.mxu1 %v1466_v24  ;;  %5651 = vmatprep.mubr.msk.bf16.mxu1 %vm6360_vm1, %v6359_v4  ;;  %v1679_v25 = vpop.permute.xlu0 %1678 }
 0xdb0   :  { %5655 = vmatprep.subr.bf16.mxu1 %v6359_v4 }
 0xdb3   :  { %v1914_v31 = vpop.permute.xlu0 %1913 }
 0xdb4   :  { %5676 = vmatmul.mubr.msk.bf16.vlgmr.msra.gmra.mxu0 %vm196_vm2, %v1679_v25 }
 0xdb5   :  { %5686 = vmatpush3.bf16.xpose.msra.mxu0 %v1809_v26  ;;  %5687 = vmatprep.mubr.msk.bf16.mxu0 %vm6360_vm1, %v6359_v4 }
 0xdb6   :  { %5652 = vmatmul.mubr.msk.bf16.vlgmr.msra.gmra.mxu1 %vm196_vm2, %v1459_v27  ;;  %5697 = vmatprep.subr.bf16.mxu0 %v6359_v4 }
 0xdb7   :  { %5657 = vmatprep.mubr.msk.bf16.mxu1 %vm6360_vm1, %v6359_v4  ;;  %v2024_v35 = vpop.permute.xlu0 %2023 }
 0xdbb   :  { %v2134_v37 = vpop.permute.xlu0 %2133 }
 0xdbc   :  { %5688 = vmatmul.mubr.msk.bf16.vlgmr.msra.gmra.mxu0 %vm196_vm2, %v1803_v13 }
 0xdbd   :  { %5698 = vmatpush3.bf16.xpose.msra.mxu0 %v1921_v29  ;;  %5699 = vmatprep.mubr.msk.bf16.mxu0 %vm6360_vm1, %v6359_v4 }
 0xdbe   :  { %5709 = vmatprep.subr.bf16.mxu0 %v6359_v4 }
 0xdc4   :  { %5700 = vmatmul.mubr.msk.bf16.vlgmr.msra.gmra.mxu0 %vm196_vm2, %v1914_v31 }
 0xdc5   :  { %5710 = vmatpush3.bf16.xpose.msra.mxu0 %v2031_v32  ;;  %5711 = vmatprep.mubr.msk.bf16.mxu0 %vm6360_vm1, %v6359_v4 }
 0xdc6   :  { %5721 = vmatprep.subr.bf16.mxu0 %v6359_v4 }
 0xdcc   :  { %5712 = vmatmul.mubr.msk.bf16.vlgmr.msra.gmra.mxu0 %vm196_vm2, %v2024_v35 }
 0xdcd   :  { %5722 = vmatpush3.bf16.xpose.msra.mxu0 %v2141_v36  ;;  %5723 = vmatprep.mubr.msk.bf16.mxu0 %vm6360_vm1, %v6359_v4 }
 0xdce   :  { %5733 = vmatprep.subr.bf16.mxu0 %v6359_v4 }
 0xdd4   :  { %5724 = vmatmul.mubr.msk.bf16.vlgmr.msra.gmra.mxu0 %vm196_vm2, %v2134_v37 }
 0xdd5   :  { %5737 = vmatprep.mubr.msk.bf16.mxu0 %vm6360_vm1, %v6359_v4 }
 0xe6c   :  { %v1612_v38 = vpop.f32.mrf.mxu0 }
 0xe6d   :  { %v1618_v39 = vsel %vm196_vm2, %v1612_v38, -inf }
 0xe6e   :  { %v6865_v40 = vpop.f32.mrf.mxu1  ;;  %1619 = vmax.xlane.f32.xlu0 %v1618_v39  ;;  %v5665_v41 = vpop.f32.mrf.mxu0 }
 0xe70   :  { %v5647_v43 = vpop.f32.mrf.mxu1  ;;  %v1615_v44 = vpop.f32.mrf.mxu0 }
 0xe72   :  { %v1454_v45 = vpop.f32.mrf.mxu1  ;;  %v5666_v46 = vpop.f32.mrf.mxu0 }
 0xe74   :  { %v5648_v47 = vpop.f32.mrf.mxu1  ;;  %v1722_v48 = vpop.f32.mrf.mxu0 }
 0xe75   :  { %v1728_v49 = vsel %vm196_vm2, %v1722_v48, -inf }
 0xe76   :  { %v1502_v52 = vpop.f32.mrf.mxu1  ;;  %1729 = vmax.xlane.f32.xlu0 %v1728_v49  ;;  %v5677_v34 = vpop.f32.mrf.mxu0 }
 0xe77   :  { %v1508_v51 = vsel %vm196_vm2, %v1502_v52, -inf }
 0xe78   :  { %1509 = vmax.xlane.f32.xlu1 %v1508_v51  ;;  %v5653_v53 = vpop.f32.mrf.mxu1  ;;  %v1725_v54 = vpop.f32.mrf.mxu0 }
 0xe7a   :  { %v1505_v55 = vpop.f32.mrf.mxu1  ;;  %v5678_v56 = vpop.f32.mrf.mxu0 }
 0xe7c   :  { %v5654_v58 = vpop.f32.mrf.mxu1  ;;  %v1845_v9 = vpop.f32.mrf.mxu0 }
 0xe7d   :  { %v1851_v59 = vsel %vm196_vm2, %v1845_v9, -inf }
 0xe7e   :  { %1852 = vmax.xlane.f32.xlu1 %v1851_v59  ;;  %v5689_v62 = vpop.f32.mrf.mxu0 }
 0xe80   :  { %v1848_v42 = vpop.f32.mrf.mxu0 }
 0xe82   :  { %v5690_v63 = vpop.f32.mrf.mxu0 }
 0xe84   :  { %v1957_v0 = vpop.f32.mrf.mxu0 }
 0xe85   :  { %v1963_v2 = vsel %vm196_vm2, %v1957_v0, -inf }
 0xe86   :  { %1964 = vmax.xlane.f32.xlu0 %v1963_v2  ;;  %v5701_v3 = vpop.f32.mrf.mxu0 }
 0xe88   :  { %v1960_v5 = vpop.f32.mrf.mxu0 }
 0xe8a   :  { %v5702_v6 = vpop.f32.mrf.mxu0 }
 0xe8c   :  { %v2067_v7 = vpop.f32.mrf.mxu0 }
 0xe8d   :  { %v2073_v8 = vsel %vm196_vm2, %v2067_v7, -inf }
 0xe8e   :  { %2074 = vmax.xlane.f32.xlu1 %v2073_v8  ;;  %v5713_v10 = vpop.f32.mrf.mxu0 }
 0xe90   :  { %v2070_v11 = vpop.f32.mrf.mxu0 }
 0xe92   :  { %v5714_v61 = vpop.f32.mrf.mxu0 }
 0xe94   :  { %v2177_v13 = vpop.f32.mrf.mxu0 }
 0xe95   :  { %v2183_v14 = vsel %vm196_vm2, %v2177_v13, -inf }
 0xe96   :  { %2184 = vmax.xlane.f32.xlu0 %v2183_v14  ;;  %v5725_v15 = vpop.f32.mrf.mxu0 }
 0xe98   :  { %v2180_v16 = vpop.f32.mrf.mxu0 }
 0xe9a   :  { %v5726_v1 = vpop.f32.mrf.mxu0 }
 0xef7   :  { %v1620_v18 = vpop.xlane.xlu0 %1619 }
 0xef8   :  { %v1621_v19 = vsub.f32 %v1612_v38, %v1620_v18 }
 0xefa   :  { %v1622_v20 = vmul.f32 1.442695, %v1621_v19 }
 0xefc   :  { %6219 = vpow2.f32 %v1622_v20 }
 0xeff   :  { %v1730_v21 = vpop.xlane.xlu0 %1729 }
 0xf00   :  { %v1731_v22 = vsub.f32 %v1722_v48, %v1730_v21 }
 0xf01   :  { %v1510_v23 = vpop.xlane.xlu1 %1509 }
 0xf02   :  { %v1732_v24 = vmul.f32 1.442695, %v1731_v22  ;;  %v1511_v25 = vsub.f32 %v1502_v52, %v1510_v23 }
 0xf04   :  { %6221 = vpow2.f32 %v1732_v24  ;;  %v1512_v26 = vmul.f32 1.442695, %v1511_v25 }
 0xf06   :  { %6223 = vpow2.f32 %v1512_v26 }
 0xf07   :  { %v1853_v27 = vpop.xlane.xlu1 %1852 }
 0xf08   :  { %v1854_v28 = vsub.f32 %v1845_v9, %v1853_v27 }
 0xf09   :  { %v6873_v29 = vpop.eup %6219 }
 0xf0a   :  { %v1855_v30 = vmul.f32 1.442695, %v1854_v28  ;;  %v1624_v31 = vsel %vm196_vm2, %v6873_v29, 0.0 }
 0xf0b   :  { %1625 = vadd.xlane.f32.xlu0 %v1624_v31 }
 0xf0c   :  { %6225 = vpow2.f32 %v1855_v30 }
 0xf0f   :  { %v1965_v32 = vpop.xlane.xlu0 %1964 }
 0xf10   :  { %v1966_v33 = vsub.f32 %v1957_v0, %v1965_v32 }
 0xf11   :  { %v6877_v35 = vpop.eup %6221 }
 0xf12   :  { %v1967_v36 = vmul.f32 1.442695, %v1966_v33  ;;  %v1734_v37 = vsel %vm196_vm2, %v6877_v35, 0.0 }
 0xf13   :  { %v6224_v38 = vpop.eup %6223  ;;  %1735 = vadd.xlane.f32.xlu1 %v1734_v37 }
 0xf14   :  { %6227 = vpow2.f32 %v1967_v36  ;;  %v1514_v39 = vsel %vm196_vm2, %v6224_v38, 0.0 }
 0xf17   :  { %1515 = vadd.xlane.f32.xlu1 %v1514_v39  ;;  %v2075_v46 = vpop.xlane.xlu1 %2074 }
 0xf18   :  { %v2076_v47 = vsub.f32 %v2067_v7, %v2075_v46 }
 0xf19   :  { %v6882_v41 = vpop.eup %6225 }
 0xf1a   :  { %v1857_v43 = vsel %vm196_vm2, %v6882_v41, 0.0  ;;  %v2077_v48 = vmul.f32 1.442695, %v2076_v47 }
 0xf1b   :  { %1858 = vadd.xlane.f32.xlu0 %v1857_v43 }
 0xf1c   :  { %6229 = vpow2.f32 %v2077_v48 }
 0xf1f   :  { %v2185_v49 = vpop.xlane.xlu0 %2184 }
 0xf20   :  { %v2186_v52 = vsub.f32 %v2177_v13, %v2185_v49 }
 0xf21   :  { %v6886_v44 = vpop.eup %6227 }
 0xf22   :  { %v1969_v45 = vsel %vm196_vm2, %v6886_v44, 0.0  ;;  %v2187_v34 = vmul.f32 1.442695, %v2186_v52 }
 0xf23   :  { %1970 = vadd.xlane.f32.xlu0 %v1969_v45 }
 0xf24   :  { %6231 = vpow2.f32 %v2187_v34 }
 0xf28   :  { %1520 = vrot.lane.b32.xlu1 %v6792_v57, %s6363_s25 }
 0xf29   :  { %v6896_v51 = vpop.eup %6229 }
 0xf2a   :  { %v2079_v53 = vsel %vm196_vm2, %v6896_v51, 0.0 }
 0xf31   :  { %v6900_v54 = vpop.eup %6231 }
 0xf32   :  { %v2189_v55 = vsel %vm196_vm2, %v6900_v54, 0.0 }
 0xf39   :  { %1630 = vrot.lane.b32.xlu0 %v6792_v57, %s6366_s30 }
 0xf3d   :  { %1740 = vrot.lane.b32.xlu0 %v6792_v57, %s6368_s17 }
 0xf4c   :  { %2080 = vadd.xlane.f32.xlu1 %v2079_v53 }
 0xf5c   :  { %2190 = vadd.xlane.f32.xlu0 %v2189_v55  ;;  %v6137_v55 = vld [vmem:[%s7630_s9 + $0x8] sm:$0xff]  }
 0xf5d   :  { %1864 = vrot.lane.b32.xlu1 %v6796_v60, %s6362_s22 }
 0xf61   :  { %2085 = vrot.lane.b32.xlu1 %v6796_v60, %s6366_s30 }
 0xf65   :  { %2195 = vrot.lane.b32.xlu1 %v6796_v60, %s6368_s17 }
 0xf72   :  { %1975 = vrot.lane.b32.xlu0 %v6796_v60, %s6363_s25 }
 0xf94   :  { %v1626_v58 = vpop.xlane.xlu0 %1625 }
 0xf9c   :  { %v1736_v57 = vpop.xlane.xlu1 %1735 }
 0xfa0   :  { %v1516_v56 = vpop.xlane.xlu1 %1515 }
 0xfa1   :  { %6233 = vrcp.f32 %v1516_v56 }
 0xfa2   :  { %6235 = vrcp.f32 %v1626_v58  ;;  %v6138_v58 = vld [vmem:[%s7630_s9] sm:$0xff]  }
 0xfa3   :  { %6237 = vrcp.f32 %v1736_v57  ;;  %v2280_v57 = vsel %vm63_vm0, %v6137_v55, 0 }
 0xfa4   :  { %v1521_v9 = vpop.permute.xlu1 %1520  ;;  %v1859_v62 = vpop.xlane.xlu0 %1858  ;;  %5734 = vmatpush3.bf16.xpose.msra.mxu0 %v2280_v57 }
 0xfa5   :  { %v1526_v59 = vsel %vm260_vm3, %v1521_v9, 0  ;;  %6239 = vrcp.f32 %v1859_v62  ;;  %5735 = vmatprep.subr.bf16.mxu0 %v6359_v4  ;;  %v2277_v62 = vsel %vm63_vm0, %v6138_v58, 0 }
 0xfa6   :  { %5656 = vmatpush3.bf16.msra.mxu1 %v1526_v59 }
 0xfa7   :  { %5667 = vmatprep.subr.bf16.mxu1 %v6359_v4 }
 0xfac   :  { %v1971_v42 = vpop.xlane.xlu0 %1970  ;;  %5736 = vmatpush3.bf16.xpose.msra.mxu0 %v2277_v62 }
 0xfad   :  { %6241 = vrcp.f32 %v1971_v42  ;;  %5753 = vmatprep.subr.bf16.mxu0 %v6359_v4 }
 0xfae   :  { %v6234_v63 = vpop.eup %6233 }
 0xfaf   :  { %v1518_v0 = vmul.f32 %v6234_v63, %v6224_v38  ;;  %v6236_v5 = vpop.eup %6235 }
 0xfb0   :  { %v1631_v2 = vpop.permute.xlu0 %1630  ;;  %v1628_v6 = vmul.f32 %v6236_v5, %v6873_v29  ;;  %v6238_v10 = vpop.eup %6237 }
 0xfb1   :  { %v1636_v3 = vsel %vm260_vm3, %v1631_v2, 0  ;;  %v1519_v60 = vpack.c.bf16 %v1518_v0, %v1518_v0  ;;  %v1738_v61 = vmul.f32 %v6238_v10, %v6877_v35 }
 0xfb2   :  { %v1629_v8 = vpack.c.bf16 %v1628_v6, %v1628_v6  ;;  %v6240_v14 = vpop.eup %6239 }
 0xfb3   :  { %5658 = vmatmul.mubr.msk.bf16.vlgmr.msra.gmra.mxu1 %vm196_vm2, %v1519_v60  ;;  %v1739_v13 = vpack.c.bf16 %v1738_v61, %v1738_v61  ;;  %v1861_v16 = vmul.f32 %v6240_v14, %v6882_v41 }
 0xfb4   :  { %5668 = vmatpush3.bf16.msra.mxu1 %v1636_v3  ;;  %5669 = vmatprep.mubr.msk.bf16.mxu1 %vm6360_vm1, %v6359_v4  ;;  %v1741_v7 = vpop.permute.xlu0 %1740 }
 0xfb5   :  { %5679 = vmatprep.subr.bf16.mxu1 %v6359_v4  ;;  %v1746_v11 = vsel %vm260_vm3, %v1741_v7, 0  ;;  %v1862_v19 = vpack.c.bf16 %v1861_v16, %v1861_v16 }
 0xfba   :  { %v6242_v20 = vpop.eup %6241 }
 0xfbb   :  { %5670 = vmatmul.mubr.msk.bf16.vlgmr.msra.gmra.mxu1 %vm196_vm2, %v1629_v8  ;;  %v1973_v22 = vmul.f32 %v6242_v20, %v6886_v44 }
 0xfbc   :  { %5680 = vmatpush3.bf16.msra.mxu1 %v1746_v11  ;;  %5681 = vmatprep.mubr.msk.bf16.mxu1 %vm6360_vm1, %v6359_v4 }
 0xfbd   :  { %5691 = vmatprep.subr.bf16.mxu1 %v6359_v4  ;;  %v1974_v26 = vpack.c.bf16 %v1973_v22, %v1973_v22 }
 0xfc3   :  { %5682 = vmatmul.mubr.msk.bf16.vlgmr.msra.gmra.mxu1 %vm196_vm2, %v1739_v13 }
 0xfc4   :  { %5693 = vmatprep.mubr.msk.bf16.mxu1 %vm6360_vm1, %v6359_v4 }
 0xfd5   :  { %v2081_v15 = vpop.xlane.xlu1 %2080 }
 0xfd6   :  { %6243 = vrcp.f32 %v2081_v15 }
 0xfd9   :  { %v1865_v1 = vpop.permute.xlu1 %1864 }
 0xfda   :  { %v1870_v18 = vsel %vm260_vm3, %v1865_v1, 0 }
 0xfdb   :  { %5692 = vmatpush3.bf16.msra.mxu1 %v1870_v18 }
 0xfdc   :  { %5703 = vmatprep.subr.bf16.mxu1 %v6359_v4 }
 0xfdd   :  { %v2086_v25 = vpop.permute.xlu1 %2085 }
 0xfde   :  { %5694 = vmatmul.mubr.msk.bf16.vlgmr.msra.gmra.mxu1 %vm196_vm2, %v1862_v19  ;;  %v2091_v28 = vsel %vm260_vm3, %v2086_v25, 0 }
 0xfdf   :  { %5705 = vmatprep.mubr.msk.bf16.mxu1 %vm6360_vm1, %v6359_v4 }
 0xfe1   :  { %v2196_v30 = vpop.permute.xlu1 %2195 }
 0xfe2   :  { %v2201_v33 = vsel %vm260_vm3, %v2196_v30, 0 }
 0xfe3   :  { %v6244_v27 = vpop.eup %6243 }
 0xfe4   :  { %v2083_v29 = vmul.f32 %v6244_v27, %v6896_v51 }
 0xfe5   :  { %v2191_v21 = vpop.xlane.xlu0 %2190 }
 0xfe6   :  { %6245 = vrcp.f32 %v2191_v21  ;;  %v2084_v31 = vpack.c.bf16 %v2083_v29, %v2083_v29 }
 0xfe9   :  { %v1976_v23 = vpop.permute.xlu0 %1975 }
 0xfea   :  { %v1981_v24 = vsel %vm260_vm3, %v1976_v23, 0 }
 0xfeb   :  { %5704 = vmatpush3.bf16.msra.mxu1 %v1981_v24 }
 0xfec   :  { %5715 = vmatprep.subr.bf16.mxu1 %v6359_v4 }
 0xfee   :  { %5706 = vmatmul.mubr.msk.bf16.vlgmr.msra.gmra.mxu1 %vm196_vm2, %v1974_v26 }
 0xfef   :  { %5716 = vmatpush3.bf16.msra.mxu1 %v2091_v28  ;;  %5717 = vmatprep.mubr.msk.bf16.mxu1 %vm6360_vm1, %v6359_v4 }
 0xff0   :  { %5727 = vmatprep.subr.bf16.mxu1 %v6359_v4 }
 0xff3   :  { %v6246_v32 = vpop.eup %6245 }
 0xff4   :  { %v2193_v35 = vmul.f32 %v6246_v32, %v6900_v54 }
 0xff6   :  { %5718 = vmatmul.mubr.msk.bf16.vlgmr.msra.gmra.mxu1 %vm196_vm2, %v2084_v31  ;;  %v2194_v36 = vpack.c.bf16 %v2193_v35, %v2193_v35 }
 0xff7   :  { %5728 = vmatpush3.bf16.msra.mxu1 %v2201_v33  ;;  %5729 = vmatprep.mubr.msk.bf16.mxu1 %vm6360_vm1, %v6359_v4 }
 0xff8   :  { %5741 = vmatprep.subr.bf16.mxu1 %v6359_v4 }
 0xffe   :  { %5730 = vmatmul.mubr.msk.bf16.vlgmr.msra.gmra.mxu1 %vm196_vm2, %v2194_v36 }
 0xfff   :  { %5749 = vmatprep.mubr.msk.bf16.mxu1 %vm6360_vm1, %v6359_v4 }
0x1073   :  { %v1562_v37 = vpop.f32.mrf.mxu1 }
0x1075   :  { %v5659_v38 = vpop.f32.mrf.mxu1 }
0x1077   :  { %v1565_v39 = vpop.f32.mrf.mxu1 }
0x1079   :  { %v5660_v41 = vpop.f32.mrf.mxu1 }
0x107b   :  { %v1672_v43 = vpop.f32.mrf.mxu1 }
0x107d   :  { %v5671_v44 = vpop.f32.mrf.mxu1 }
0x107e   :  { %v6142_v44 = vld [vmem:[%s7632_s11] sm:$0xff]  }
0x107f   :  { %v1675_v45 = vpop.f32.mrf.mxu1 }
0x1080   :  { %v2383_v45 = vsel %vm63_vm0, %v6142_v44, 0 }
0x1081   :  { %v5672_v46 = vpop.f32.mrf.mxu1 }
0x1082   :  { %v6143_v46 = vld [vmem:[%s7633_s12 + $0x8] sm:$0xff]  }
0x1083   :  { %v1782_v47 = vpop.f32.mrf.mxu1 }
0x1085   :  { %v5683_v48 = vpop.f32.mrf.mxu1 }
0x1087   :  { %v1785_v49 = vpop.f32.mrf.mxu1 }
0x1089   :  { %v5684_v52 = vpop.f32.mrf.mxu1 }
0x109e   :  { %v1906_v34 = vpop.f32.mrf.mxu1 }
0x10a0   :  { %v5695_v51 = vpop.f32.mrf.mxu1 }
0x10a2   :  { %v1909_v53 = vpop.f32.mrf.mxu1 }
0x10a4   :  { %v5696_v54 = vpop.f32.mrf.mxu1 }
0x10a5   :  { %v5172_v54 = vld [vmem:[%s7631_s10] ss:$0 sm:$0xff] }
0x10ae   :  { %v2017_v56 = vpop.f32.mrf.mxu1 }
0x10af   :  { %v6078_v9 = vpack.i.bf16 %v2017_v56, %v1562_v37 }
0x10b0   :  { %v5707_v59 = vpop.f32.mrf.mxu1 }
0x10b1   :  { %6079 = vrot.lane.b32.xlu1 %v6078_v9, %s6372_s23 }
0x10b2   :  { %v2020_v42 = vpop.f32.mrf.mxu1 }
0x10b3   :  { %v6144_v42 = vld [vmem:[%s7633_s12] sm:$0xff]  }
0x10b4   :  { %v5708_v63 = vpop.f32.mrf.mxu1 }
0x10b5   :  { %v2457_v63 = vsel %vm2452_vm6, %v6144_v42, 0 }
0x10b6   :  { %v2127_v0 = vpop.f32.mrf.mxu1 }
0x10b7   :  { %v6083_v2 = vpack.i.bf16 %v2127_v0, %v1672_v43 }
0x10b8   :  { %v5719_v3 = vpop.f32.mrf.mxu1 }
0x10b9   :  { %6084 = vrot.lane.b32.xlu1 %v6083_v2, %s7649_s28 }
0x10ba   :  { %v2130_v60 = vpop.f32.mrf.mxu1 }
0x10bc   :  { %v5720_v5 = vpop.f32.mrf.mxu1 }
0x10be   :  { %v2237_v6 = vpop.f32.mrf.mxu1 }
0x10bf   :  { %v6088_v7 = vpack.i.bf16 %v2237_v6, %v1782_v47  ;;  %v2460_v47 = vsel %vm2452_vm6, %v6143_v46, 0 }
0x10c0   :  { %v5731_v8 = vpop.f32.mrf.mxu1 }
0x10c1   :  { %6089 = vrot.lane.b32.xlu0 %v6088_v7, %s7650_s24  ;;  %v6145_v8 = vld [vmem:[%s7625_s4 + $0x58] sm:$0xff]  }
0x10c2   :  { %v2240_v10 = vpop.f32.mrf.mxu1 }
0x10c3   :  { %v2594_v10 = vsel %vm63_vm0, %v6145_v8, 0 }
0x10c4   :  { %v5732_v11 = vpop.f32.mrf.mxu1 }
0x10c5   :  { %v6146_v11 = vld [vmem:[%s7625_s4 + $0x50] sm:$0xff]  }
0x1123   :  { %v6080_v61 = vpop.permute.xlu1 %6079 }
0x1124   :  { %v6082_v14 = vunpack.i.h.bf16 %v6080_v61  ;;  %v6081_v15 = vunpack.i.l.bf16 %v6080_v61  ;;  %v2591_v61 = vsel %vm63_vm0, %v6146_v11, 0 }
0x1126   :  { %v2255_v19 = vsel %vm196_vm2, %v1906_v34, %v6082_v14  ;;  %v1800_v20 = vsel %vm196_vm2, %v6865_v40, %v6081_v15  ;;  %v6139_v40 = vld [vmem:[%s7632_s11 + $0x18] sm:$0xff]  }
0x1127   :  { %v2392_v28 = vsel %vm63_vm0, %v6139_v40, 0 }
0x1128   :  { %5742 = vmatpush3.bf16.xpose.msra.mxu1 %v2392_v28  ;;  %v6150_v28 = vld [vmem:[%s7625_s4 + $0x30] sm:$0xff]  }
0x1129   :  { %5743 = vmatprep.subr.bf16.mxu1 %v6359_v4 }
0x112b   :  { %v6085_v13 = vpop.permute.xlu1 %6084 }
0x112c   :  { %v6087_v16 = vunpack.i.h.bf16 %v6085_v13  ;;  %v6086_v1 = vunpack.i.l.bf16 %v6085_v13  ;;  %v6147_v13 = vld [vmem:[%s7625_s4 + $0x48] sm:$0xff]  }
0x112d   :  { %v2588_v14 = vsel %vm63_vm0, %v6147_v13, 0 }
0x112e   :  { %v2256_v23 = vsel %vm647_vm4, %v2255_v19, %v6087_v16  ;;  %v1801_v24 = vsel %vm647_vm4, %v1800_v20, %v6086_v1 }
0x1133   :  { %v6090_v18 = vpop.permute.xlu0 %6089 }
0x1134   :  { %v6092_v21 = vunpack.i.h.bf16 %v6090_v18  ;;  %v6091_v22 = vunpack.i.l.bf16 %v6090_v18 }
0x1136   :  { %v2257_v25 = vsel %vm649_vm5, %v2256_v23, %v6092_v21  ;;  %v1802_v26 = vsel %vm649_vm5, %v1801_v24, %v6091_v22 }
0x1137   :  { %v2262_v27 = vpack.c.bf16 %v2257_v25, %v1802_v26  ;;  %v6148_v25 = vld [vmem:[%s7625_s4 + $0x40] sm:$0xff]  }
0x1138   :  { %v2585_v26 = vsel %vm63_vm0, %v6148_v25, 0 }
0x1139   :  { %5738 = vmatmul.mubr.msk.bf16.vlgmr.msra.gmra.mxu0 %vm63_vm0, %v2262_v27  ;;  %v6149_v27 = vld [vmem:[%s7625_s4 + $0x38] sm:$0xff]   ;;  %s7654_s4 = smov 40  }
0x113a   :  { %5757 = vmatprep.mubr.msk.bf16.mxu0 %vm6360_vm1, %v6359_v4  ;;  %5754 = vmatpush3.bf16.xpose.msra.mxu0 %v2460_v47  ;;  %v2582_v40 = vsel %vm63_vm0, %v6149_v27, 0 }
0x113b   :  { %5755 = vmatprep.subr.bf16.mxu0 %v6359_v4 }
0x1142   :  { %5756 = vmatpush3.bf16.xpose.msra.mxu0 %v2457_v63 }
0x1143   :  { %5761 = vmatprep.subr.bf16.mxu0 %v6359_v4 }
0x11f9   :  { %v2316_v29 = vpop.f32.mrf.mxu0 }
0x11fa   :  { %v6982_v30 = vadd.f32 %v2316_v29, %v6728_v12  ;;  %v6140_v12 = vld [vmem:[%s7632_s11 + $0x10] sm:$0xff]   ;;  %v2579_v29 = vsel %vm63_vm0, %v6150_v28, 0 }
0x11fb   :  { %v5739_v31 = vpop.f32.mrf.mxu0  ;;  %v2389_v41 = vsel %vm63_vm0, %v6140_v12, 0 }
0x11fc   :  { %v2326_v32 = vmul.f32 %v6982_v30, %v6982_v30  ;;  %5744 = vmatpush3.bf16.xpose.msra.mxu1 %v2389_v41  ;;  %v2342_v57 = vmul.f32 %v5172_v54, %v6982_v30 }
0x11fd   :  { %v2319_v33 = vpop.f32.mrf.mxu0  ;;  %5745 = vmatprep.subr.bf16.mxu1 %v6359_v4 }
0x11fe   :  { %v6987_v35 = vadd.f32 %v2319_v33, %v6735_v17  ;;  %v2328_v36 = vsel %vm63_vm0, %v2326_v32, 0.0  ;;  %v6141_v17 = vld [vmem:[%s7632_s11 + $0x8] sm:$0xff]  }
0x11ff   :  { %2329 = vadd.xlane.f32.xlu1 %v2328_v36  ;;  %v5740_v37 = vpop.f32.mrf.mxu0  ;;  %v2386_v43 = vsel %vm63_vm0, %v6141_v17, 0 }
0x1200   :  { %v2327_v38 = vmul.f32 %v6987_v35, %v6987_v35  ;;  %v2343_v56 = vmul.f32 %v5172_v54, %v6987_v35  ;;  %v5182_v37 = vld [vmem:[%s7624_s3 + $0x1] ss:$0 sm:$0xff] }
0x1202   :  { %v2331_v39 = vsel %vm63_vm0, %v2327_v38, 0.0 }
0x1203   :  { %2332 = vadd.xlane.f32.xlu0 %v2331_v39 }
0x1204   :  { %5746 = vmatpush3.bf16.xpose.msra.mxu1 %v2386_v43 }
0x1205   :  { %5747 = vmatprep.subr.bf16.mxu1 %v6359_v4 }
0x120c   :  { %5748 = vmatpush3.bf16.xpose.msra.mxu1 %v2383_v45 }
0x120d   :  { %5777 = vmatprep.subr.bf16.mxu1 %v6359_v4 }
0x1288   :  { %v2330_v48 = vpop.xlane.xlu1 %2329 }
0x1289   :  { %v2334_v49 = vmul.f32 0.03125, %v2330_v48 }
0x128b   :  { %v2344_v52 = vadd.f32 1e-06, %v2334_v49 }
0x128c   :  { %v2333_v34 = vpop.xlane.xlu0 %2332 }
0x128d   :  { %v2335_v51 = vmul.f32 0.03125, %v2333_v34  ;;  %6247 = vrsqrt.f32 %v2344_v52 }
0x128f   :  { %v2345_v53 = vadd.f32 1e-06, %v2335_v51 }
0x1291   :  { %6249 = vrsqrt.f32 %v2345_v53  ;;  %v7096_v53 = vld [vmem:[%s7623_s2] sm:$0xff] }
0x129a   :  { %v6248_v55 = vpop.eup %6247 }
0x129b   :  { %v2348_v9 = vmul.f32 %v6248_v55, %v2342_v57 }
0x129e   :  { %v6250_v58 = vpop.eup %6249 }
0x129f   :  { %v2349_v59 = vmul.f32 %v6250_v58, %v2343_v56 }
0x12a1   :  { %v2358_v62 = vpack.c.bf16 %v2349_v59, %v2348_v9 }
0x12a3   :  { %5750 = vmatmul.mubr.msk.bf16.vlgmr.msra.gmra.mxu1 %vm63_vm0, %v2358_v62 }
0x12a4   :  { %5779 = vmatprep.mubr.msk.bf16.mxu1 %vm6360_vm1, %v6359_v4 }
0x1363   :  { %v2428_v0 = vpop.f32.mrf.mxu1 }
0x1364   :  { %v2435_v60 = vmax.f32 %v2428_v0, 0.0 }
0x1365   :  { %v5751_v2 = vpop.f32.mrf.mxu1 }
0x1367   :  { %v2431_v3 = vpop.f32.mrf.mxu1 }
0x1368   :  { %v2436_v5 = vmax.f32 %v2431_v3, 0.0 }
0x1369   :  { %v5752_v6 = vpop.f32.mrf.mxu1 }
0x136a   :  { %v2441_v7 = vpack.c.bf16 %v2436_v5, %v2435_v60 }
0x136c   :  { %5758 = vmatmul.mubr.msk.bf16.vlgmr.msra.gmra.mxu0 %vm2452_vm6, %v2441_v7 }
0x136d   :  { %5773 = vmatprep.mubr.msk.bf16.mxu0 %vm6360_vm1, %v6359_v4  ;;  %5762 = vmatpush3.bf16.xpose.msra.mxu0 %v2594_v10 }
0x136e   :  { %5763 = vmatprep.subr.bf16.mxu0 %v6359_v4 }
0x1375   :  { %5764 = vmatpush3.bf16.xpose.msra.mxu0 %v2591_v61 }
0x1376   :  { %5765 = vmatprep.subr.bf16.mxu0 %v6359_v4 }
0x137d   :  { %5766 = vmatpush3.bf16.xpose.msra.mxu0 %v2588_v14 }
0x137e   :  { %5767 = vmatprep.subr.bf16.mxu0 %v6359_v4 }
0x1385   :  { %5768 = vmatpush3.bf16.xpose.msra.mxu0 %v2585_v26 }
0x1386   :  { %5769 = vmatprep.subr.bf16.mxu0 %v6359_v4 }
0x138d   :  { %5770 = vmatpush3.bf16.xpose.msra.mxu0 %v2582_v40 }
0x138e   :  { %5771 = vmatprep.subr.bf16.mxu0 %v6359_v4 }
0x1395   :  { %5772 = vmatpush3.bf16.xpose.msra.mxu0 %v2579_v29 }
0x1396   :  { %5813 = vmatprep.subr.bf16.mxu0 %v6359_v4 }
0x142c   :  { %v2496_v15 = vpop.f32.mrf.mxu0 }
0x142d   :  { %v7045_v16 = vadd.f32 %v2496_v15, %v6982_v30 }
0x142e   :  { %v5759_v1 = vpop.f32.mrf.mxu0 }
0x142f   :  { %v2507_v18 = vmul.f32 %v7045_v16, %v7045_v16  ;;  %v2523_v39 = vmul.f32 %v5182_v37, %v7045_v16  ;;  %v7118_v1 = vld [vmem:[%s7623_s2 + $0x8] sm:$0xff] }
0x1430   :  { %v2499_v19 = vpop.f32.mrf.mxu0 }
0x1431   :  { %v7050_v20 = vadd.f32 %v2499_v19, %v6987_v35  ;;  %v2509_v21 = vsel %vm63_vm0, %v2507_v18, 0.0 }
0x1432   :  { %2510 = vadd.xlane.f32.xlu0 %v2509_v21  ;;  %v5760_v22 = vpop.f32.mrf.mxu0 }
0x1433   :  { %v2508_v23 = vmul.f32 %v7050_v20, %v7050_v20  ;;  %v2524_v12 = vmul.f32 %v5182_v37, %v7050_v20 }
0x1435   :  { %v2512_v24 = vsel %vm63_vm0, %v2508_v23, 0.0 }
0x1436   :  { %2513 = vadd.xlane.f32.xlu1 %v2512_v24 }
0x14bb   :  { %v2511_v30 = vpop.xlane.xlu0 %2510 }
0x14bc   :  { %v2515_v31 = vmul.f32 0.03125, %v2511_v30 }
0x14be   :  { %v2525_v32 = vadd.f32 1e-06, %v2515_v31 }
0x14bf   :  { %v2514_v33 = vpop.xlane.xlu1 %2513 }
0x14c0   :  { %v2516_v35 = vmul.f32 0.03125, %v2514_v33  ;;  %6251 = vrsqrt.f32 %v2525_v32 }
0x14c2   :  { %v2526_v36 = vadd.f32 1e-06, %v2516_v35 }
0x14c4   :  { %6253 = vrsqrt.f32 %v2526_v36 }
0x14cd   :  { %v6252_v38 = vpop.eup %6251 }
0x14ce   :  { %v2529_v17 = vmul.f32 %v6252_v38, %v2523_v39 }
0x14d1   :  { %v6254_v41 = vpop.eup %6253 }
0x14d2   :  { %v2530_v43 = vmul.f32 %v6254_v41, %v2524_v12 }
0x14d4   :  { %v2544_v44 = vpack.c.bf16 %v2530_v43, %v2529_v17 }
0x14d6   :  { %5774 = vmatmul.mubr.msk.bf16.vlgmr.msra.gmra.mxu0 %vm63_vm0, %v2544_v44 }
0x14d7   :  { %5815 = vmatprep.mubr.msk.bf16.mxu0 %vm6360_vm1, %v6359_v4 }
0x1596   :  { %v2630_v45 = vpop.f32.mrf.mxu0 }
0x1597   :  { %v7079_v46 = vpack.c.bf16 %v2630_v45, %v2630_v45 }
0x1598   :  { %v5775_v47 = vpop.f32.mrf.mxu0 }
0x1599   :  { %2639 = vrot.lane.b32.xlu0 %v7079_v46, %s6362_s22 }
0x159a   :  { %v2633_v48 = vpop.f32.mrf.mxu0 }
0x159b   :  { %v7128_v24 = vpack.c.bf16 %v2633_v48, %v2633_v48 }
0x159c   :  { %v5776_v49 = vpop.f32.mrf.mxu0 }
0x159d   :  { %2749 = vrot.lane.b32.xlu0 %v7079_v46, %s6363_s25 }
0x15a1   :  { %2747 = vrot.lane.b32.xlu0 %v7079_v46, %s6364_s26 }
0x160b   :  { %v2640_v52 = vpop.permute.xlu0 %2639 }
0x160c   :  { %v2645_v34 = vsel %vm196_vm2, %v2640_v52, 0 }
0x160d   :  { %5778 = vmatpush3.bf16.xpose.msra.mxu1 %v2645_v34 }
0x160e   :  { %5783 = vmatprep.subr.bf16.mxu1 %v6359_v4 }
0x160f   :  { %v2750_v6 = vpop.permute.xlu0 %2749 }
0x1610   :  { %v2755_v8 = vsel %vm196_vm2, %v2750_v6, 0 }
0x1613   :  { %v2748_v10 = vpop.permute.xlu0 %2747 }
0x1614   :  { %5780 = vmatmul.mubr.msk.bf16.vlgmr.msra.gmra.mxu1 %vm196_vm2, %v7079_v46 }
0x1615   :  { %5785 = vmatprep.mubr.msk.bf16.mxu1 %vm6360_vm1, %v6359_v4 }
0x16d4   :  { %v2681_v51 = vpop.f32.mrf.mxu1 }
0x16d5   :  { %v2682_v54 = vadd.f32 %v7096_v53, %v2681_v51 }
0x16d6   :  { %v5781_v55 = vpop.f32.mrf.mxu1 }
0x16d7   :  { %v2687_v57 = vsel %vm196_vm2, %v2682_v54, -inf }
0x16d8   :  { %2688 = vmax.xlane.f32.xlu1 %v2687_v57  ;;  %v2684_v56 = vpop.f32.mrf.mxu1  ;;  %v6335_v57 = vld [vmem:[%s7623_s2 + $0x18] sm:$0xff] }
0x16da   :  { %v5782_v58 = vpop.f32.mrf.mxu1 }
0x1761   :  { %v2689_v9 = vpop.xlane.xlu1 %2688 }
0x1762   :  { %v2690_v59 = vsub.f32 %v2682_v54, %v2689_v9 }
0x1764   :  { %v2691_v62 = vmul.f32 1.442695, %v2690_v59 }
0x1766   :  { %6255 = vpow2.f32 %v2691_v62 }
0x1773   :  { %v6256_v42 = vpop.eup %6255 }
0x1774   :  { %v2693_v63 = vsel %vm196_vm2, %v6256_v42, 0.0 }
0x1775   :  { %2694 = vadd.xlane.f32.xlu1 %v2693_v63 }
0x1786   :  { %2699 = vrot.lane.b32.xlu1 %v7079_v46, %s7651_s0 }
0x17fe   :  { %v2695_v0 = vpop.xlane.xlu1 %2694 }
0x17ff   :  { %6257 = vrcp.f32 %v2695_v0 }
0x1802   :  { %v2700_v2 = vpop.permute.xlu1 %2699 }
0x1803   :  { %v2705_v3 = vsel %vm260_vm3, %v2700_v2, 0 }
0x1804   :  { %5784 = vmatpush3.bf16.msra.mxu1 %v2705_v3 }
0x1805   :  { %5789 = vmatprep.subr.bf16.mxu1 %v6359_v4 }
0x180c   :  { %v6258_v60 = vpop.eup %6257 }
0x180d   :  { %v2697_v5 = vmul.f32 %v6258_v60, %v6256_v42 }
0x180f   :  { %v2698_v7 = vpack.c.bf16 %v2697_v5, %v2697_v5 }
0x1811   :  { %5786 = vmatmul.mubr.msk.bf16.vlgmr.msra.gmra.mxu1 %vm196_vm2, %v2698_v7  ;;  %v6336_v7 = vld [vmem:[%s7623_s2 + $0x10] sm:$0xff]  ;;  %s7653_s2 = smov 48  }
0x1812   :  { %5790 = vmatpush3.bf16.xpose.msra.mxu1 %v2755_v8  ;;  %5791 = vmatprep.mubr.msk.bf16.mxu1 %vm6360_vm1, %v6359_v4 }
0x1813   :  { %5795 = vmatprep.subr.bf16.mxu1 %v6359_v4 }
0x1819   :  { %5792 = vmatmul.mubr.msk.bf16.vlgmr.msra.gmra.mxu1 %vm196_vm2, %v2748_v10 }
0x181a   :  { %5797 = vmatprep.mubr.msk.bf16.mxu1 %vm6360_vm1, %v6359_v4 }
0x18d1   :  { %v7113_v11 = vpop.f32.mrf.mxu1 }
0x18d3   :  { %v5787_v61 = vpop.f32.mrf.mxu1 }
0x18d5   :  { %v2744_v13 = vpop.f32.mrf.mxu1 }
0x18d7   :  { %v5788_v14 = vpop.f32.mrf.mxu1 }
0x18d9   :  { %v2791_v15 = vpop.f32.mrf.mxu1 }
0x18da   :  { %v2792_v18 = vadd.f32 %v7118_v1, %v2791_v15 }
0x18db   :  { %v5793_v19 = vpop.f32.mrf.mxu1 }
0x18dc   :  { %v2797_v21 = vsel %vm196_vm2, %v2792_v18, -inf }
0x18dd   :  { %2798 = vmax.xlane.f32.xlu1 %v2797_v21  ;;  %v2794_v22 = vpop.f32.mrf.mxu1 }
0x18df   :  { %v5794_v23 = vpop.f32.mrf.mxu1 }
0x18ee   :  { %2859 = vrot.lane.b32.xlu1 %v7079_v46, %s6366_s30 }
0x18f2   :  { %2857 = vrot.lane.b32.xlu1 %v7079_v46, %s6367_s16 }
0x18f6   :  { %2967 = vrot.lane.b32.xlu1 %v7079_v46, %s6369_s18 }
0x18fa   :  { %3204 = vrot.lane.b32.xlu1 %v7128_v24, %s6363_s25 }
0x18fe   :  { %3314 = vrot.lane.b32.xlu1 %v7128_v24, %s6366_s30 }
0x1902   :  { %3424 = vrot.lane.b32.xlu1 %v7128_v24, %s6368_s17 }
0x1966   :  { %v2799_v25 = vpop.xlane.xlu1 %2798 }
0x1967   :  { %v2800_v26 = vsub.f32 %v2792_v18, %v2799_v25 }
0x1969   :  { %v2801_v27 = vmul.f32 1.442695, %v2800_v26 }
0x196a   :  { %v2860_v30 = vpop.permute.xlu1 %2859 }
0x196b   :  { %6259 = vpow2.f32 %v2801_v27  ;;  %v2865_v43 = vsel %vm196_vm2, %v2860_v30, 0 }
0x196e   :  { %v2858_v36 = vpop.permute.xlu1 %2857 }
0x1972   :  { %v2968_v12 = vpop.permute.xlu1 %2967 }
0x1976   :  { %v3205_v44 = vpop.permute.xlu1 %3204 }
0x1977   :  { %v3210_v45 = vsel %vm196_vm2, %v3205_v44, 0 }
0x1978   :  { %v6260_v40 = vpop.eup %6259 }
0x1979   :  { %v2803_v28 = vsel %vm196_vm2, %v6260_v40, 0.0 }
0x197a   :  { %2804 = vadd.xlane.f32.xlu0 %v2803_v28  ;;  %v3315_v47 = vpop.permute.xlu1 %3314 }
0x197b   :  { %v3320_v49 = vsel %vm196_vm2, %v3315_v47, 0 }
0x197e   :  { %v3425_v52 = vpop.permute.xlu1 %3424 }
0x197f   :  { %v3430_v51 = vsel %vm196_vm2, %v3425_v52, 0 }
0x1990   :  { %2809 = vrot.lane.b32.xlu0 %v7079_v46, %s7652_s1 }
0x1994   :  { %2969 = vrot.lane.b32.xlu0 %v7079_v46, %s6368_s17 }
0x1998   :  { %3094 = vrot.lane.b32.xlu0 %v7128_v24, %s6362_s22 }
0x199c   :  { %3202 = vrot.lane.b32.xlu0 %v7128_v24, %s6364_s26 }
0x19a0   :  { %3312 = vrot.lane.b32.xlu0 %v7128_v24, %s6367_s16 }
0x19a4   :  { %3422 = vrot.lane.b32.xlu0 %v7128_v24, %s6369_s18 }
0x1a03   :  { %v2805_v29 = vpop.xlane.xlu0 %2804 }
0x1a04   :  { %6261 = vrcp.f32 %v2805_v29 }
0x1a07   :  { %v2810_v31 = vpop.permute.xlu0 %2809 }
0x1a08   :  { %v2815_v32 = vsel %vm260_vm3, %v2810_v31, 0 }
0x1a09   :  { %5796 = vmatpush3.bf16.msra.mxu1 %v2815_v32 }
0x1a0a   :  { %5801 = vmatprep.subr.bf16.mxu1 %v6359_v4 }
0x1a0b   :  { %v2970_v33 = vpop.permute.xlu0 %2969 }
0x1a0c   :  { %v2975_v35 = vsel %vm196_vm2, %v2970_v33, 0 }
0x1a0d   :  { %5814 = vmatpush3.bf16.xpose.msra.mxu0 %v2975_v35 }
0x1a0e   :  { %5825 = vmatprep.subr.bf16.mxu0 %v6359_v4 }
0x1a0f   :  { %v3095_v38 = vpop.permute.xlu0 %3094 }
0x1a10   :  { %v3100_v41 = vsel %vm196_vm2, %v3095_v38, 0 }
0x1a11   :  { %v6262_v37 = vpop.eup %6261 }
0x1a12   :  { %v2807_v39 = vmul.f32 %v6262_v37, %v6260_v40 }
0x1a13   :  { %v3203_v48 = vpop.permute.xlu0 %3202 }
0x1a14   :  { %5816 = vmatmul.mubr.msk.bf16.vlgmr.msra.gmra.mxu0 %vm196_vm2, %v2968_v12  ;;  %v2808_v17 = vpack.c.bf16 %v2807_v39, %v2807_v39 }
0x1a15   :  { %5826 = vmatpush3.bf16.xpose.msra.mxu0 %v3100_v41  ;;  %5827 = vmatprep.mubr.msk.bf16.mxu0 %vm6360_vm1, %v6359_v4 }
0x1a16   :  { %5798 = vmatmul.mubr.msk.bf16.vlgmr.msra.gmra.mxu1 %vm196_vm2, %v2808_v17  ;;  %5837 = vmatprep.subr.bf16.mxu0 %v6359_v4 }
0x1a17   :  { %5802 = vmatpush3.bf16.xpose.msra.mxu1 %v2865_v43  ;;  %5803 = vmatprep.mubr.msk.bf16.mxu1 %vm6360_vm1, %v6359_v4  ;;  %v3313_v34 = vpop.permute.xlu0 %3312 }
0x1a18   :  { %5807 = vmatprep.subr.bf16.mxu1 %v6359_v4 }
0x1a1b   :  { %v3423_v54 = vpop.permute.xlu0 %3422 }
0x1a1c   :  { %5828 = vmatmul.mubr.msk.bf16.vlgmr.msra.gmra.mxu0 %vm196_vm2, %v7128_v24 }
0x1a1d   :  { %5838 = vmatpush3.bf16.xpose.msra.mxu0 %v3210_v45  ;;  %5839 = vmatprep.mubr.msk.bf16.mxu0 %vm6360_vm1, %v6359_v4 }
0x1a1e   :  { %5804 = vmatmul.mubr.msk.bf16.vlgmr.msra.gmra.mxu1 %vm196_vm2, %v2858_v36  ;;  %5849 = vmatprep.subr.bf16.mxu0 %v6359_v4 }
0x1a1f   :  { %5809 = vmatprep.mubr.msk.bf16.mxu1 %vm6360_vm1, %v6359_v4 }
0x1a24   :  { %5840 = vmatmul.mubr.msk.bf16.vlgmr.msra.gmra.mxu0 %vm196_vm2, %v3203_v48 }
0x1a25   :  { %5850 = vmatpush3.bf16.xpose.msra.mxu0 %v3320_v49  ;;  %5851 = vmatprep.mubr.msk.bf16.mxu0 %vm6360_vm1, %v6359_v4 }
0x1a26   :  { %5861 = vmatprep.subr.bf16.mxu0 %v6359_v4 }
0x1a2c   :  { %5852 = vmatmul.mubr.msk.bf16.vlgmr.msra.gmra.mxu0 %vm196_vm2, %v3313_v34 }
0x1a2d   :  { %5862 = vmatpush3.bf16.xpose.msra.mxu0 %v3430_v51  ;;  %5863 = vmatprep.mubr.msk.bf16.mxu0 %vm6360_vm1, %v6359_v4 }
0x1a2e   :  { %5873 = vmatprep.subr.bf16.mxu0 %v6359_v4 }
0x1a34   :  { %5864 = vmatmul.mubr.msk.bf16.vlgmr.msra.gmra.mxu0 %vm196_vm2, %v3423_v54 }
0x1a35   :  { %5877 = vmatprep.mubr.msk.bf16.mxu0 %vm6360_vm1, %v6359_v4 }
0x1ad4   :  { %v3011_v55 = vpop.f32.mrf.mxu0 }
0x1ad5   :  { %v3012_v56 = vadd.f32 %v6335_v57, %v3011_v55 }
0x1ad6   :  { %v7188_v58 = vpop.f32.mrf.mxu1  ;;  %v5817_v9 = vpop.f32.mrf.mxu0 }
0x1ad7   :  { %v3017_v59 = vsel %vm196_vm2, %v3012_v56, -inf }
0x1ad8   :  { %v5799_v62 = vpop.f32.mrf.mxu1  ;;  %3018 = vmax.xlane.f32.xlu0 %v3017_v59  ;;  %v3014_v42 = vpop.f32.mrf.mxu0 }
0x1ada   :  { %v2854_v63 = vpop.f32.mrf.mxu1  ;;  %v5818_v0 = vpop.f32.mrf.mxu0 }
0x1adc   :  { %v5800_v2 = vpop.f32.mrf.mxu1  ;;  %v3136_v3 = vpop.f32.mrf.mxu0 }
0x1add   :  { %v3137_v60 = vadd.f32 %v7096_v53, %v3136_v3 }
0x1ade   :  { %v2901_v5 = vpop.f32.mrf.mxu1  ;;  %v5829_v6 = vpop.f32.mrf.mxu0 }
0x1adf   :  { %v2902_v8 = vadd.f32 %v6336_v7, %v2901_v5  ;;  %v3142_v10 = vsel %vm196_vm2, %v3137_v60, -inf }
0x1ae0   :  { %v5805_v61 = vpop.f32.mrf.mxu1  ;;  %3143 = vmax.xlane.f32.xlu0 %v3142_v10  ;;  %v3139_v13 = vpop.f32.mrf.mxu0 }
0x1ae1   :  { %v2907_v14 = vsel %vm196_vm2, %v2902_v8, -inf }
0x1ae2   :  { %v2904_v15 = vpop.f32.mrf.mxu1  ;;  %2908 = vmax.xlane.f32.xlu1 %v2907_v14  ;;  %v5830_v18 = vpop.f32.mrf.mxu0 }
0x1ae4   :  { %v5806_v19 = vpop.f32.mrf.mxu1  ;;  %v3246_v21 = vpop.f32.mrf.mxu0 }
0x1ae5   :  { %v3247_v53 = vadd.f32 %v7118_v1, %v3246_v21 }
0x1ae6   :  { %v5841_v22 = vpop.f32.mrf.mxu0 }
0x1ae7   :  { %v3252_v23 = vsel %vm196_vm2, %v3247_v53, -inf }
0x1ae8   :  { %3253 = vmax.xlane.f32.xlu1 %v3252_v23  ;;  %v3249_v25 = vpop.f32.mrf.mxu0 }
0x1aea   :  { %v5842_v26 = vpop.f32.mrf.mxu0 }
0x1aec   :  { %v3356_v27 = vpop.f32.mrf.mxu0 }
0x1aed   :  { %v3357_v40 = vadd.f32 %v6336_v7, %v3356_v27 }
0x1aee   :  { %v5853_v28 = vpop.f32.mrf.mxu0 }
0x1aef   :  { %v3362_v29 = vsel %vm196_vm2, %v3357_v40, -inf }
0x1af0   :  { %3363 = vmax.xlane.f32.xlu0 %v3362_v29  ;;  %v3359_v30 = vpop.f32.mrf.mxu0 }
0x1af2   :  { %v5854_v31 = vpop.f32.mrf.mxu0 }
0x1af4   :  { %v3466_v32 = vpop.f32.mrf.mxu0 }
0x1af5   :  { %v3467_v33 = vadd.f32 %v6335_v57, %v3466_v32 }
0x1af6   :  { %v5865_v35 = vpop.f32.mrf.mxu0 }
0x1af7   :  { %v3472_v36 = vsel %vm196_vm2, %v3467_v33, -inf }
0x1af8   :  { %3473 = vmax.xlane.f32.xlu1 %v3472_v36  ;;  %v3469_v1 = vpop.f32.mrf.mxu0 }
0x1afa   :  { %v5866_v37 = vpop.f32.mrf.mxu0 }
0x1b61   :  { %v3019_v38 = vpop.xlane.xlu0 %3018 }
0x1b62   :  { %v3020_v39 = vsub.f32 %v3012_v56, %v3019_v38 }
0x1b64   :  { %v3021_v12 = vmul.f32 1.442695, %v3020_v39 }
0x1b66   :  { %6263 = vpow2.f32 %v3021_v12 }
0x1b69   :  { %v3144_v41 = vpop.xlane.xlu0 %3143 }
0x1b6a   :  { %v3145_v17 = vsub.f32 %v3137_v60, %v3144_v41 }
0x1b6b   :  { %v2909_v43 = vpop.xlane.xlu1 %2908 }
0x1b6c   :  { %v3146_v44 = vmul.f32 1.442695, %v3145_v17  ;;  %v2910_v45 = vsub.f32 %v2902_v8, %v2909_v43 }
0x1b6e   :  { %6265 = vpow2.f32 %v3146_v44  ;;  %v2911_v47 = vmul.f32 1.442695, %v2910_v45 }
0x1b70   :  { %6267 = vpow2.f32 %v2911_v47 }
0x1b71   :  { %v3254_v48 = vpop.xlane.xlu1 %3253 }
0x1b72   :  { %v3255_v49 = vsub.f32 %v3247_v53, %v3254_v48 }
0x1b73   :  { %v6264_v52 = vpop.eup %6263 }
0x1b74   :  { %v3256_v34 = vmul.f32 1.442695, %v3255_v49  ;;  %v3023_v51 = vsel %vm196_vm2, %v6264_v52, 0.0 }
0x1b75   :  { %3024 = vadd.xlane.f32.xlu1 %v3023_v51 }
0x1b76   :  { %6269 = vpow2.f32 %v3256_v34 }
0x1b79   :  { %v3364_v54 = vpop.xlane.xlu0 %3363 }
0x1b7a   :  { %v3365_v55 = vsub.f32 %v3357_v40, %v3364_v54 }
0x1b7b   :  { %v6266_v57 = vpop.eup %6265 }
0x1b7c   :  { %v3366_v56 = vmul.f32 1.442695, %v3365_v55  ;;  %v3148_v9 = vsel %vm196_vm2, %v6266_v57, 0.0 }
0x1b7d   :  { %v6268_v59 = vpop.eup %6267  ;;  %3149 = vadd.xlane.f32.xlu0 %v3148_v9 }
0x1b7e   :  { %6271 = vpow2.f32 %v3366_v56  ;;  %v2913_v62 = vsel %vm196_vm2, %v6268_v59, 0.0 }
0x1b81   :  { %2914 = vadd.xlane.f32.xlu0 %v2913_v62  ;;  %v3474_v3 = vpop.xlane.xlu1 %3473 }
0x1b82   :  { %v3475_v60 = vsub.f32 %v3467_v33, %v3474_v3 }
0x1b83   :  { %v6270_v42 = vpop.eup %6269 }
0x1b84   :  { %v3258_v63 = vsel %vm196_vm2, %v6270_v42, 0.0  ;;  %v3476_v5 = vmul.f32 1.442695, %v3475_v60  ;;  %v6152_v60 = vld [vmem:[%s7626_s5 + $0x10] sm:$0xff]  }
0x1b85   :  { %3259 = vadd.xlane.f32.xlu1 %v3258_v63 }
0x1b86   :  { %6273 = vpow2.f32 %v3476_v5 }
0x1b8b   :  { %v7205_v0 = vpop.eup %6271 }
0x1b8c   :  { %v3368_v2 = vsel %vm196_vm2, %v7205_v0, 0.0 }
0x1b8d   :  { %3369 = vadd.xlane.f32.xlu1 %v3368_v2 }
0x1b93   :  { %v7221_v6 = vpop.eup %6273 }
0x1b94   :  { %v3478_v7 = vsel %vm196_vm2, %v7221_v6, 0.0 }
0x1b97   :  { %2919 = vrot.lane.b32.xlu0 %v7079_v46, %s7653_s2 }
0x1b9e   :  { %3029 = vrot.lane.b32.xlu1 %v7079_v46, %s7654_s4 }
0x1ba2   :  { %3154 = vrot.lane.b32.xlu1 %v7128_v24, %s7651_s0 }
0x1ba6   :  { %3264 = vrot.lane.b32.xlu1 %v7128_v24, %s7652_s1 }
0x1baa   :  { %3374 = vrot.lane.b32.xlu1 %v7128_v24, %s7653_s2 }
0x1bae   :  { %3484 = vrot.lane.b32.xlu1 %v7128_v24, %s7654_s4 }
0x1bb6   :  { %3479 = vadd.xlane.f32.xlu0 %v3478_v7  ;;  %v3567_v7 = vsel %vm63_vm0, %v6152_v60, 0 }
0x1bfe   :  { %v3025_v10 = vpop.xlane.xlu1 %3024 }
0x1c06   :  { %v3150_v46 = vpop.xlane.xlu0 %3149 }
0x1c0a   :  { %v2915_v8 = vpop.xlane.xlu0 %2914 }
0x1c0b   :  { %6275 = vrcp.f32 %v2915_v8 }
0x1c0c   :  { %6277 = vrcp.f32 %v3025_v10 }
0x1c0d   :  { %6279 = vrcp.f32 %v3150_v46 }
0x1c0e   :  { %v2920_v61 = vpop.permute.xlu0 %2919  ;;  %v3260_v14 = vpop.xlane.xlu1 %3259 }
0x1c0f   :  { %v2925_v13 = vsel %vm260_vm3, %v2920_v61, 0  ;;  %6281 = vrcp.f32 %v3260_v14 }
0x1c10   :  { %5808 = vmatpush3.bf16.msra.mxu1 %v2925_v13 }
0x1c11   :  { %5819 = vmatprep.subr.bf16.mxu1 %v6359_v4 }
0x1c16   :  { %v3370_v15 = vpop.xlane.xlu1 %3369 }
0x1c17   :  { %6283 = vrcp.f32 %v3370_v15 }
0x1c18   :  { %v6276_v24 = vpop.eup %6275 }
0x1c19   :  { %v2917_v18 = vmul.f32 %v6276_v24, %v6268_v59  ;;  %v6278_v22 = vpop.eup %6277 }
0x1c1a   :  { %v3030_v19 = vpop.permute.xlu1 %3029  ;;  %v3027_v23 = vmul.f32 %v6278_v22, %v6264_v52  ;;  %v6280_v27 = vpop.eup %6279 }
0x1c1b   :  { %v2918_v21 = vpack.c.bf16 %v2917_v18, %v2917_v18  ;;  %v3035_v53 = vsel %vm260_vm3, %v3030_v19, 0  ;;  %v3152_v28 = vmul.f32 %v6280_v27, %v6266_v57 }
0x1c1c   :  { %v3028_v26 = vpack.c.bf16 %v3027_v23, %v3027_v23  ;;  %v6282_v31 = vpop.eup %6281 }
0x1c1d   :  { %5810 = vmatmul.mubr.msk.bf16.vlgmr.msra.gmra.mxu1 %vm196_vm2, %v2918_v21  ;;  %v3153_v30 = vpack.c.bf16 %v3152_v28, %v3152_v28  ;;  %v3262_v33 = vmul.f32 %v6282_v31, %v6270_v42  ;;  %v6151_v42 = vld [vmem:[%s7626_s5 + $0x18] sm:$0xff]  }
0x1c1e   :  { %5820 = vmatpush3.bf16.msra.mxu1 %v3035_v53  ;;  %5821 = vmatprep.mubr.msk.bf16.mxu1 %vm6360_vm1, %v6359_v4  ;;  %v3155_v25 = vpop.permute.xlu1 %3154  ;;  %v3570_v2 = vsel %vm63_vm0, %v6151_v42, 0 }
0x1c1f   :  { %5831 = vmatprep.subr.bf16.mxu1 %v6359_v4  ;;  %v3160_v40 = vsel %vm260_vm3, %v3155_v25, 0  ;;  %v3263_v36 = vpack.c.bf16 %v3262_v33, %v3262_v33  ;;  %5874 = vmatpush3.bf16.xpose.msra.mxu0 %v3570_v2 }
0x1c20   :  { %5875 = vmatprep.subr.bf16.mxu0 %v6359_v4 }
0x1c22   :  { %v3265_v29 = vpop.permute.xlu1 %3264 }
0x1c23   :  { %v3270_v32 = vsel %vm260_vm3, %v3265_v29, 0 }
0x1c24   :  { %v6284_v1 = vpop.eup %6283 }
0x1c25   :  { %5822 = vmatmul.mubr.msk.bf16.vlgmr.msra.gmra.mxu1 %vm196_vm2, %v3028_v26  ;;  %v3372_v38 = vmul.f32 %v6284_v1, %v7205_v0 }
0x1c26   :  { %5832 = vmatpush3.bf16.msra.mxu1 %v3160_v40  ;;  %5833 = vmatprep.mubr.msk.bf16.mxu1 %vm6360_vm1, %v6359_v4  ;;  %v3375_v35 = vpop.permute.xlu1 %3374 }
0x1c27   :  { %5843 = vmatprep.subr.bf16.mxu1 %v6359_v4  ;;  %v3380_v37 = vsel %vm260_vm3, %v3375_v35, 0  ;;  %v3373_v12 = vpack.c.bf16 %v3372_v38, %v3372_v38  ;;  %5876 = vmatpush3.bf16.xpose.msra.mxu0 %v3567_v7 }
0x1c28   :  { %5889 = vmatprep.subr.bf16.mxu0 %v6359_v4 }
0x1c2a   :  { %v3485_v39 = vpop.permute.xlu1 %3484 }
0x1c2b   :  { %v3490_v41 = vsel %vm260_vm3, %v3485_v39, 0 }
0x1c2d   :  { %5834 = vmatmul.mubr.msk.bf16.vlgmr.msra.gmra.mxu1 %vm196_vm2, %v3153_v30 }
0x1c2e   :  { %5844 = vmatpush3.bf16.msra.mxu1 %v3270_v32  ;;  %5845 = vmatprep.mubr.msk.bf16.mxu1 %vm6360_vm1, %v6359_v4 }
0x1c2f   :  { %5855 = vmatprep.subr.bf16.mxu1 %v6359_v4 }
0x1c35   :  { %5846 = vmatmul.mubr.msk.bf16.vlgmr.msra.gmra.mxu1 %vm196_vm2, %v3263_v36  ;;  %v6154_v36 = vld [vmem:[%s7629_s8 + $0x30] sm:$0xff]  }
0x1c36   :  { %5856 = vmatpush3.bf16.msra.mxu1 %v3380_v37  ;;  %5857 = vmatprep.mubr.msk.bf16.mxu1 %vm6360_vm1, %v6359_v4  ;;  %v3743_v1 = vsel %vm63_vm0, %v6154_v36, 0  ;;  %v6155_v37 = vld [vmem:[%s7629_s8 + $0x28] sm:$0xff]  }
0x1c37   :  { %5867 = vmatprep.subr.bf16.mxu1 %v6359_v4  ;;  %v3740_v38 = vsel %vm63_vm0, %v6155_v37, 0 }
0x1c3d   :  { %5858 = vmatmul.mubr.msk.bf16.vlgmr.msra.gmra.mxu1 %vm196_vm2, %v3373_v12 }
0x1c3e   :  { %5868 = vmatpush3.bf16.msra.mxu1 %v3490_v41  ;;  %5869 = vmatprep.mubr.msk.bf16.mxu1 %vm6360_vm1, %v6359_v4 }
0x1c3f   :  { %v3480_v17 = vpop.xlane.xlu0 %3479  ;;  %5881 = vmatprep.subr.bf16.mxu1 %v6359_v4 }
0x1c40   :  { %6285 = vrcp.f32 %v3480_v17 }
0x1c4d   :  { %v6286_v43 = vpop.eup %6285 }
0x1c4e   :  { %v3482_v44 = vmul.f32 %v6286_v43, %v7221_v6 }
0x1c50   :  { %v3483_v45 = vpack.c.bf16 %v3482_v44, %v3482_v44 }
0x1c52   :  { %5870 = vmatmul.mubr.msk.bf16.vlgmr.msra.gmra.mxu1 %vm196_vm2, %v3483_v45 }
0x1c53   :  { %5885 = vmatprep.mubr.msk.bf16.mxu1 %vm6360_vm1, %v6359_v4 }
0x1cdd   :  { %v2961_v47 = vpop.f32.mrf.mxu1 }
0x1cdf   :  { %v5811_v48 = vpop.f32.mrf.mxu1 }
0x1ce1   :  { %v2964_v49 = vpop.f32.mrf.mxu1 }
0x1ce3   :  { %v5812_v52 = vpop.f32.mrf.mxu1 }
0x1ce5   :  { %v3071_v34 = vpop.f32.mrf.mxu1 }
0x1ce7   :  { %v5823_v51 = vpop.f32.mrf.mxu1 }
0x1ce8   :  { %v6158_v51 = vld [vmem:[%s7628_s7 + $0x10] sm:$0xff]  }
0x1ce9   :  { %v3074_v54 = vpop.f32.mrf.mxu1 }
0x1cea   :  { %v3661_v54 = vsel %vm63_vm0, %v6158_v51, 0 }
0x1ceb   :  { %v5824_v55 = vpop.f32.mrf.mxu1 }
0x1ced   :  { %v3196_v57 = vpop.f32.mrf.mxu1 }
0x1cef   :  { %v5835_v56 = vpop.f32.mrf.mxu1 }
0x1cf1   :  { %v3199_v9 = vpop.f32.mrf.mxu1 }
0x1cf3   :  { %v5836_v59 = vpop.f32.mrf.mxu1 }
0x1cf5   :  { %v3306_v62 = vpop.f32.mrf.mxu1 }
0x1cf6   :  { %v6093_v63 = vpack.i.bf16 %v3306_v62, %v7188_v58  ;;  %v5226_v62 = vld [vmem:[%s7627_s6 + $0x1] ss:$0 sm:$0xff] }
0x1cf7   :  { %v5847_v0 = vpop.f32.mrf.mxu1 }
0x1cf8   :  { %6094 = vrot.lane.b32.xlu1 %v6093_v63, %s6372_s23 }
0x1cf9   :  { %v3309_v3 = vpop.f32.mrf.mxu1 }
0x1cfb   :  { %v5848_v5 = vpop.f32.mrf.mxu1 }
0x1cfd   :  { %v3416_v6 = vpop.f32.mrf.mxu1 }
0x1cfe   :  { %v6098_v46 = vpack.i.bf16 %v3416_v6, %v2961_v47 }
0x1cff   :  { %v5859_v8 = vpop.f32.mrf.mxu1 }
0x1d00   :  { %6099 = vrot.lane.b32.xlu1 %v6098_v46, %s7649_s28 }
0x1d01   :  { %v3419_v58 = vpop.f32.mrf.mxu1 }
0x1d03   :  { %v5860_v10 = vpop.f32.mrf.mxu1 }
0x1d12   :  { %v3526_v61 = vpop.f32.mrf.mxu1 }
0x1d13   :  { %v6103_v13 = vpack.i.bf16 %v3526_v61, %v3071_v34 }
0x1d14   :  { %v5871_v14 = vpop.f32.mrf.mxu1 }
0x1d15   :  { %6104 = vrot.lane.b32.xlu1 %v6103_v13, %s7650_s24 }
0x1d16   :  { %v3529_v15 = vpop.f32.mrf.mxu1 }
0x1d18   :  { %v5872_v24 = vpop.f32.mrf.mxu1 }
0x1d6a   :  { %v6095_v18 = vpop.permute.xlu1 %6094 }
0x1d6b   :  { %v6097_v21 = vunpack.i.h.bf16 %v6095_v18  ;;  %v6096_v53 = vunpack.i.l.bf16 %v6095_v18 }
0x1d6d   :  { %v3544_v26 = vsel %vm196_vm2, %v3196_v57, %v6097_v21  ;;  %v3089_v27 = vsel %vm196_vm2, %v7113_v11, %v6096_v53  ;;  %v6153_v11 = vld [vmem:[%s7629_s8 + $0x38] sm:$0xff]  }
0x1d6e   :  { %v3746_v35 = vsel %vm63_vm0, %v6153_v11, 0 }
0x1d72   :  { %v6100_v19 = vpop.permute.xlu1 %6099 }
0x1d73   :  { %v6102_v22 = vunpack.i.h.bf16 %v6100_v19  ;;  %v6101_v23 = vunpack.i.l.bf16 %v6100_v19 }
0x1d75   :  { %v3090_v29 = vsel %vm647_vm4, %v3089_v27, %v6101_v23  ;;  %v3545_v30 = vsel %vm647_vm4, %v3544_v26, %v6102_v22 }
0x1d87   :  { %v6105_v25 = vpop.permute.xlu1 %6104 }
0x1d88   :  { %v6107_v40 = vunpack.i.h.bf16 %v6105_v25  ;;  %v6106_v28 = vunpack.i.l.bf16 %v6105_v25 }
0x1d8a   :  { %v3091_v31 = vsel %vm649_vm5, %v3090_v29, %v6106_v28  ;;  %v3546_v32 = vsel %vm649_vm5, %v3545_v30, %v6107_v40 }
0x1d8b   :  { %v3552_v33 = vpack.c.bf16 %v3546_v32, %v3091_v31 }
0x1d8d   :  { %5878 = vmatmul.mubr.msk.bf16.vlgmr.msra.gmra.mxu0 %vm63_vm0, %v3552_v33 }
0x1d8e   :  { %5897 = vmatprep.mubr.msk.bf16.mxu0 %vm6360_vm1, %v6359_v4  ;;  %5890 = vmatpush3.bf16.xpose.msra.mxu0 %v3746_v35 }
0x1d8f   :  { %5891 = vmatprep.subr.bf16.mxu0 %v6359_v4 }
0x1d96   :  { %5892 = vmatpush3.bf16.xpose.msra.mxu0 %v3743_v1 }
0x1d97   :  { %5893 = vmatprep.subr.bf16.mxu0 %v6359_v4 }
0x1d9e   :  { %5894 = vmatpush3.bf16.xpose.msra.mxu0 %v3740_v38 }
0x1d9f   :  { %5895 = vmatprep.subr.bf16.mxu0 %v6359_v4 }
0x1e4d   :  { %v3606_v39 = vpop.f32.mrf.mxu0 }
0x1e4e   :  { %v7297_v12 = vadd.f32 %v3606_v39, %v7045_v16  ;;  %v6156_v16 = vld [vmem:[%s7629_s8 + $0x20] sm:$0xff]  }
0x1e4f   :  { %v5879_v41 = vpop.f32.mrf.mxu0  ;;  %v3737_v52 = vsel %vm63_vm0, %v6156_v16, 0 }
0x1e50   :  { %v3617_v17 = vmul.f32 %v7297_v12, %v7297_v12  ;;  %5896 = vmatpush3.bf16.xpose.msra.mxu0 %v3737_v52  ;;  %v3633_v63 = vmul.f32 %v5226_v62, %v7297_v12 }
0x1e51   :  { %v3609_v43 = vpop.f32.mrf.mxu0  ;;  %5925 = vmatprep.subr.bf16.mxu0 %v6359_v4 }
0x1e52   :  { %v7302_v44 = vadd.f32 %v3609_v43, %v7050_v20  ;;  %v3619_v45 = vsel %vm63_vm0, %v3617_v17, 0.0  ;;  %v6157_v20 = vld [vmem:[%s7628_s7 + $0x18] sm:$0xff]  }
0x1e53   :  { %3620 = vadd.xlane.f32.xlu1 %v3619_v45  ;;  %v5880_v47 = vpop.f32.mrf.mxu0  ;;  %v3664_v34 = vsel %vm63_vm0, %v6157_v20, 0 }
0x1e54   :  { %v3618_v48 = vmul.f32 %v7302_v44, %v7302_v44  ;;  %5882 = vmatpush3.bf16.xpose.msra.mxu1 %v3664_v34  ;;  %v3634_v0 = vmul.f32 %v5226_v62, %v7302_v44 }
0x1e55   :  { %5883 = vmatprep.subr.bf16.mxu1 %v6359_v4 }
0x1e56   :  { %v3622_v49 = vsel %vm63_vm0, %v3618_v48, 0.0 }
0x1e57   :  { %3623 = vadd.xlane.f32.xlu0 %v3622_v49  ;;  %5898 = vmatmul.mubr.msk.bf16.vlgmr.msra.gmra.mxu0 %vm63_vm0, %v6785_v50 }
0x1e58   :  { %5927 = vmatprep.mubr.msk.bf16.mxu0 %vm6360_vm1, %v6359_v4 }
0x1e5c   :  { %5884 = vmatpush3.bf16.xpose.msra.mxu1 %v3661_v54 }
0x1e5d   :  { %5901 = vmatprep.subr.bf16.mxu1 %v6359_v4 }
0x1edc   :  { %v3621_v55 = vpop.xlane.xlu1 %3620 }
0x1edd   :  { %v3625_v57 = vmul.f32 0.03125, %v3621_v55 }
0x1edf   :  { %v3635_v56 = vadd.f32 1e-06, %v3625_v57 }
0x1ee0   :  { %v3624_v9 = vpop.xlane.xlu0 %3623 }
0x1ee1   :  { %v3626_v59 = vmul.f32 0.03125, %v3624_v9  ;;  %6287 = vrsqrt.f32 %v3635_v56 }
0x1ee3   :  { %v3636_v50 = vadd.f32 1e-06, %v3626_v59 }
0x1ee5   :  { %6289 = vrsqrt.f32 %v3636_v50 }
0x1eee   :  { %v6288_v42 = vpop.eup %6287 }
0x1eef   :  { %v3639_v3 = vmul.f32 %v6288_v42, %v3633_v63 }
0x1ef2   :  { %v6290_v2 = vpop.eup %6289 }
0x1ef3   :  { %v3640_v60 = vmul.f32 %v6290_v2, %v3634_v0 }
0x1ef5   :  { %v3646_v5 = vpack.c.bf16 %v3640_v60, %v3639_v3 }
0x1ef7   :  { %5886 = vmatmul.mubr.msk.bf16.vlgmr.msra.gmra.mxu1 %vm63_vm0, %v3646_v5 }
0x1ef8   :  { %5903 = vmatprep.mubr.msk.bf16.mxu1 %vm6360_vm1, %v6359_v4 }
0x1f17   :  { %v3782_v6 = vpop.f32.mrf.mxu0 }
0x1f18   :  { %v7335_v7 = vpack.c.bf16 %v3782_v6, %v3782_v6 }
0x1f19   :  { %v5899_v46 = vpop.f32.mrf.mxu0 }
0x1f1a   :  { %v3795_v8 = vsel %vm196_vm2, %v7335_v7, 0 }
0x1f1b   :  { %v3785_v58 = vpop.f32.mrf.mxu0  ;;  %5902 = vmatpush3.bf16.xpose.msra.mxu1 %v3795_v8 }
0x1f1c   :  { %5907 = vmatprep.subr.bf16.mxu1 %v6359_v4  ;;  %v7344_v24 = vpack.c.bf16 %v3785_v58, %v3785_v58 }
0x1f1d   :  { %v5900_v10 = vpop.f32.mrf.mxu0 }
0x1f1e   :  { %v4250_v47 = vsel %vm196_vm2, %v7344_v24, 0 }
0x1fb7   :  { %v3700_v61 = vpop.f32.mrf.mxu1 }
0x1fb8   :  { %v3789_v13 = vpack.c.bf16 %v3700_v61, %v3700_v61 }
0x1fb9   :  { %v5887_v14 = vpop.f32.mrf.mxu1 }
0x1fba   :  { %3899 = vrot.lane.b32.xlu1 %v3789_v13, %s6364_s26  ;;  %5904 = vmatmul.mubr.msk.bf16.vlgmr.msra.gmra.mxu1 %vm196_vm2, %v3789_v13 }
0x1fbb   :  { %v3703_v15 = vpop.f32.mrf.mxu1  ;;  %5909 = vmatprep.mubr.msk.bf16.mxu1 %vm6360_vm1, %v6359_v4 }
0x1fbc   :  { %v4244_v31 = vpack.c.bf16 %v3703_v15, %v3703_v15 }
0x1fbd   :  { %v5888_v18 = vpop.f32.mrf.mxu1 }
0x1fbe   :  { %4356 = vrot.lane.b32.xlu1 %v7344_v24, %s6364_s26 }
0x1fc2   :  { %4466 = vrot.lane.b32.xlu1 %v7344_v24, %s6367_s16 }
0x1fc6   :  { %4576 = vrot.lane.b32.xlu1 %v7344_v24, %s6369_s18 }
0x202c   :  { %v3900_v43 = vpop.permute.xlu1 %3899 }
0x2030   :  { %v4357_v48 = vpop.permute.xlu1 %4356 }
0x2031   :  { %v4362_v49 = vsel %vm196_vm2, %v4357_v48, 0 }
0x2034   :  { %v4467_v16 = vpop.permute.xlu1 %4466 }
0x2035   :  { %v4472_v20 = vsel %vm196_vm2, %v4467_v16, 0 }
0x2038   :  { %v4577_v34 = vpop.permute.xlu1 %4576 }
0x2039   :  { %v4582_v54 = vsel %vm196_vm2, %v4577_v34, 0 }
0x207a   :  { %v3831_v19 = vpop.f32.mrf.mxu1 }
0x207b   :  { %v3837_v21 = vsel %vm196_vm2, %v3831_v19, -inf }
0x207c   :  { %3838 = vmax.xlane.f32.xlu0 %v3837_v21  ;;  %v5905_v53 = vpop.f32.mrf.mxu1 }
0x207e   :  { %v3834_v22 = vpop.f32.mrf.mxu1 }
0x2080   :  { %v5906_v23 = vpop.f32.mrf.mxu1 }
0x2092   :  { %3850 = vrot.lane.b32.xlu0 %v7335_v7, %s6362_s22 }
0x2105   :  { %v3839_v25 = vpop.xlane.xlu0 %3838 }
0x2106   :  { %v3840_v26 = vsub.f32 %v3831_v19, %v3839_v25 }
0x2108   :  { %v3841_v27 = vmul.f32 1.442695, %v3840_v26 }
0x2109   :  { %v3851_v40 = vpop.permute.xlu0 %3850 }
0x210a   :  { %6291 = vpow2.f32 %v3841_v27  ;;  %v3856_v28 = vsel %vm260_vm3, %v3851_v40, 0 }
0x210b   :  { %5908 = vmatpush3.bf16.msra.mxu1 %v3856_v28 }
0x210c   :  { %5913 = vmatprep.subr.bf16.mxu1 %v6359_v4 }
0x2117   :  { %v6292_v29 = vpop.eup %6291 }
0x2118   :  { %v3843_v30 = vsel %vm196_vm2, %v6292_v29, 0.0 }
0x2119   :  { %3844 = vadd.xlane.f32.xlu0 %v3843_v30 }
0x212f   :  { %3901 = vrot.lane.b32.xlu0 %v7335_v7, %s6364_s26 }
0x2133   :  { %4011 = vrot.lane.b32.xlu0 %v7335_v7, %s6367_s16 }
0x2137   :  { %4009 = vrot.lane.b32.xlu0 %v3789_v13, %s6367_s16 }
0x213b   :  { %4121 = vrot.lane.b32.xlu0 %v7335_v7, %s6369_s18 }
0x213f   :  { %4119 = vrot.lane.b32.xlu0 %v3789_v13, %s6369_s18 }
0x2143   :  { %4354 = vrot.lane.b32.xlu0 %v4244_v31, %s6364_s26 }
0x2147   :  { %4464 = vrot.lane.b32.xlu0 %v4244_v31, %s6367_s16 }
0x214b   :  { %4574 = vrot.lane.b32.xlu0 %v4244_v31, %s6369_s18 }
0x21a2   :  { %v3845_v32 = vpop.xlane.xlu0 %3844 }
0x21a3   :  { %6293 = vrcp.f32 %v3845_v32 }
0x21a6   :  { %v3902_v33 = vpop.permute.xlu0 %3901 }
0x21a7   :  { %v3907_v17 = vsel %vm196_vm2, %v3902_v33, 0 }
0x21aa   :  { %v4012_v11 = vpop.permute.xlu0 %4011 }
0x21ab   :  { %v4017_v35 = vsel %vm196_vm2, %v4012_v11, 0 }
0x21ac   :  { %5926 = vmatpush3.bf16.xpose.msra.mxu0 %v4017_v35 }
0x21ad   :  { %5937 = vmatprep.subr.bf16.mxu0 %v6359_v4 }
0x21ae   :  { %v4010_v36 = vpop.permute.xlu0 %4009 }
0x21b0   :  { %v6294_v1 = vpop.eup %6293 }
0x21b1   :  { %v3847_v37 = vmul.f32 %v6294_v1, %v6292_v29 }
0x21b2   :  { %v4122_v38 = vpop.permute.xlu0 %4121 }
0x21b3   :  { %v3848_v39 = vpack.c.bf16 %v3847_v37, %v3847_v37  ;;  %v4127_v41 = vsel %vm196_vm2, %v4122_v38, 0  ;;  %5928 = vmatmul.mubr.msk.bf16.vlgmr.msra.gmra.mxu0 %vm196_vm2, %v4010_v36 }
0x21b4   :  { %5938 = vmatpush3.bf16.xpose.msra.mxu0 %v4127_v41  ;;  %5939 = vmatprep.mubr.msk.bf16.mxu0 %vm6360_vm1, %v6359_v4 }
0x21b5   :  { %5910 = vmatmul.mubr.msk.bf16.vlgmr.msra.gmra.mxu1 %vm196_vm2, %v3848_v39  ;;  %5949 = vmatprep.subr.bf16.mxu0 %v6359_v4 }
0x21b6   :  { %5914 = vmatpush3.bf16.xpose.msra.mxu1 %v3907_v17  ;;  %5915 = vmatprep.mubr.msk.bf16.mxu1 %vm6360_vm1, %v6359_v4  ;;  %v4120_v45 = vpop.permute.xlu0 %4119 }
0x21b7   :  { %5919 = vmatprep.subr.bf16.mxu1 %v6359_v4 }
0x21ba   :  { %v4355_v52 = vpop.permute.xlu0 %4354 }
0x21bb   :  { %5940 = vmatmul.mubr.msk.bf16.vlgmr.msra.gmra.mxu0 %vm196_vm2, %v4120_v45 }
0x21bc   :  { %5950 = vmatpush3.bf16.xpose.msra.mxu0 %v4250_v47  ;;  %5951 = vmatprep.mubr.msk.bf16.mxu0 %vm6360_vm1, %v6359_v4 }
0x21bd   :  { %5916 = vmatmul.mubr.msk.bf16.vlgmr.msra.gmra.mxu1 %vm196_vm2, %v3900_v43  ;;  %5961 = vmatprep.subr.bf16.mxu0 %v6359_v4 }
0x21be   :  { %5921 = vmatprep.mubr.msk.bf16.mxu1 %vm6360_vm1, %v6359_v4  ;;  %v4465_v51 = vpop.permute.xlu0 %4464 }
0x21c2   :  { %v4575_v55 = vpop.permute.xlu0 %4574 }
0x21c3   :  { %5952 = vmatmul.mubr.msk.bf16.vlgmr.msra.gmra.mxu0 %vm196_vm2, %v4244_v31 }
0x21c4   :  { %5962 = vmatpush3.bf16.xpose.msra.mxu0 %v4362_v49  ;;  %5963 = vmatprep.mubr.msk.bf16.mxu0 %vm6360_vm1, %v6359_v4 }
0x21c5   :  { %5973 = vmatprep.subr.bf16.mxu0 %v6359_v4 }
0x21cb   :  { %5964 = vmatmul.mubr.msk.bf16.vlgmr.msra.gmra.mxu0 %vm196_vm2, %v4355_v52 }
0x21cc   :  { %5974 = vmatpush3.bf16.xpose.msra.mxu0 %v4472_v20  ;;  %5975 = vmatprep.mubr.msk.bf16.mxu0 %vm6360_vm1, %v6359_v4 }
0x21cd   :  { %5985 = vmatprep.subr.bf16.mxu0 %v6359_v4 }
0x21d3   :  { %5976 = vmatmul.mubr.msk.bf16.vlgmr.msra.gmra.mxu0 %vm196_vm2, %v4465_v51 }
0x21d4   :  { %5986 = vmatpush3.bf16.xpose.msra.mxu0 %v4582_v54  ;;  %5987 = vmatprep.mubr.msk.bf16.mxu0 %vm6360_vm1, %v6359_v4 }
0x21d5   :  { %5997 = vmatprep.subr.bf16.mxu0 %v6359_v4 }
0x21db   :  { %5988 = vmatmul.mubr.msk.bf16.vlgmr.msra.gmra.mxu0 %vm196_vm2, %v4575_v55 }
0x21dc   :  { %6001 = vmatprep.mubr.msk.bf16.mxu0 %vm6360_vm1, %v6359_v4 }
0x2273   :  { %v4053_v57 = vpop.f32.mrf.mxu0 }
0x2274   :  { %v4059_v56 = vsel %vm196_vm2, %v4053_v57, -inf }
0x2275   :  { %v7409_v9 = vpop.f32.mrf.mxu1  ;;  %4060 = vmax.xlane.f32.xlu0 %v4059_v56  ;;  %v5929_v59 = vpop.f32.mrf.mxu0 }
0x2277   :  { %v5911_v50 = vpop.f32.mrf.mxu1  ;;  %v4056_v62 = vpop.f32.mrf.mxu0 }
0x2279   :  { %v3895_v42 = vpop.f32.mrf.mxu1  ;;  %v5930_v63 = vpop.f32.mrf.mxu0 }
0x227b   :  { %v5912_v0 = vpop.f32.mrf.mxu1  ;;  %v4163_v2 = vpop.f32.mrf.mxu0 }
0x227c   :  { %v4169_v3 = vsel %vm196_vm2, %v4163_v2, -inf }
0x227d   :  { %v3943_v60 = vpop.f32.mrf.mxu1  ;;  %4170 = vmax.xlane.f32.xlu0 %v4169_v3  ;;  %v5941_v5 = vpop.f32.mrf.mxu0 }
0x227e   :  { %v3949_v6 = vsel %vm196_vm2, %v3943_v60, -inf }
0x227f   :  { %v5917_v46 = vpop.f32.mrf.mxu1  ;;  %3950 = vmax.xlane.f32.xlu1 %v3949_v6  ;;  %v4166_v8 = vpop.f32.mrf.mxu0 }
0x2281   :  { %v3946_v58 = vpop.f32.mrf.mxu1  ;;  %v5942_v10 = vpop.f32.mrf.mxu0 }
0x2283   :  { %v5918_v61 = vpop.f32.mrf.mxu1  ;;  %v4286_v13 = vpop.f32.mrf.mxu0 }
0x2284   :  { %v4292_v14 = vsel %vm196_vm2, %v4286_v13, -inf }
0x2285   :  { %4293 = vmax.xlane.f32.xlu1 %v4292_v14  ;;  %v5953_v15 = vpop.f32.mrf.mxu0 }
0x2287   :  { %v4289_v18 = vpop.f32.mrf.mxu0 }
0x2289   :  { %v5954_v19 = vpop.f32.mrf.mxu0 }
0x228b   :  { %v4398_v21 = vpop.f32.mrf.mxu0 }
0x228c   :  { %v4404_v53 = vsel %vm196_vm2, %v4398_v21, -inf }
0x228d   :  { %4405 = vmax.xlane.f32.xlu0 %v4404_v53  ;;  %v5965_v22 = vpop.f32.mrf.mxu0 }
0x228f   :  { %v4401_v23 = vpop.f32.mrf.mxu0 }
0x2291   :  { %v5966_v25 = vpop.f32.mrf.mxu0 }
0x2293   :  { %v4508_v26 = vpop.f32.mrf.mxu0 }
0x2294   :  { %v4514_v27 = vsel %vm196_vm2, %v4508_v26, -inf }
0x2295   :  { %4515 = vmax.xlane.f32.xlu1 %v4514_v27  ;;  %v5977_v40 = vpop.f32.mrf.mxu0 }
0x2297   :  { %v4511_v28 = vpop.f32.mrf.mxu0 }
0x2299   :  { %v5978_v29 = vpop.f32.mrf.mxu0 }
0x229b   :  { %v4618_v30 = vpop.f32.mrf.mxu0 }
0x229c   :  { %v4624_v31 = vsel %vm196_vm2, %v4618_v30, -inf }
0x229d   :  { %4625 = vmax.xlane.f32.xlu0 %v4624_v31  ;;  %v5989_v32 = vpop.f32.mrf.mxu0 }
0x229f   :  { %v4621_v33 = vpop.f32.mrf.mxu0 }
0x22a1   :  { %v5990_v11 = vpop.f32.mrf.mxu0 }
0x22fe   :  { %v4061_v35 = vpop.xlane.xlu0 %4060 }
0x22ff   :  { %v4062_v36 = vsub.f32 %v4053_v57, %v4061_v35 }
0x2301   :  { %v4063_v1 = vmul.f32 1.442695, %v4062_v36 }
0x2303   :  { %6295 = vpow2.f32 %v4063_v1 }
0x2306   :  { %v4171_v37 = vpop.xlane.xlu0 %4170 }
0x2307   :  { %v4172_v38 = vsub.f32 %v4163_v2, %v4171_v37 }
0x2308   :  { %v3951_v39 = vpop.xlane.xlu1 %3950 }
0x2309   :  { %v4173_v41 = vmul.f32 1.442695, %v4172_v38  ;;  %v3952_v17 = vsub.f32 %v3943_v60, %v3951_v39 }
0x230b   :  { %6297 = vpow2.f32 %v4173_v41  ;;  %v3953_v43 = vmul.f32 1.442695, %v3952_v17 }
0x230d   :  { %6299 = vpow2.f32 %v3953_v43 }
0x230e   :  { %v4294_v45 = vpop.xlane.xlu1 %4293 }
0x230f   :  { %v4295_v47 = vsub.f32 %v4286_v13, %v4294_v45 }
0x2310   :  { %v7417_v48 = vpop.eup %6295 }
0x2311   :  { %v4296_v49 = vmul.f32 1.442695, %v4295_v47  ;;  %v4065_v16 = vsel %vm196_vm2, %v7417_v48, 0.0 }
0x2312   :  { %4066 = vadd.xlane.f32.xlu0 %v4065_v16 }
0x2313   :  { %6301 = vpow2.f32 %v4296_v49 }
0x2316   :  { %v4406_v52 = vpop.xlane.xlu0 %4405 }
0x2317   :  { %v4407_v20 = vsub.f32 %v4398_v21, %v4406_v52 }
0x2318   :  { %v7421_v34 = vpop.eup %6297 }
0x2319   :  { %v4408_v51 = vmul.f32 1.442695, %v4407_v20  ;;  %v4175_v54 = vsel %vm196_vm2, %v7421_v34, 0.0 }
0x231a   :  { %v6300_v55 = vpop.eup %6299  ;;  %4176 = vadd.xlane.f32.xlu1 %v4175_v54 }
0x231b   :  { %6303 = vpow2.f32 %v4408_v51  ;;  %v3955_v57 = vsel %vm196_vm2, %v6300_v55, 0.0 }
0x231e   :  { %3956 = vadd.xlane.f32.xlu1 %v3955_v57  ;;  %v4516_v42 = vpop.xlane.xlu1 %4515 }
0x231f   :  { %v4517_v63 = vsub.f32 %v4508_v26, %v4516_v42 }
0x2320   :  { %v7426_v56 = vpop.eup %6301 }
0x2321   :  { %v4298_v59 = vsel %vm196_vm2, %v7426_v56, 0.0  ;;  %v4518_v0 = vmul.f32 1.442695, %v4517_v63 }
0x2322   :  { %4299 = vadd.xlane.f32.xlu0 %v4298_v59 }
0x2323   :  { %6305 = vpow2.f32 %v4518_v0 }
0x2326   :  { %v4626_v2 = vpop.xlane.xlu0 %4625 }
0x2327   :  { %v4627_v3 = vsub.f32 %v4618_v30, %v4626_v2 }
0x2328   :  { %v7430_v50 = vpop.eup %6303 }
0x2329   :  { %v4410_v62 = vsel %vm196_vm2, %v7430_v50, 0.0  ;;  %v4628_v60 = vmul.f32 1.442695, %v4627_v3 }
0x232a   :  { %4411 = vadd.xlane.f32.xlu0 %v4410_v62 }
0x232b   :  { %6307 = vpow2.f32 %v4628_v60 }
0x232f   :  { %3961 = vrot.lane.b32.xlu1 %v7335_v7, %s6363_s25 }
0x2330   :  { %v7440_v5 = vpop.eup %6305 }
0x2331   :  { %v4520_v6 = vsel %vm196_vm2, %v7440_v5, 0.0 }
0x2338   :  { %v7444_v46 = vpop.eup %6307 }
0x2339   :  { %v4630_v8 = vsel %vm196_vm2, %v7444_v46, 0.0 }
0x2340   :  { %4071 = vrot.lane.b32.xlu0 %v7335_v7, %s6366_s30 }
0x2344   :  { %4181 = vrot.lane.b32.xlu0 %v7335_v7, %s6368_s17 }
0x2353   :  { %4521 = vadd.xlane.f32.xlu1 %v4520_v6 }
0x2363   :  { %4631 = vadd.xlane.f32.xlu0 %v4630_v8 }
0x2364   :  { %4305 = vrot.lane.b32.xlu1 %v7344_v24, %s6362_s22 }
0x2368   :  { %4526 = vrot.lane.b32.xlu1 %v7344_v24, %s6366_s30 }
0x236c   :  { %4636 = vrot.lane.b32.xlu1 %v7344_v24, %s6368_s17 }
0x2379   :  { %4416 = vrot.lane.b32.xlu0 %v7344_v24, %s6363_s25 }
0x239b   :  { %v4067_v10 = vpop.xlane.xlu0 %4066 }
0x23a3   :  { %v4177_v7 = vpop.xlane.xlu1 %4176 }
0x23a7   :  { %v3957_v58 = vpop.xlane.xlu1 %3956 }
0x23a8   :  { %6309 = vrcp.f32 %v3957_v58  ;;  %v6160_v58 = vld [vmem:[%s7630_s9 + $0x10] sm:$0xff]  }
0x23a9   :  { %6311 = vrcp.f32 %v4067_v10 }
0x23aa   :  { %6313 = vrcp.f32 %v4177_v7 }
0x23ab   :  { %v3962_v61 = vpop.permute.xlu1 %3961  ;;  %v4300_v14 = vpop.xlane.xlu0 %4299 }
0x23ac   :  { %v3967_v13 = vsel %vm260_vm3, %v3962_v61, 0  ;;  %6315 = vrcp.f32 %v4300_v14 }
0x23ad   :  { %5920 = vmatpush3.bf16.msra.mxu1 %v3967_v13  ;;  %v4719_v13 = vsel %vm63_vm0, %v6160_v58, 0 }
0x23ae   :  { %5931 = vmatprep.subr.bf16.mxu1 %v6359_v4 }
0x23b3   :  { %v4412_v15 = vpop.xlane.xlu0 %4411 }
0x23b4   :  { %6317 = vrcp.f32 %v4412_v15 }
0x23b5   :  { %v6310_v18 = vpop.eup %6309 }
0x23b6   :  { %v3959_v19 = vmul.f32 %v6310_v18, %v6300_v55  ;;  %v6312_v22 = vpop.eup %6311 }
0x23b7   :  { %v4072_v21 = vpop.permute.xlu0 %4071  ;;  %v4069_v23 = vmul.f32 %v6312_v22, %v7417_v48  ;;  %v6314_v27 = vpop.eup %6313 }
0x23b8   :  { %v3960_v53 = vpack.c.bf16 %v3959_v19, %v3959_v19  ;;  %v4077_v24 = vsel %vm260_vm3, %v4072_v21, 0  ;;  %v4179_v28 = vmul.f32 %v6314_v27, %v7421_v34 }
0x23b9   :  { %v4070_v26 = vpack.c.bf16 %v4069_v23, %v4069_v23  ;;  %v6316_v30 = vpop.eup %6315 }
0x23ba   :  { %5922 = vmatmul.mubr.msk.bf16.vlgmr.msra.gmra.mxu1 %vm196_vm2, %v3960_v53  ;;  %v4180_v29 = vpack.c.bf16 %v4179_v28, %v4179_v28  ;;  %v4302_v32 = vmul.f32 %v6316_v30, %v7426_v56 }
0x23bb   :  { %5932 = vmatpush3.bf16.msra.mxu1 %v4077_v24  ;;  %5933 = vmatprep.mubr.msk.bf16.mxu1 %vm6360_vm1, %v6359_v4  ;;  %v4182_v25 = vpop.permute.xlu0 %4181 }
0x23bc   :  { %5943 = vmatprep.subr.bf16.mxu1 %v6359_v4  ;;  %v4187_v40 = vsel %vm260_vm3, %v4182_v25, 0  ;;  %v4303_v35 = vpack.c.bf16 %v4302_v32, %v4302_v32 }
0x23c1   :  { %v6318_v36 = vpop.eup %6317 }
0x23c2   :  { %5934 = vmatmul.mubr.msk.bf16.vlgmr.msra.gmra.mxu1 %vm196_vm2, %v4070_v26  ;;  %v4414_v37 = vmul.f32 %v6318_v36, %v7430_v50 }
0x23c3   :  { %5944 = vmatpush3.bf16.msra.mxu1 %v4187_v40  ;;  %5945 = vmatprep.mubr.msk.bf16.mxu1 %vm6360_vm1, %v6359_v4 }
0x23c4   :  { %5955 = vmatprep.subr.bf16.mxu1 %v6359_v4  ;;  %v4415_v17 = vpack.c.bf16 %v4414_v37, %v4414_v37 }
0x23ca   :  { %5946 = vmatmul.mubr.msk.bf16.vlgmr.msra.gmra.mxu1 %vm196_vm2, %v4180_v29 }
0x23cb   :  { %5957 = vmatprep.mubr.msk.bf16.mxu1 %vm6360_vm1, %v6359_v4 }
0x23dc   :  { %v4522_v31 = vpop.xlane.xlu1 %4521 }
0x23dd   :  { %6319 = vrcp.f32 %v4522_v31 }
0x23e0   :  { %v4306_v33 = vpop.permute.xlu1 %4305 }
0x23e1   :  { %v4311_v11 = vsel %vm260_vm3, %v4306_v33, 0 }
0x23e2   :  { %5956 = vmatpush3.bf16.msra.mxu1 %v4311_v11 }
0x23e3   :  { %5967 = vmatprep.subr.bf16.mxu1 %v6359_v4 }
0x23e4   :  { %v4527_v41 = vpop.permute.xlu1 %4526 }
0x23e5   :  { %5958 = vmatmul.mubr.msk.bf16.vlgmr.msra.gmra.mxu1 %vm196_vm2, %v4303_v35  ;;  %v4532_v45 = vsel %vm260_vm3, %v4527_v41, 0 }
0x23e6   :  { %5969 = vmatprep.mubr.msk.bf16.mxu1 %vm6360_vm1, %v6359_v4 }
0x23e8   :  { %v4637_v48 = vpop.permute.xlu1 %4636 }
0x23e9   :  { %v4642_v52 = vsel %vm260_vm3, %v4637_v48, 0 }
0x23ea   :  { %v6320_v43 = vpop.eup %6319 }
0x23eb   :  { %v4524_v47 = vmul.f32 %v6320_v43, %v7440_v5 }
0x23ec   :  { %v4632_v1 = vpop.xlane.xlu0 %4631 }
0x23ed   :  { %6321 = vrcp.f32 %v4632_v1  ;;  %v4525_v49 = vpack.c.bf16 %v4524_v47, %v4524_v47 }
0x23f0   :  { %v4417_v38 = vpop.permute.xlu0 %4416 }
0x23f1   :  { %v4422_v39 = vsel %vm260_vm3, %v4417_v38, 0 }
0x23f2   :  { %5968 = vmatpush3.bf16.msra.mxu1 %v4422_v39 }
0x23f3   :  { %5979 = vmatprep.subr.bf16.mxu1 %v6359_v4 }
0x23f5   :  { %5970 = vmatmul.mubr.msk.bf16.vlgmr.msra.gmra.mxu1 %vm196_vm2, %v4415_v17 }
0x23f6   :  { %5980 = vmatpush3.bf16.msra.mxu1 %v4532_v45  ;;  %5981 = vmatprep.mubr.msk.bf16.mxu1 %vm6360_vm1, %v6359_v4 }
0x23f7   :  { %5991 = vmatprep.subr.bf16.mxu1 %v6359_v4 }
0x23fa   :  { %v6322_v16 = vpop.eup %6321 }
0x23fb   :  { %v4634_v20 = vmul.f32 %v6322_v16, %v7444_v46  ;;  %v6159_v46 = vld [vmem:[%s7630_s9 + $0x18] sm:$0xff]  }
0x23fc   :  { %v4722_v8 = vsel %vm63_vm0, %v6159_v46, 0 }
0x23fd   :  { %5982 = vmatmul.mubr.msk.bf16.vlgmr.msra.gmra.mxu1 %vm196_vm2, %v4525_v49  ;;  %v4635_v34 = vpack.c.bf16 %v4634_v20, %v4634_v20  ;;  %5998 = vmatpush3.bf16.xpose.msra.mxu0 %v4722_v8 }
0x23fe   :  { %5992 = vmatpush3.bf16.msra.mxu1 %v4642_v52  ;;  %5993 = vmatprep.mubr.msk.bf16.mxu1 %vm6360_vm1, %v6359_v4 }
0x23ff   :  { %6005 = vmatprep.subr.bf16.mxu1 %v6359_v4  ;;  %5999 = vmatprep.subr.bf16.mxu0 %v6359_v4 }
0x2405   :  { %5994 = vmatmul.mubr.msk.bf16.vlgmr.msra.gmra.mxu1 %vm196_vm2, %v4635_v34  ;;  %6000 = vmatpush3.bf16.xpose.msra.mxu0 %v4719_v13  ;;  %v6166_v13 = vld [vmem:[%s7633_s12 + $0x10] sm:$0xff]  }
0x2406   :  { %6013 = vmatprep.mubr.msk.bf16.mxu1 %vm6360_vm1, %v6359_v4  ;;  %6017 = vmatprep.subr.bf16.mxu0 %v6359_v4 }
0x247a   :  { %v4003_v51 = vpop.f32.mrf.mxu1 }
0x247c   :  { %v5923_v54 = vpop.f32.mrf.mxu1 }
0x247e   :  { %v4006_v55 = vpop.f32.mrf.mxu1 }
0x2480   :  { %v5924_v57 = vpop.f32.mrf.mxu1 }
0x2482   :  { %v4113_v56 = vpop.f32.mrf.mxu1 }
0x2484   :  { %v5935_v59 = vpop.f32.mrf.mxu1 }
0x2486   :  { %v4116_v50 = vpop.f32.mrf.mxu1 }
0x2487   :  { %v6165_v50 = vld [vmem:[%s7633_s12 + $0x18] sm:$0xff]  }
0x2488   :  { %v5936_v62 = vpop.f32.mrf.mxu1 }
0x2489   :  { %v4904_v62 = vsel %vm2452_vm6, %v6165_v50, 0 }
0x248a   :  { %v4223_v42 = vpop.f32.mrf.mxu1 }
0x248c   :  { %v5947_v63 = vpop.f32.mrf.mxu1 }
0x248e   :  { %v4226_v0 = vpop.f32.mrf.mxu1 }
0x2490   :  { %v5948_v2 = vpop.f32.mrf.mxu1 }
0x24a5   :  { %v4347_v3 = vpop.f32.mrf.mxu1 }
0x24a7   :  { %v5959_v60 = vpop.f32.mrf.mxu1 }
0x24a9   :  { %v4350_v5 = vpop.f32.mrf.mxu1 }
0x24aa   :  { %v5271_v5 = vld [vmem:[%s7631_s10 + $0x1] ss:$0 sm:$0xff] }
0x24ab   :  { %v5960_v6 = vpop.f32.mrf.mxu1 }
0x24b5   :  { %v4458_v7 = vpop.f32.mrf.mxu1 }
0x24b6   :  { %v6108_v10 = vpack.i.bf16 %v4458_v7, %v4003_v51 }
0x24b7   :  { %v5971_v61 = vpop.f32.mrf.mxu1 }
0x24b8   :  { %6109 = vrot.lane.b32.xlu1 %v6108_v10, %s6372_s23 }
0x24b9   :  { %v4461_v14 = vpop.f32.mrf.mxu1 }
0x24ba   :  { %v4901_v14 = vsel %vm2452_vm6, %v6166_v13, 0 }
0x24bb   :  { %v5972_v15 = vpop.f32.mrf.mxu1 }
0x24bd   :  { %v4568_v18 = vpop.f32.mrf.mxu1 }
0x24be   :  { %v6113_v19 = vpack.i.bf16 %v4568_v18, %v4113_v56  ;;  %v6164_v56 = vld [vmem:[%s7632_s11 + $0x20] sm:$0xff]  }
0x24bf   :  { %v5983_v21 = vpop.f32.mrf.mxu1  ;;  %v4827_v59 = vsel %vm63_vm0, %v6164_v56, 0 }
0x24c0   :  { %6114 = vrot.lane.b32.xlu1 %v6113_v19, %s7649_s28 }
0x24c1   :  { %v4571_v53 = vpop.f32.mrf.mxu1 }
0x24c3   :  { %v5984_v24 = vpop.f32.mrf.mxu1 }
0x24c5   :  { %v4678_v22 = vpop.f32.mrf.mxu1 }
0x24c6   :  { %v6118_v23 = vpack.i.bf16 %v4678_v22, %v4223_v42 }
0x24c7   :  { %v5995_v25 = vpop.f32.mrf.mxu1 }
0x24c8   :  { %6119 = vrot.lane.b32.xlu0 %v6118_v23, %s7650_s24  ;;  %v6167_v23 = vld [vmem:[%s7635_s14 + $0x38] sm:$0xff]  }
0x24c9   :  { %v4681_v26 = vpop.f32.mrf.mxu1  ;;  %v5056_v25 = vsel %vm63_vm0, %v6167_v23, 0 }
0x24ca   :  { %v6168_v26 = vld [vmem:[%s7635_s14 + $0x30] sm:$0xff]  }
0x24cb   :  { %v5996_v27 = vpop.f32.mrf.mxu1 }
0x24cc   :  { %v5053_v27 = vsel %vm63_vm0, %v6168_v26, 0 }
0x252a   :  { %v6110_v40 = vpop.permute.xlu1 %6109 }
0x252b   :  { %v6112_v29 = vunpack.i.h.bf16 %v6110_v40  ;;  %v6111_v30 = vunpack.i.l.bf16 %v6110_v40  ;;  %v6169_v40 = vld [vmem:[%s7635_s14 + $0x28] sm:$0xff]  }
0x252d   :  { %v4696_v11 = vsel %vm196_vm2, %v4347_v3, %v6112_v29  ;;  %v4241_v35 = vsel %vm196_vm2, %v7409_v9, %v6111_v30  ;;  %v6161_v9 = vld [vmem:[%s7632_s11 + $0x38] sm:$0xff]   ;;  %v6170_v29 = vld [vmem:[%s7635_s14 + $0x20] sm:$0xff]  }
0x252e   :  { %v4836_v43 = vsel %vm63_vm0, %v6161_v9, 0  ;;  %v5047_v30 = vsel %vm63_vm0, %v6170_v29, 0  ;;  %v6172_v9 = vld [vmem:[%s7635_s14 + $0x10] sm:$0xff]  }
0x252f   :  { %6006 = vmatpush3.bf16.xpose.msra.mxu1 %v4836_v43  ;;  %v5041_v43 = vsel %vm63_vm0, %v6172_v9, 0 }
0x2530   :  { %6007 = vmatprep.subr.bf16.mxu1 %v6359_v4 }
0x2532   :  { %v6115_v28 = vpop.permute.xlu1 %6114 }
0x2533   :  { %v6117_v31 = vunpack.i.h.bf16 %v6115_v28  ;;  %v6116_v32 = vunpack.i.l.bf16 %v6115_v28  ;;  %v5050_v28 = vsel %vm63_vm0, %v6169_v40, 0 }
0x2535   :  { %v4697_v37 = vsel %vm647_vm4, %v4696_v11, %v6117_v31  ;;  %v4242_v38 = vsel %vm647_vm4, %v4241_v35, %v6116_v32  ;;  %v6171_v31 = vld [vmem:[%s7635_s14 + $0x18] sm:$0xff]  }
0x2536   :  { %v5044_v32 = vsel %vm63_vm0, %v6171_v31, 0 }
0x253a   :  { %v6120_v33 = vpop.permute.xlu0 %6119 }
0x253b   :  { %v6122_v36 = vunpack.i.h.bf16 %v6120_v33  ;;  %v6121_v1 = vunpack.i.l.bf16 %v6120_v33 }
0x253d   :  { %v4698_v39 = vsel %vm649_vm5, %v4697_v37, %v6122_v36  ;;  %v4243_v41 = vsel %vm649_vm5, %v4242_v38, %v6121_v1 }
0x253e   :  { %v4704_v17 = vpack.c.bf16 %v4698_v39, %v4243_v41 }
0x2540   :  { %6002 = vmatmul.mubr.msk.bf16.vlgmr.msra.gmra.mxu0 %vm63_vm0, %v4704_v17 }
0x2541   :  { %6021 = vmatprep.mubr.msk.bf16.mxu0 %vm6360_vm1, %v6359_v4  ;;  %6018 = vmatpush3.bf16.xpose.msra.mxu0 %v4904_v62 }
0x2542   :  { %6019 = vmatprep.subr.bf16.mxu0 %v6359_v4 }
0x2549   :  { %6020 = vmatpush3.bf16.xpose.msra.mxu0 %v4901_v14 }
0x254a   :  { %6025 = vmatprep.subr.bf16.mxu0 %v6359_v4 }
0x2600   :  { %v4758_v45 = vpop.f32.mrf.mxu0 }
0x2601   :  { %v7526_v47 = vadd.f32 %v4758_v45, %v7297_v12  ;;  %v6162_v12 = vld [vmem:[%s7632_s11 + $0x30] sm:$0xff]   ;;  %v6173_v45 = vld [vmem:[%s7635_s14 + $0x8] sm:$0xff]  }
0x2602   :  { %v6003_v48 = vpop.f32.mrf.mxu0  ;;  %v4833_v55 = vsel %vm63_vm0, %v6162_v12, 0  ;;  %v5292_v12 = vld [vmem:[%s7634_s13] ss:$0 sm:$0xff] }
0x2603   :  { %v4769_v49 = vmul.f32 %v7526_v47, %v7526_v47  ;;  %6008 = vmatpush3.bf16.xpose.msra.mxu1 %v4833_v55  ;;  %v4785_v46 = vmul.f32 %v5271_v5, %v7526_v47  ;;  %v6174_v48 = vld [vmem:[%s7635_s14] sm:$0xff]   ;;  %s6375_s14 = smov [#allocation2]  }
0x2604   :  { %v4761_v16 = vpop.f32.mrf.mxu0  ;;  %6009 = vmatprep.subr.bf16.mxu1 %v6359_v4  ;;  %s5106_s18 = sshll.u32 %s6375_s14, 4  ;;  %s5107_s18 = int_to_ptr.vmem [resolvable:$true] %s5106_s18 }
0x2605   :  { %v7531_v52 = vadd.f32 %v4761_v16, %v7302_v44  ;;  %v4771_v20 = vsel %vm63_vm0, %v4769_v49, 0.0  ;;  %v6163_v44 = vld [vmem:[%s7632_s11 + $0x28] sm:$0xff]   ;;  %v5035_v49 = vsel %vm63_vm0, %v6174_v48, 0  ;;  %s6337_s28 = scalar_lea.vmem %s5107_s18, 256  ;;  %p6342_p1 = scmp.lt.s32.totalorder %s5107_s18, %s5107_s18 }
0x2606   :  { %4772 = vadd.xlane.f32.xlu1 %v4771_v20  ;;  %v6004_v34 = vpop.f32.mrf.mxu0  ;;  %v4830_v57 = vsel %vm63_vm0, %v6163_v44, 0  ;;  %p6338_p0 = scmp.ne.s32.totalorder %s5107_s18, %s6337_s28  ;;  %p6343_p2 = scmp.lt.s32.totalorder %s6337_s28, %s6337_s28 }
0x2607   :  { %v4770_v51 = vmul.f32 %v7531_v52, %v7531_v52  ;;  %v4786_v8 = vmul.f32 %v5271_v5, %v7531_v52 }
0x2608   :  { %p6344_p3 = por %p6343_p2, %p6342_p1 }
0x2609   :  { %v4774_v54 = vsel %vm63_vm0, %v4770_v51, 0.0 }
0x260a   :  { %4775 = vadd.xlane.f32.xlu0 %v4774_v54  ;;  %p6345_p4 = pnand %p6344_p3, %p6338_p0 }
0x260b   :  { %6010 = vmatpush3.bf16.xpose.msra.mxu1 %v4830_v57 }
0x260c   :  { %6011 = vmatprep.subr.bf16.mxu1 %v6359_v4 }
0x2613   :  { %6012 = vmatpush3.bf16.xpose.msra.mxu1 %v4827_v59 }
0x268f   :  { %v4773_v42 = vpop.xlane.xlu1 %4772 }
0x2690   :  { %v4777_v63 = vmul.f32 0.03125, %v4773_v42 }
0x2692   :  { %v4787_v0 = vadd.f32 1e-06, %v4777_v63 }
0x2693   :  { %v4776_v2 = vpop.xlane.xlu0 %4775 }
0x2694   :  { %v4778_v3 = vmul.f32 0.03125, %v4776_v2  ;;  %6323 = vrsqrt.f32 %v4787_v0 }
0x2696   :  { %v4788_v60 = vadd.f32 1e-06, %v4778_v3 }
0x2698   :  { %6325 = vrsqrt.f32 %v4788_v60 }
0x26a1   :  { %v6324_v6 = vpop.eup %6323 }
0x26a2   :  { %v4791_v58 = vmul.f32 %v6324_v6, %v4785_v46 }
0x26a5   :  { %v6326_v7 = vpop.eup %6325 }
0x26a6   :  { %v4792_v10 = vmul.f32 %v6326_v7, %v4786_v8 }
0x26a8   :  { %v4802_v61 = vpack.c.bf16 %v4792_v10, %v4791_v58 }
0x26aa   :  { %6014 = vmatmul.mubr.msk.bf16.vlgmr.msra.gmra.mxu1 %vm63_vm0, %v4802_v61 }
0x276a   :  { %v4872_v15 = vpop.f32.mrf.mxu1 }
0x276b   :  { %v4879_v21 = vmax.f32 %v4872_v15, 0.0 }
0x276c   :  { %v6015_v18 = vpop.f32.mrf.mxu1 }
0x276e   :  { %v4875_v19 = vpop.f32.mrf.mxu1 }
0x276f   :  { %v4880_v53 = vmax.f32 %v4875_v19, 0.0 }
0x2770   :  { %v6016_v24 = vpop.f32.mrf.mxu1 }
0x2771   :  { %v4886_v22 = vpack.c.bf16 %v4880_v53, %v4879_v21 }
0x2773   :  { %6022 = vmatmul.mubr.msk.bf16.vlgmr.msra.gmra.mxu0 %vm2452_vm6, %v4886_v22 }
0x2774   :  { %6041 = vmatprep.mubr.msk.bf16.mxu0 %vm6360_vm1, %v6359_v4  ;;  %6026 = vmatpush3.bf16.xpose.msra.mxu0 %v5056_v25 }
0x2775   :  { %6027 = vmatprep.subr.bf16.mxu0 %v6359_v4 }
0x277c   :  { %6028 = vmatpush3.bf16.xpose.msra.mxu0 %v5053_v27 }
0x277d   :  { %6029 = vmatprep.subr.bf16.mxu0 %v6359_v4 }
0x2784   :  { %6030 = vmatpush3.bf16.xpose.msra.mxu0 %v5050_v28 }
0x2785   :  { %6031 = vmatprep.subr.bf16.mxu0 %v6359_v4 }
0x278c   :  { %6032 = vmatpush3.bf16.xpose.msra.mxu0 %v5047_v30 }
0x278d   :  { %6033 = vmatprep.subr.bf16.mxu0 %v6359_v4 }
0x2794   :  { %6034 = vmatpush3.bf16.xpose.msra.mxu0 %v5044_v32 }
0x2795   :  { %6035 = vmatprep.subr.bf16.mxu0 %v6359_v4 }
0x279c   :  { %6036 = vmatpush3.bf16.xpose.msra.mxu0 %v5041_v43 }
0x279d   :  { %6037 = vmatprep.subr.bf16.mxu0 %v6359_v4 }
0x2833   :  { %v4940_v33 = vpop.f32.mrf.mxu0 }
0x2834   :  { %v4947_v11 = vadd.f32 %v4940_v33, %v7526_v47  ;;  %v5038_v47 = vsel %vm63_vm0, %v6173_v45, 0 }
0x2835   :  { %v6023_v35 = vpop.f32.mrf.mxu0  ;;  %6038 = vmatpush3.bf16.xpose.msra.mxu0 %v5038_v47 }
0x2836   :  { %v4950_v36 = vmul.f32 %v4947_v11, %v4947_v11  ;;  %6039 = vmatprep.subr.bf16.mxu0 %v6359_v4  ;;  %v4966_v55 = vmul.f32 %v5292_v12, %v4947_v11 }
0x2837   :  { %v4943_v1 = vpop.f32.mrf.mxu0 }
0x2838   :  { %v4948_v37 = vadd.f32 %v4943_v1, %v7531_v52  ;;  %v4952_v38 = vsel %vm63_vm0, %v4950_v36, 0.0 }
0x2839   :  { %4953 = vadd.xlane.f32.xlu0 %v4952_v38  ;;  %v6024_v39 = vpop.f32.mrf.mxu0 }
0x283a   :  { %v4951_v41 = vmul.f32 %v4948_v37, %v4948_v37  ;;  %v4967_v44 = vmul.f32 %v5292_v12, %v4948_v37 }
0x283c   :  { %v4955_v17 = vsel %vm63_vm0, %v4951_v41, 0.0 }
0x283d   :  { %4956 = vadd.xlane.f32.xlu1 %v4955_v17  ;;  %6040 = vmatpush3.bf16.xpose.msra.mxu0 %v5035_v49 }
0x28c2   :  { %v4954_v16 = vpop.xlane.xlu0 %4953 }
0x28c3   :  { %v4958_v52 = vmul.f32 0.03125, %v4954_v16 }
0x28c5   :  { %v4968_v20 = vadd.f32 1e-06, %v4958_v52 }
0x28c6   :  { %v4957_v34 = vpop.xlane.xlu1 %4956 }
0x28c7   :  { %v4959_v51 = vmul.f32 0.03125, %v4957_v34  ;;  %6327 = vrsqrt.f32 %v4968_v20 }
0x28c9   :  { %v4969_v54 = vadd.f32 1e-06, %v4959_v51 }
0x28cb   :  { %6329 = vrsqrt.f32 %v4969_v54 }
0x28d4   :  { %v6328_v4 = vpop.eup %6327 }
0x28d5   :  { %v4972_v56 = vmul.f32 %v6328_v4, %v4966_v55 }
0x28d8   :  { %v6330_v57 = vpop.eup %6329 }
0x28d9   :  { %v4973_v59 = vmul.f32 %v6330_v57, %v4967_v44 }
0x28db   :  { %v4990_v50 = vpack.c.bf16 %v4973_v59, %v4972_v56 }
0x28dd   :  { %6042 = vmatmul.mubr.msk.bf16.vlgmr.msra.gmra.mxu0 %vm63_vm0, %v4990_v50 }
0x299d   :  { %v5092_v62 = vpop.f32.mrf.mxu0 }
0x299e   :  { %5099 = vst [vmem:[#allocation2] sm:$0xff] %v5092_v62 }
0x299f   :  { %v6043_v42 = vpop.f32.mrf.mxu0 }
0x29a1   :  { %v5095_v63 = vpop.f32.mrf.mxu0 }
0x29a2   :  { %5100 = vst [vmem:[#allocation2 + $0x8] sm:$0xff] %v5095_v63 }
0x29a3   :  { %v6044_v0 = vpop.f32.mrf.mxu0 }
0x29a4   :  { %6348 = shalt.err (!%p6345_p4)
}
0x29a5   :  { %s6376_s13 = smov 128  }
0x29a6   :  { %5112 = dma.vmem_to_hbm [thread:$0]  %s5107_s18, 256, %s7636_s15, [#allocation3], %s6376_s13, %s6376_s13, %s6372_s23  }
0x29a7   :  { %6357 = dma.done.wait [#allocation3], 256  }
0x29a8   :  { %6358 = vsyncadd [#allocation3], 4294967040 }
0x29a9   :  { %5116 = vsyncpa [#allocation3], 1 }

</bundles_post_ra>
